<compile_context>
chip_gen: v7x
topology: tpu7x:2x2x1
jax: 0.10.0
libtpu: 0.0.40
codegen_flags: <defaults>
</compile_context>

<pallas_src>
import functools

import jax
import jax.numpy as jnp
from jax import lax
from jax.experimental import pallas as pl
from jax.experimental.pallas import tpu as pltpu

K = 5   # conv kernel size
P = 2   # padding (same-length conv)


def resblock_kernel(x_ref, w1_ref, b1_ref, w2_ref, b2_ref, o_ref, *, L):
    # x_ref : (1, M, C) f32   with M = nb * L  (nb batch elements folded into rows)
    # w*_ref: (K, C, C) bf16  tap-major weights, (k, c_in, c_out)
    # b*_ref: (1, C)    f32
    # o_ref : (1, M, C) f32
    x = x_ref[0]                              # (M, C) f32
    M, C = x.shape

    # Hoisted once per grid step, reused by both convs.
    b1 = b1_ref[...]                          # (1, C) broadcasts over M rows
    b2 = b2_ref[...]

    # Row index within each original batch element (for padding / batch-edge
    # masking after the batch fold).
    row = lax.broadcasted_iota(jnp.int32, (M, 1), 0) % L

    # Per-tap (tap index, roll amount, validity mask), computed once.
    # Output row r reads input row r + (k - P); rows whose source falls in the
    # zero padding (or in a neighbouring batch element after the fold) are
    # masked out on the SOURCE side so each conv is a pure dot->accumulate
    # chain (lets v7x accumulate taps in the MRB; neutral on v5e/v6e).
    taps = []
    for k in range(K):
        s = k - P
        if s == 0:
            taps.append((k, 0, None))
        else:
            valid = jnp.logical_and(row + s >= 0, row + s < L)   # (M, 1) bool
            taps.append((k, (-s) % M, valid))

    def conv1d(a, w_ref, b):
        # a: (M, C) f32 activations; MXU operands bf16, accumulation f32.
        acc = jnp.zeros((M, C), jnp.float32)
        for k, shift, valid in taps:
            # Shifted view via XLU rotate (no copies through the store slot).
            src = a if shift == 0 else pltpu.roll(a, shift, axis=0)
            if valid is not None:
                src = jnp.where(valid, src, 0.0)      # f32 VPU select (v5e-safe)
            acc = acc + jnp.dot(src.astype(jnp.bfloat16), w_ref[k],
                                preferred_element_type=jnp.float32)
        return acc + b

    h = jnp.maximum(x, 0.0)                   # ReLU (f32)
    h = conv1d(h, w1_ref, b1)                 # Conv1d #1
    h = jnp.maximum(h, 0.0)                   # ReLU
    h = conv1d(h, w2_ref, b2)                 # Conv1d #2
    o_ref[0] = (x + 0.3 * h).astype(o_ref.dtype)


def resblock_pallas(x_ncl, w1, b1, w2, b2, *, batch_block=4):
    """x_ncl: (N, C, L) float32, PyTorch layout. w1/w2: (C_out, C_in, K) PyTorch
    layout; b1/b2: (C,). batch_block = number of batch elements folded into the
    matmul M dimension per grid step (must divide N)."""
    N, C, L = x_ncl.shape
    if batch_block < 1 or N % batch_block != 0:
        raise ValueError(
            f"batch_block={batch_block} must be >= 1 and divide N={N}")
    nb = batch_block
    G = N // nb              # grid steps ("parallel" axis for megacore)
    M = nb * L               # rows per tap matmul

    # NCL -> NLC, then fold nb batch elements into the row axis so the kernel
    # sees a lane-dense (M, C) slab.  (Keep NLC end-to-end at production sizes
    # to avoid this HBM round-trip -- see header note.)
    x_fold = jnp.transpose(x_ncl, (0, 2, 1)).reshape(G, M, C)
    # (out, in, k) -> (k, in, out), stored bf16: MXU-native operand dtype.
    w1_kio = jnp.transpose(w1, (2, 1, 0)).astype(jnp.bfloat16)
    w2_kio = jnp.transpose(w2, (2, 1, 0)).astype(jnp.bfloat16)
    b1_2d = b1.reshape(1, C).astype(jnp.float32)
    b2_2d = b2.reshape(1, C).astype(jnp.float32)

    out_fold = pl.pallas_call(
        functools.partial(resblock_kernel, L=L),
        out_shape=jax.ShapeDtypeStruct((G, M, C), x_ncl.dtype),
        grid=(G,),
        in_specs=[
            pl.BlockSpec((1, M, C), lambda n: (n, 0, 0)),   # x (batch tile)
            pl.BlockSpec((K, C, C), lambda n: (0, 0, 0)),   # w1 (resident, bf16)
            pl.BlockSpec((1, C), lambda n: (0, 0)),         # b1
            pl.BlockSpec((K, C, C), lambda n: (0, 0, 0)),   # w2 (resident, bf16)
            pl.BlockSpec((1, C), lambda n: (0, 0)),         # b2
        ],
        out_specs=pl.BlockSpec((1, M, C), lambda n: (n, 0, 0)),
        compiler_params=pltpu.CompilerParams(
            dimension_semantics=("parallel",)),
    )(x_fold, w1_kio, b1_2d, w2_kio, b2_2d)

    # (G, nb*L, C) -> (N, L, C) -> (N, C, L)
    return jnp.transpose(out_fold.reshape(N, L, C), (0, 2, 1))


def resblock_ref(x_ncl, w1, b1, w2, b2):
    """Pure-JAX f32 reference mirroring the PyTorch module (NCL layout)."""
    def conv1d(a, w, b):
        y = lax.conv_general_dilated(
            a, w, window_strides=(1,), padding=((P, P),),
            dimension_numbers=("NCH", "OIH", "NCH"))
        return y + b[None, :, None]

    h = jnp.maximum(x_ncl, 0.0)
    h = conv1d(h, w1, b1)
    h = jnp.maximum(h, 0.0)
    h = conv1d(h, w2, b2)
    return x_ncl + 0.3 * h


if __name__ == "__main__":
    # ResBlock(dim=128): channels fill the 128-lane axis.  N=8, batch_block=4
    # -> grid=(2,) parallel steps (both v7x TensorCores busy) with M=256 rows
    # per tap matmul (amortizes MXU fill/drain and per-step overhead).
    N, C, L = 8, 128, 64

    key = jax.random.PRNGKey(0)
    kx, kw1, kb1, kw2, kb2 = jax.random.split(key, 5)

    x = jax.random.normal(kx, (N, C, L), dtype=jnp.float32)
    w1 = 0.1 * jax.random.normal(kw1, (C, C, K), dtype=jnp.float32)  # (out,in,K)
    b1 = 0.1 * jax.random.normal(kb1, (C,), dtype=jnp.float32)
    w2 = 0.1 * jax.random.normal(kw2, (C, C, K), dtype=jnp.float32)
    b2 = 0.1 * jax.random.normal(kb2, (C,), dtype=jnp.float32)

    out = jax.block_until_ready(
        resblock_pallas(x, w1, b1, w2, b2, batch_block=4))
    ref = jax.block_until_ready(resblock_ref(x, w1, b1, w2, b2))

    assert out.shape == (N, C, L)
    err = jnp.max(jnp.abs(out - ref))
    # Tolerance relaxed for bf16 MXU operands (f32 reference; ~1e-2 abs error
    # expected at 640-deep contractions through two convs).
    assert jnp.allclose(out, ref, atol=7.5e-2, rtol=5e-2), f"max abs err = {err}"

    print("KERNEL_OK")
</pallas_src>

<mosaic_0001>
module attributes {stable_mosaic.version = 11 : i64} {
  func.func @resblock_kernel(%arg0: i32, %arg1: memref<1x256x128xf32, #tpu.memory_space<vmem>>, %arg2: memref<5x128x128xbf16, #tpu.memory_space<vmem>>, %arg3: memref<1x128xf32, #tpu.memory_space<vmem>>, %arg4: memref<5x128x128xbf16, #tpu.memory_space<vmem>>, %arg5: memref<1x128xf32, #tpu.memory_space<vmem>>, %arg6: memref<1x256x128xf32, #tpu.memory_space<vmem>>) attributes {dimension_semantics = [#tpu.dimension_semantics<parallel>], iteration_bounds = array<i64: 2>, scalar_prefetch = 0 : i64, scratch_operands = 0 : i64, tpu.core_type = #tpu.core_type<tc>, window_params = [{transform_indices = @transform_0, window_bounds = array<i64: 1, 256, 128>}, {pipeline_mode = #tpu.pipeline_mode<synchronous>, transform_indices = @transform_1, window_bounds = array<i64: 5, 128, 128>}, {pipeline_mode = #tpu.pipeline_mode<synchronous>, transform_indices = @transform_2, window_bounds = array<i64: 1, 128>}, {pipeline_mode = #tpu.pipeline_mode<synchronous>, transform_indices = @transform_3, window_bounds = array<i64: 5, 128, 128>}, {pipeline_mode = #tpu.pipeline_mode<synchronous>, transform_indices = @transform_4, window_bounds = array<i64: 1, 128>}, {transform_indices = @transform_5, window_bounds = array<i64: 1, 256, 128>}]} {
    %c0 = arith.constant 0 : index
    %c0_0 = arith.constant 0 : index
    %c0_1 = arith.constant 0 : index
    %0 = vector.load %arg1[%c0, %c0_0, %c0_1] : memref<1x256x128xf32, #tpu.memory_space<vmem>>, vector<1x256x128xf32>
    %1 = vector.shape_cast %0 : vector<1x256x128xf32> to vector<256x128xf32>
    %c0_2 = arith.constant 0 : index
    %c0_3 = arith.constant 0 : index
    %2 = vector.load %arg3[%c0_2, %c0_3] : memref<1x128xf32, #tpu.memory_space<vmem>>, vector<1x128xf32>
    %c0_4 = arith.constant 0 : index
    %c0_5 = arith.constant 0 : index
    %3 = vector.load %arg5[%c0_4, %c0_5] : memref<1x128xf32, #tpu.memory_space<vmem>>, vector<1x128xf32>
    %4 = tpu.iota {dimensions = array<i32: 0>} : vector<256x1xi32>
    %c64_i32 = arith.constant 64 : i32
    %c0_i32 = arith.constant 0 : i32
    %5 = arith.cmpi eq, %c64_i32, %c0_i32 : i32
    %c1_i32 = arith.constant 1 : i32
    %6 = arith.select %5, %c1_i32, %c64_i32 : i32
    %7 = vector.broadcast %6 : i32 to vector<256x1xi32>
    %8 = arith.remsi %4, %7 : vector<256x1xi32>
    %c0_i32_6 = arith.constant 0 : i32
    %9 = vector.broadcast %c0_i32_6 : i32 to vector<256x1xi32>
    %10 = arith.cmpi ne, %8, %9 : vector<256x1xi32>
    %c0_i32_7 = arith.constant 0 : i32
    %11 = vector.broadcast %c0_i32_7 : i32 to vector<256x1xi32>
    %12 = arith.cmpi slt, %8, %11 : vector<256x1xi32>
    %c0_i32_8 = arith.constant 0 : i32
    %13 = arith.cmpi slt, %6, %c0_i32_8 : i32
    %14 = vector.broadcast %13 : i1 to vector<256x1xi1>
    %15 = vector.broadcast %14 : vector<256x1xi1> to vector<256x1xi1>
    %16 = arith.xori %12, %15 : vector<256x1xi1>
    %17 = arith.andi %16, %10 : vector<256x1xi1>
    %18 = vector.broadcast %6 : i32 to vector<256x1xi32>
    %19 = arith.addi %8, %18 : vector<256x1xi32>
    %20 = arith.select %17, %19, %8 : vector<256x1xi1>, vector<256x1xi32>
    %c-2_i32 = arith.constant -2 : i32
    %21 = vector.broadcast %c-2_i32 : i32 to vector<256x1xi32>
    %22 = arith.addi %20, %21 : vector<256x1xi32>
    %c0_i32_9 = arith.constant 0 : i32
    %23 = vector.broadcast %c0_i32_9 : i32 to vector<256x1xi32>
    %24 = arith.cmpi sge, %22, %23 : vector<256x1xi32>
    %c-2_i32_10 = arith.constant -2 : i32
    %25 = vector.broadcast %c-2_i32_10 : i32 to vector<256x1xi32>
    %26 = arith.addi %20, %25 : vector<256x1xi32>
    %c64_i32_11 = arith.constant 64 : i32
    %27 = vector.broadcast %c64_i32_11 : i32 to vector<256x1xi32>
    %28 = arith.cmpi slt, %26, %27 : vector<256x1xi32>
    %29 = arith.andi %24, %28 : vector<256x1xi1>
    %c-1_i32 = arith.constant -1 : i32
    %30 = vector.broadcast %c-1_i32 : i32 to vector<256x1xi32>
    %31 = arith.addi %20, %30 : vector<256x1xi32>
    %c0_i32_12 = arith.constant 0 : i32
    %32 = vector.broadcast %c0_i32_12 : i32 to vector<256x1xi32>
    %33 = arith.cmpi sge, %31, %32 : vector<256x1xi32>
    %c-1_i32_13 = arith.constant -1 : i32
    %34 = vector.broadcast %c-1_i32_13 : i32 to vector<256x1xi32>
    %35 = arith.addi %20, %34 : vector<256x1xi32>
    %c64_i32_14 = arith.constant 64 : i32
    %36 = vector.broadcast %c64_i32_14 : i32 to vector<256x1xi32>
    %37 = arith.cmpi slt, %35, %36 : vector<256x1xi32>
    %38 = arith.andi %33, %37 : vector<256x1xi1>
    %c1_i32_15 = arith.constant 1 : i32
    %39 = vector.broadcast %c1_i32_15 : i32 to vector<256x1xi32>
    %40 = arith.addi %20, %39 : vector<256x1xi32>
    %c0_i32_16 = arith.constant 0 : i32
    %41 = vector.broadcast %c0_i32_16 : i32 to vector<256x1xi32>
    %42 = arith.cmpi sge, %40, %41 : vector<256x1xi32>
    %c1_i32_17 = arith.constant 1 : i32
    %43 = vector.broadcast %c1_i32_17 : i32 to vector<256x1xi32>
    %44 = arith.addi %20, %43 : vector<256x1xi32>
    %c64_i32_18 = arith.constant 64 : i32
    %45 = vector.broadcast %c64_i32_18 : i32 to vector<256x1xi32>
    %46 = arith.cmpi slt, %44, %45 : vector<256x1xi32>
    %47 = arith.andi %42, %46 : vector<256x1xi1>
    %c2_i32 = arith.constant 2 : i32
    %48 = vector.broadcast %c2_i32 : i32 to vector<256x1xi32>
    %49 = arith.addi %20, %48 : vector<256x1xi32>
    %c0_i32_19 = arith.constant 0 : i32
    %50 = vector.broadcast %c0_i32_19 : i32 to vector<256x1xi32>
    %51 = arith.cmpi sge, %49, %50 : vector<256x1xi32>
    %c2_i32_20 = arith.constant 2 : i32
    %52 = vector.broadcast %c2_i32_20 : i32 to vector<256x1xi32>
    %53 = arith.addi %20, %52 : vector<256x1xi32>
    %c64_i32_21 = arith.constant 64 : i32
    %54 = vector.broadcast %c64_i32_21 : i32 to vector<256x1xi32>
    %55 = arith.cmpi slt, %53, %54 : vector<256x1xi32>
    %56 = arith.andi %51, %55 : vector<256x1xi1>
    %cst = arith.constant 0.000000e+00 : f32
    %57 = vector.broadcast %cst : f32 to vector<256x128xf32>
    %58 = arith.maximumf %1, %57 : vector<256x128xf32>
    %cst_22 = arith.constant 0.000000e+00 : f32
    %59 = vector.broadcast %cst_22 : f32 to vector<256x128xf32>
    %c2_i32_23 = arith.constant 2 : i32
    %60 = tpu.dynamic_rotate %58 by %c2_i32_23 dim 0 : vector<256x128xf32>, i32 -> vector<256x128xf32>
    %cst_24 = arith.constant 0.000000e+00 : f32
    %61 = vector.shape_cast %29 : vector<256x1xi1> to vector<256x1xi1>
    %62 = vector.broadcast %61 : vector<256x1xi1> to vector<256x128xi1>
    %63 = vector.broadcast %cst_24 : f32 to vector<256x128xf32>
    %64 = arith.select %62, %60, %63 : vector<256x128xi1>, vector<256x128xf32>
    %65 = arith.truncf %64 : vector<256x128xf32> to vector<256x128xbf16>
    %c0_25 = arith.constant 0 : index
    %c0_26 = arith.constant 0 : index
    %c0_27 = arith.constant 0 : index
    %66 = vector.load %arg2[%c0_25, %c0_26, %c0_27] : memref<5x128x128xbf16, #tpu.memory_space<vmem>>, vector<1x128x128xbf16>
    %67 = vector.shape_cast %66 : vector<1x128x128xbf16> to vector<128x128xbf16>
    %cst_28 = arith.constant dense<0.000000e+00> : vector<256x128xf32>
    %68 = tpu.matmul %65, %67, %cst_28 {dimension_numbers = #tpu.dot_dimension_numbers<[1], [0], [0], [1], [0, 0, 1, 1], [], []>} : vector<256x128xbf16>, vector<128x128xbf16>, vector<256x128xf32> -> vector<256x128xf32>
    %69 = arith.addf %59, %68 : vector<256x128xf32>
    %c1_i32_29 = arith.constant 1 : i32
    %70 = tpu.dynamic_rotate %58 by %c1_i32_29 dim 0 : vector<256x128xf32>, i32 -> vector<256x128xf32>
    %cst_30 = arith.constant 0.000000e+00 : f32
    %71 = vector.shape_cast %38 : vector<256x1xi1> to vector<256x1xi1>
    %72 = vector.broadcast %71 : vector<256x1xi1> to vector<256x128xi1>
    %73 = vector.broadcast %cst_30 : f32 to vector<256x128xf32>
    %74 = arith.select %72, %70, %73 : vector<256x128xi1>, vector<256x128xf32>
    %75 = arith.truncf %74 : vector<256x128xf32> to vector<256x128xbf16>
    %c1 = arith.constant 1 : index
    %c0_31 = arith.constant 0 : index
    %c0_32 = arith.constant 0 : index
    %76 = vector.load %arg2[%c1, %c0_31, %c0_32] : memref<5x128x128xbf16, #tpu.memory_space<vmem>>, vector<1x128x128xbf16>
    %77 = vector.shape_cast %76 : vector<1x128x128xbf16> to vector<128x128xbf16>
    %cst_33 = arith.constant dense<0.000000e+00> : vector<256x128xf32>
    %78 = tpu.matmul %75, %77, %cst_33 {dimension_numbers = #tpu.dot_dimension_numbers<[1], [0], [0], [1], [0, 0, 1, 1], [], []>} : vector<256x128xbf16>, vector<128x128xbf16>, vector<256x128xf32> -> vector<256x128xf32>
    %79 = arith.addf %69, %78 : vector<256x128xf32>
    %80 = arith.truncf %58 : vector<256x128xf32> to vector<256x128xbf16>
    %c2 = arith.constant 2 : index
    %c0_34 = arith.constant 0 : index
    %c0_35 = arith.constant 0 : index
    %81 = vector.load %arg2[%c2, %c0_34, %c0_35] : memref<5x128x128xbf16, #tpu.memory_space<vmem>>, vector<1x128x128xbf16>
    %82 = vector.shape_cast %81 : vector<1x128x128xbf16> to vector<128x128xbf16>
    %cst_36 = arith.constant dense<0.000000e+00> : vector<256x128xf32>
    %83 = tpu.matmul %80, %82, %cst_36 {dimension_numbers = #tpu.dot_dimension_numbers<[1], [0], [0], [1], [0, 0, 1, 1], [], []>} : vector<256x128xbf16>, vector<128x128xbf16>, vector<256x128xf32> -> vector<256x128xf32>
    %84 = arith.addf %79, %83 : vector<256x128xf32>
    %c255_i32 = arith.constant 255 : i32
    %85 = tpu.dynamic_rotate %58 by %c255_i32 dim 0 : vector<256x128xf32>, i32 -> vector<256x128xf32>
    %cst_37 = arith.constant 0.000000e+00 : f32
    %86 = vector.shape_cast %47 : vector<256x1xi1> to vector<256x1xi1>
    %87 = vector.broadcast %86 : vector<256x1xi1> to vector<256x128xi1>
    %88 = vector.broadcast %cst_37 : f32 to vector<256x128xf32>
    %89 = arith.select %87, %85, %88 : vector<256x128xi1>, vector<256x128xf32>
    %90 = arith.truncf %89 : vector<256x128xf32> to vector<256x128xbf16>
    %c3 = arith.constant 3 : index
    %c0_38 = arith.constant 0 : index
    %c0_39 = arith.constant 0 : index
    %91 = vector.load %arg2[%c3, %c0_38, %c0_39] : memref<5x128x128xbf16, #tpu.memory_space<vmem>>, vector<1x128x128xbf16>
    %92 = vector.shape_cast %91 : vector<1x128x128xbf16> to vector<128x128xbf16>
    %cst_40 = arith.constant dense<0.000000e+00> : vector<256x128xf32>
    %93 = tpu.matmul %90, %92, %cst_40 {dimension_numbers = #tpu.dot_dimension_numbers<[1], [0], [0], [1], [0, 0, 1, 1], [], []>} : vector<256x128xbf16>, vector<128x128xbf16>, vector<256x128xf32> -> vector<256x128xf32>
    %94 = arith.addf %84, %93 : vector<256x128xf32>
    %c254_i32 = arith.constant 254 : i32
    %95 = tpu.dynamic_rotate %58 by %c254_i32 dim 0 : vector<256x128xf32>, i32 -> vector<256x128xf32>
    %cst_41 = arith.constant 0.000000e+00 : f32
    %96 = vector.shape_cast %56 : vector<256x1xi1> to vector<256x1xi1>
    %97 = vector.broadcast %96 : vector<256x1xi1> to vector<256x128xi1>
    %98 = vector.broadcast %cst_41 : f32 to vector<256x128xf32>
    %99 = arith.select %97, %95, %98 : vector<256x128xi1>, vector<256x128xf32>
    %100 = arith.truncf %99 : vector<256x128xf32> to vector<256x128xbf16>
    %c4 = arith.constant 4 : index
    %c0_42 = arith.constant 0 : index
    %c0_43 = arith.constant 0 : index
    %101 = vector.load %arg2[%c4, %c0_42, %c0_43] : memref<5x128x128xbf16, #tpu.memory_space<vmem>>, vector<1x128x128xbf16>
    %102 = vector.shape_cast %101 : vector<1x128x128xbf16> to vector<128x128xbf16>
    %cst_44 = arith.constant dense<0.000000e+00> : vector<256x128xf32>
    %103 = tpu.matmul %100, %102, %cst_44 {dimension_numbers = #tpu.dot_dimension_numbers<[1], [0], [0], [1], [0, 0, 1, 1], [], []>} : vector<256x128xbf16>, vector<128x128xbf16>, vector<256x128xf32> -> vector<256x128xf32>
    %104 = arith.addf %94, %103 : vector<256x128xf32>
    %105 = vector.broadcast %2 : vector<1x128xf32> to vector<256x128xf32>
    %106 = arith.addf %104, %105 : vector<256x128xf32>
    %cst_45 = arith.constant 0.000000e+00 : f32
    %107 = vector.broadcast %cst_45 : f32 to vector<256x128xf32>
    %108 = arith.maximumf %106, %107 : vector<256x128xf32>
    %cst_46 = arith.constant 0.000000e+00 : f32
    %109 = vector.broadcast %cst_46 : f32 to vector<256x128xf32>
    %c2_i32_47 = arith.constant 2 : i32
    %110 = tpu.dynamic_rotate %108 by %c2_i32_47 dim 0 : vector<256x128xf32>, i32 -> vector<256x128xf32>
    %cst_48 = arith.constant 0.000000e+00 : f32
    %111 = vector.shape_cast %29 : vector<256x1xi1> to vector<256x1xi1>
    %112 = vector.broadcast %111 : vector<256x1xi1> to vector<256x128xi1>
    %113 = vector.broadcast %cst_48 : f32 to vector<256x128xf32>
    %114 = arith.select %112, %110, %113 : vector<256x128xi1>, vector<256x128xf32>
    %115 = arith.truncf %114 : vector<256x128xf32> to vector<256x128xbf16>
    %c0_49 = arith.constant 0 : index
    %c0_50 = arith.constant 0 : index
    %c0_51 = arith.constant 0 : index
    %116 = vector.load %arg4[%c0_49, %c0_50, %c0_51] : memref<5x128x128xbf16, #tpu.memory_space<vmem>>, vector<1x128x128xbf16>
    %117 = vector.shape_cast %116 : vector<1x128x128xbf16> to vector<128x128xbf16>
    %cst_52 = arith.constant dense<0.000000e+00> : vector<256x128xf32>
    %118 = tpu.matmul %115, %117, %cst_52 {dimension_numbers = #tpu.dot_dimension_numbers<[1], [0], [0], [1], [0, 0, 1, 1], [], []>} : vector<256x128xbf16>, vector<128x128xbf16>, vector<256x128xf32> -> vector<256x128xf32>
    %119 = arith.addf %109, %118 : vector<256x128xf32>
    %c1_i32_53 = arith.constant 1 : i32
    %120 = tpu.dynamic_rotate %108 by %c1_i32_53 dim 0 : vector<256x128xf32>, i32 -> vector<256x128xf32>
    %cst_54 = arith.constant 0.000000e+00 : f32
    %121 = vector.shape_cast %38 : vector<256x1xi1> to vector<256x1xi1>
    %122 = vector.broadcast %121 : vector<256x1xi1> to vector<256x128xi1>
    %123 = vector.broadcast %cst_54 : f32 to vector<256x128xf32>
    %124 = arith.select %122, %120, %123 : vector<256x128xi1>, vector<256x128xf32>
    %125 = arith.truncf %124 : vector<256x128xf32> to vector<256x128xbf16>
    %c1_55 = arith.constant 1 : index
    %c0_56 = arith.constant 0 : index
    %c0_57 = arith.constant 0 : index
    %126 = vector.load %arg4[%c1_55, %c0_56, %c0_57] : memref<5x128x128xbf16, #tpu.memory_space<vmem>>, vector<1x128x128xbf16>
    %127 = vector.shape_cast %126 : vector<1x128x128xbf16> to vector<128x128xbf16>
    %cst_58 = arith.constant dense<0.000000e+00> : vector<256x128xf32>
    %128 = tpu.matmul %125, %127, %cst_58 {dimension_numbers = #tpu.dot_dimension_numbers<[1], [0], [0], [1], [0, 0, 1, 1], [], []>} : vector<256x128xbf16>, vector<128x128xbf16>, vector<256x128xf32> -> vector<256x128xf32>
    %129 = arith.addf %119, %128 : vector<256x128xf32>
    %130 = arith.truncf %108 : vector<256x128xf32> to vector<256x128xbf16>
    %c2_59 = arith.constant 2 : index
    %c0_60 = arith.constant 0 : index
    %c0_61 = arith.constant 0 : index
    %131 = vector.load %arg4[%c2_59, %c0_60, %c0_61] : memref<5x128x128xbf16, #tpu.memory_space<vmem>>, vector<1x128x128xbf16>
    %132 = vector.shape_cast %131 : vector<1x128x128xbf16> to vector<128x128xbf16>
    %cst_62 = arith.constant dense<0.000000e+00> : vector<256x128xf32>
    %133 = tpu.matmul %130, %132, %cst_62 {dimension_numbers = #tpu.dot_dimension_numbers<[1], [0], [0], [1], [0, 0, 1, 1], [], []>} : vector<256x128xbf16>, vector<128x128xbf16>, vector<256x128xf32> -> vector<256x128xf32>
    %134 = arith.addf %129, %133 : vector<256x128xf32>
    %c255_i32_63 = arith.constant 255 : i32
    %135 = tpu.dynamic_rotate %108 by %c255_i32_63 dim 0 : vector<256x128xf32>, i32 -> vector<256x128xf32>
    %cst_64 = arith.constant 0.000000e+00 : f32
    %136 = vector.shape_cast %47 : vector<256x1xi1> to vector<256x1xi1>
    %137 = vector.broadcast %136 : vector<256x1xi1> to vector<256x128xi1>
    %138 = vector.broadcast %cst_64 : f32 to vector<256x128xf32>
    %139 = arith.select %137, %135, %138 : vector<256x128xi1>, vector<256x128xf32>
    %140 = arith.truncf %139 : vector<256x128xf32> to vector<256x128xbf16>
    %c3_65 = arith.constant 3 : index
    %c0_66 = arith.constant 0 : index
    %c0_67 = arith.constant 0 : index
    %141 = vector.load %arg4[%c3_65, %c0_66, %c0_67] : memref<5x128x128xbf16, #tpu.memory_space<vmem>>, vector<1x128x128xbf16>
    %142 = vector.shape_cast %141 : vector<1x128x128xbf16> to vector<128x128xbf16>
    %cst_68 = arith.constant dense<0.000000e+00> : vector<256x128xf32>
    %143 = tpu.matmul %140, %142, %cst_68 {dimension_numbers = #tpu.dot_dimension_numbers<[1], [0], [0], [1], [0, 0, 1, 1], [], []>} : vector<256x128xbf16>, vector<128x128xbf16>, vector<256x128xf32> -> vector<256x128xf32>
    %144 = arith.addf %134, %143 : vector<256x128xf32>
    %c254_i32_69 = arith.constant 254 : i32
    %145 = tpu.dynamic_rotate %108 by %c254_i32_69 dim 0 : vector<256x128xf32>, i32 -> vector<256x128xf32>
    %cst_70 = arith.constant 0.000000e+00 : f32
    %146 = vector.shape_cast %56 : vector<256x1xi1> to vector<256x1xi1>
    %147 = vector.broadcast %146 : vector<256x1xi1> to vector<256x128xi1>
    %148 = vector.broadcast %cst_70 : f32 to vector<256x128xf32>
    %149 = arith.select %147, %145, %148 : vector<256x128xi1>, vector<256x128xf32>
    %150 = arith.truncf %149 : vector<256x128xf32> to vector<256x128xbf16>
    %c4_71 = arith.constant 4 : index
    %c0_72 = arith.constant 0 : index
    %c0_73 = arith.constant 0 : index
    %151 = vector.load %arg4[%c4_71, %c0_72, %c0_73] : memref<5x128x128xbf16, #tpu.memory_space<vmem>>, vector<1x128x128xbf16>
    %152 = vector.shape_cast %151 : vector<1x128x128xbf16> to vector<128x128xbf16>
    %cst_74 = arith.constant dense<0.000000e+00> : vector<256x128xf32>
    %153 = tpu.matmul %150, %152, %cst_74 {dimension_numbers = #tpu.dot_dimension_numbers<[1], [0], [0], [1], [0, 0, 1, 1], [], []>} : vector<256x128xbf16>, vector<128x128xbf16>, vector<256x128xf32> -> vector<256x128xf32>
    %154 = arith.addf %144, %153 : vector<256x128xf32>
    %155 = vector.broadcast %3 : vector<1x128xf32> to vector<256x128xf32>
    %156 = arith.addf %154, %155 : vector<256x128xf32>
    %cst_75 = arith.constant 3.000000e-01 : f32
    %157 = vector.broadcast %cst_75 : f32 to vector<256x128xf32>
    %158 = arith.mulf %157, %156 : vector<256x128xf32>
    %159 = arith.addf %1, %158 : vector<256x128xf32>
    %c0_76 = arith.constant 0 : index
    %c0_77 = arith.constant 0 : index
    %c0_78 = arith.constant 0 : index
    %160 = vector.load %arg6[%c0_76, %c0_77, %c0_78] : memref<1x256x128xf32, #tpu.memory_space<vmem>>, vector<1x256x128xf32>
    %161 = vector.shape_cast %160 : vector<1x256x128xf32> to vector<256x128xf32>
    %162 = vector.shape_cast %159 : vector<256x128xf32> to vector<1x256x128xf32>
    tpu.vector_store %arg6[%c0_76, %c0_77, %c0_78], %162 {strides = array<i32>} : memref<1x256x128xf32, #tpu.memory_space<vmem>>, vector<1x256x128xf32>,
    return
  }
  func.func @transform_0(%arg0: i32) -> (i32, i32, i32) {
    %c0_i32 = arith.constant 0 : i32
    %c0_i32_0 = arith.constant 0 : i32
    %c0_i32_1 = arith.constant 0 : i32
    return %arg0, %c0_i32, %c0_i32_0 : i32, i32, i32
  }
  func.func @transform_1(%arg0: i32) -> (i32, i32, i32) {
    %c0_i32 = arith.constant 0 : i32
    %c0_i32_0 = arith.constant 0 : i32
    %c0_i32_1 = arith.constant 0 : i32
    %c0_i32_2 = arith.constant 0 : i32
    return %c0_i32, %c0_i32_0, %c0_i32_1 : i32, i32, i32
  }
  func.func @transform_2(%arg0: i32) -> (i32, i32) {
    %c0_i32 = arith.constant 0 : i32
    %c0_i32_0 = arith.constant 0 : i32
    %c0_i32_1 = arith.constant 0 : i32
    return %c0_i32, %c0_i32_0 : i32, i32
  }
  func.func @transform_3(%arg0: i32) -> (i32, i32, i32) {
    %c0_i32 = arith.constant 0 : i32
    %c0_i32_0 = arith.constant 0 : i32
    %c0_i32_1 = arith.constant 0 : i32
    %c0_i32_2 = arith.constant 0 : i32
    return %c0_i32, %c0_i32_0, %c0_i32_1 : i32, i32, i32
  }
  func.func @transform_4(%arg0: i32) -> (i32, i32) {
    %c0_i32 = arith.constant 0 : i32
    %c0_i32_0 = arith.constant 0 : i32
    %c0_i32_1 = arith.constant 0 : i32
    return %c0_i32, %c0_i32_0 : i32, i32
  }
  func.func @transform_5(%arg0: i32) -> (i32, i32, i32) {
    %c0_i32 = arith.constant 0 : i32
    %c0_i32_0 = arith.constant 0 : i32
    %c0_i32_1 = arith.constant 0 : i32
    return %arg0, %c0_i32, %c0_i32_0 : i32, i32, i32
  }
}

</mosaic_0001>

<bundles_post_ra>
// kernel: tpu_custom_call.1
= control target key start
LH: loop header
LB: loop body
LE: loop exit
PB: predicated region body
PF: predicated region fallthrough
CT: control target
= control target key end

     0   :  { %10 = vsyncpa [#allocation3], 0  ;;  %s8991_s0 = inlined_call_operand.hbm [shape: f32[2,256,128], index: 0, kind: input, shape index: {}]   ;;  %s8992_s1 = inlined_call_operand.hbm [shape: bf16[5,128,128], index: 1, kind: input, shape index: {}]   ;;  %s8993_s2 = inlined_call_operand.vmem [shape: f32[1,128], index: 2, kind: input, shape index: {}]   ;;  %s8994_s3 = inlined_call_operand.hbm [shape: bf16[5,128,128], index: 3, kind: input, shape index: {}]   ;;  %s8995_s4 = inlined_call_operand.vmem [shape: f32[1,128], index: 4, kind: input, shape index: {}]   ;;  %s8996_s5 = inlined_call_operand.hbm [shape: f32[2,256,128], index: 5, kind: output, shape index: {}]  }
   0x1   :  { %12 = vsyncpa [#allocation3 + $0x1], 0 }
   0x2   :  { %13 = vsyncpa [#allocation6], 0 }
   0x3   :  { %14 = vsyncpa [#allocation4], 0 }
   0x4   :  { %16 = vsyncpa [#allocation4 + $0x1], 0  ;;  %s6775_s18 = smov 0   ;;  %s6777_s19 = smov 0  }
   0x5   :  { %s6779_s20 = smov 0   ;;  %s6781_s21 = smov 0  }
   0x6 LB: > { %s6796_s22 = sadd.s32 4294967295, %s6732_s21   ;;  %s5216_s23 = sadd.s32 4294967294, %s6732_s21   ;;  %s6732_s21 = sphi %s6781_s21, %s9559_s21   ;;  %s6728_s20 = sphi %s6779_s20, %s9558_s20   ;;  %s6724_s19 = sphi %s6777_s19, %s9557_s19   ;;  %s6720_s18 = sphi %s6775_s18, %s9556_s18  }
   0x7   : > { %p42_p0 = scmp.ne.s32.totalorder %s6724_s19, %s6720_s18  ;;  %p8997_p1 = scmp.eq.s32.totalorder %s6796_s22, 0 }
   0x8   : > { %p156_p3 = scmp.eq.s32.totalorder %s5216_s23, 1  ;;  %p5217_p5 = scmp.ge.s32.totalorder %s6732_s21, 1 }
   0x9   : > { %p6805_p4 = por %p8997_p1, %p42_p0  ;;  %p163_p7 = scmp.lt.s32.totalorder %s6732_s21, 3 }
   0xa   : > { %p6810_p6 = por %p156_p3, %p42_p0  ;;  %s6734_s27 = smov [#allocation5]  }
   0xb   : > { %s9123_s24 = scalar_select %p6805_p4, 1, 0 }
   0xc   : > { %s9124_s25 = scalar_select %p6810_p6, 1, 0 }
   0xd   : > { %p6815_p8 = pnand %p5217_p5, %p163_p7  ;;  %s175_s28 = sshll.u32 %s6734_s27, 4  ;;  %s6819_s28 = int_to_ptr.vmem [resolvable:$true] %s175_s28 }
   0xe   : > { %s6735_s30 = smov [#allocation7]   ;;  %s6576_s9 = scalar_lea.hbm %s8992_s1, 5120 }
   0xf   : > { %p6402_p9 = pneg %p6815_p8  ;;  %s191_s6 = sshll.u32 %s6735_s30, 4  ;;  %s6830_s6 = int_to_ptr.vmem [resolvable:$true] %s191_s6 }
  0x10   : > { %p6577_p12 = scmp.ne.s32.totalorder %s8992_s1, %s6576_s9  ;;  %p6583_p5 = scmp.lt.u32.totalorder %s6576_s9, %s8992_s1 }
  0x11   : > { %p6826_p11 = pnand %p6402_p9, %p8997_p1 }
  0x13   : > { %p6578_p13 = pneg %p6826_p11 }
  0x15   : > { %p6579_p0 = pnand %p6578_p13, %p6577_p12 }
  0x17   : > { %p6580_p3 = pneg %p6579_p0 }
  0x19   : > { %p6585_p7 = pnand %p6583_p5, %p6580_p3 }
  0x1b   : > { %6588 = shalt.err (!%p6585_p7)
}
  0x1c   : > { %s6589_s14 = scalar_lea.vmem %s6819_s28, 5120  ;;  %p6597_p2 = scmp.lt.s32.totalorder %s6819_s28, %s6819_s28 }
  0x1d   : > { %p6590_p9 = scmp.ne.s32.totalorder %s6819_s28, %s6589_s14  ;;  %p6598_p12 = scmp.lt.s32.totalorder %s6589_s14, %s6589_s14 }
  0x1f   : > { %p6592_p10 = pnand %p6590_p9, %p6578_p13  ;;  %p6599_p0 = por %p6598_p12, %p6597_p2 }
  0x21   : > { %p6593_p1 = pneg %p6592_p10 }
  0x23   : > { %p6600_p6 = pnand %p6599_p0, %p6593_p1 }
  0x25   : > { %6603 = shalt.err (!%p6600_p6)
}
  0x26   : > { %s6736_s15 = smov 64   ;;  %s6737_s16 = smov 4  }
  0x27   : > { %6405 = dma.hbm_to_vmem [thread:$0]  (!%p6826_p11), %s8992_s1, 5120, %s6819_s28, [#allocation6], %s6736_s15, %s6736_s15, %s6737_s16  }
  0x28   : > { %s6604_s7 = scalar_lea.hbm %s8994_s3, 5120 }
  0x29   : > { %p6605_p2 = scmp.ne.s32.totalorder %s8994_s3, %s6604_s7  ;;  %p6611_p10 = scmp.lt.u32.totalorder %s6604_s7, %s8994_s3 }
  0x2b   : > { %p6607_p1 = pnand %p6605_p2, %p6578_p13 }
  0x2d   : > { %p6608_p6 = pneg %p6607_p1 }
  0x2f   : > { %p6613_p3 = pnand %p6611_p10, %p6608_p6 }
  0x31   : > { %6616 = shalt.err (!%p6613_p3)
}
  0x32   : > { %s6617_s28 = scalar_lea.vmem %s6830_s6, 5120  ;;  %p6625_p12 = scmp.lt.s32.totalorder %s6830_s6, %s6830_s6 }
  0x33   : > { %p6618_p5 = scmp.ne.s32.totalorder %s6830_s6, %s6617_s28  ;;  %p6626_p0 = scmp.lt.s32.totalorder %s6617_s28, %s6617_s28 }
  0x35   : > { %p6620_p7 = pnand %p6618_p5, %p6578_p13  ;;  %p6627_p2 = por %p6626_p0, %p6625_p12 }
  0x37   : > { %p6621_p9 = pneg %p6620_p7 }
  0x39   : > { %p6628_p1 = pnand %p6627_p2, %p6621_p9 }
  0x3b   : > { %6631 = shalt.err (!%p6628_p1)
}
  0x3c   : > { %6408 = dma.hbm_to_vmem [thread:$0]  (!%p6826_p11), %s8994_s3, 5120, %s6830_s6, [#allocation6], %s6736_s15, %s6736_s15, %s6737_s16  }
  0x3d   : > { %s6885_s14 = sadd.s32 1, %s6732_s21   ;;  %s29_s29 = sadd.s32 1, %s6728_s20 }
  0x3e   : > { %s26_s17 = ssub.s32 %s6732_s21, %s6885_s14  ;;  %p36_p13 = scmp.ne.s32.totalorder %s6728_s20, %s6724_s19 }
  0x3f   : > { %p27_p6 = scmp.eq.s32.totalorder %s26_s17, 0  ;;  %p37_p10 = scmp.eq.s32.totalorder %s6732_s21, 0 }
  0x40   : > { %p9127_p3 = scmp.eq.s32.totalorder %s6796_s22, 1  ;;  %p6419_p7 = scmp.lt.s32.totalorder %s6732_s21, 2 }
  0x41   : > { %s6901_s27 = scalar_select %p27_p6, %s6728_s20, %s29_s29  }
  0x42   : > { %p6895_p5 = por %p9127_p3, %p36_p13  ;;  %p38_p9 = por %p37_p10, %p36_p13 }
  0x43   : > { %s208_s30 = sand.u32 1, %s6728_s20   ;;  %s5412_s6 = sshll.u32 %s6732_s21, 12 }
  0x44   : > { %s9128_s23 = scalar_select %p6895_p5, 1, 0 }
  0x45   : > { %s5221_s7 = sshll.u32 %s208_s30, 8  ;;  %s6908_s8 = scalar_lea.hbm %s8991_s0, %s5412_s6 }
  0x46   : > { %s212_s9 = scalar_lea.vmem [#allocation2], %s5221_s7  ;;  %p6912_p11 = pnand %p6419_p7, %p38_p9 }
  0x47   : > { %s219_s10 = sshll.u32 %s212_s9, 4  ;;  %s6916_s28 = scalar_lea.sflag [#allocation3], %s208_s30  ;;  %s6910_s10 = int_to_ptr.vmem [resolvable:$true] %s219_s10 }
  0x48   : > { %s6632_s12 = scalar_lea.hbm %s6908_s8, 4096  ;;  %p6634_p0 = pneg %p6912_p11 }
  0x49   : > { %p6633_p12 = scmp.ne.s32.totalorder %s6908_s8, %s6632_s12  ;;  %s6637_s17 = scalar_lea.hbm %s8991_s0, 8192 }
  0x4a   : > { %p6638_p13 = scmp.lt.u32.totalorder %s6908_s8, %s8991_s0  ;;  %p6639_p6 = scmp.lt.u32.totalorder %s6637_s17, %s6632_s12 }
  0x4b   : > { %p6635_p2 = pnand %p6634_p0, %p6633_p12  ;;  %p6641_p3 = scmp.lt.u32.totalorder %s6632_s12, %s6908_s8 }
  0x4c   : > { %p6640_p10 = por %p6639_p6, %p6638_p13 }
  0x4d   : > { %p6636_p1 = pneg %p6635_p2 }
  0x4e   : > { %p6642_p7 = por %p6641_p3, %p6640_p10 }
  0x50   : > { %p6643_p9 = pnand %p6642_p7, %p6636_p1 }
  0x52   : > { %6646 = shalt.err (!%p6643_p9)
}
  0x53   : > { %s6647_s30 = scalar_lea.vmem %s6910_s10, 4096  ;;  %s6738_s15 = smov [#allocation2]  }
  0x54   : > { %p6648_p12 = scmp.ne.s32.totalorder %s6910_s10, %s6647_s30  ;;  %s6652_s16 = sshll.u32 %s6738_s15, 4  ;;  %s6653_s16 = int_to_ptr.vmem [resolvable:$false] %s6652_s16 }
  0x55   : > { %s6654_s9 = scalar_lea.vmem %s6653_s16, 8192  ;;  %p6655_p4 = scmp.lt.s32.totalorder %s6910_s10, %s6653_s16 }
  0x56   : > { %p6650_p2 = pnand %p6648_p12, %p6634_p0  ;;  %p6656_p13 = scmp.lt.s32.totalorder %s6654_s9, %s6647_s30 }
  0x58   : > { %p6651_p5 = pneg %p6650_p2  ;;  %p6657_p6 = por %p6656_p13, %p6655_p4 }
  0x5a   : > { %p6658_p10 = pnand %p6657_p6, %p6651_p5 }
  0x5c   : > { %6661 = shalt.err (!%p6658_p10)
}
  0x5d   : > { %s6739_s12 = smov 128   ;;  %s6740_s13 = smov 8  }
  0x5e   : > { %6412 = dma.hbm_to_vmem [thread:$0]  (!%p6912_p11), %s6908_s8, 4096, %s6910_s10, %s6916_s28, %s6739_s12, %s6739_s12, %s6740_s13  }
  0x5f   : > { %231 = sbr.rel (%p6815_p8) target bundleno = 1231 (0x4cf), region = 40 }
  0x66   : > { %s6947_s29 = sand.u32 1, %s6724_s19   ;;  %p9130_p4 = scmp.ne.s32.totalorder %s9123_s24, 0 }
  0x67   : > { %s5225_s17 = sshll.u32 %s6947_s29, 8  ;;  %s234_s7 = scalar_lea.sflag [#allocation3], %s6947_s29 }
  0x68   : > { %s6953_s6 = scalar_lea.vmem [#allocation2], %s5225_s17 }
  0x69   : > { %6707 = dma.done.wait (%p9130_p4), %s234_s7, 4096  }
  0x6a   : > { %6709 = vsyncadd (%p9130_p4), %s234_s7, 4294963200  ;;  %p9131_p5 = scmp.eq.s32.totalorder %s6796_s22, 0 }
  0x6c   : > { %6711 = dma.done.wait (%p9131_p5), [#allocation6], 10240   ;;  %p9132_p8 = pmov %p9131_p5 }
  0x6d   : > { %v307_v0 = vlaneseq  ;;  %v6464_v2 = vld [vmem:[#allocation5 + $0x40] sm:$0xff]   ;;  %v6465_v3 = vld [vmem:[#allocation5 + $0x48] sm:$0xff]   ;;  %v6466_v5 = vld [vmem:[#allocation5 + $0x50] sm:$0xff]   ;;  %vm6741_vm2 = vmmov 1   ;;  %s8848_s11 = scalar_lea.vmem [#allocation8], %s5225_s17  ;;  %s5413_s28 = sshll.u32 %s6796_s22, 12 }
  0x6e   : > { %6713 = vsyncadd (%p9132_p8), [#allocation6], 4294957056  ;;  %5654 = vmatprep.subr.bf16.mxu0 %v6464_v2  ;;  %v6467_v7 = vld [vmem:[#allocation5 + $0x58] sm:$0xff]   ;;  %v273_v8 = vld [vmem:[%s6953_s6] sm:$0xff]  ;;  %s5124_s30 = sshll.u32 %s8848_s11, 4  ;;  %s8941_s9 = scalar_lea.hbm %s8996_s5, %s5413_s28  ;;  %s8943_s30 = int_to_ptr.vmem [resolvable:$true] %s5124_s30 }
  0x6f   : > { %v6963_v1 = vshrl.u32 %v307_v0, 7  ;;  %5655 = vmatpush3.bf16.msra.mxu0 %v6464_v2  ;;  %v274_v9 = vld [vmem:[%s6953_s6 + $0x8] sm:$0xff]  ;;  %v304_v10 = vld [vmem:[%s6953_s6 + $0xf8] sm:$0xff]  ;;  %v6971_v11 = vmax.f32 %v273_v8, 0.0  ;;  %v6468_v17 = vld [vmem:[#allocation5 + $0x60] sm:$0xff]   ;;  %s5111_s22 = scalar_lea.sflag [#allocation4], %s6947_s29 }
  0x70   : > { %5656 = vmatprep.subr.bf16.mxu0 %v6465_v3  ;;  %v6973_v12 = vmax.f32 %v274_v9, 0.0  ;;  %v6975_v13 = vmax.f32 %v304_v10, 0.0  ;;  %v6469_v22 = vld [vmem:[#allocation5 + $0x68] sm:$0xff]   ;;  %v275_v23 = vld [vmem:[%s6953_s6 + $0x10] sm:$0xff]  ;;  %v276_v24 = vld [vmem:[%s6953_s6 + $0x18] sm:$0xff]  ;;  %s6662_s12 = scalar_lea.vmem %s8943_s30, 4096 }
  0x71   : > { %v344_v4 = vand.u32 63, %v6963_v1  ;;  %vm9009_vm1 = vcmp.lt.s32.totalorder %v6963_v1, 1  ;;  %v1461_v14 = vrot.slane %v6971_v11, 7  ;;  %v277_v25 = vld [vmem:[%s6953_s6 + $0x20] sm:$0xff]  ;;  %v278_v26 = vld [vmem:[%s6953_s6 + $0x28] sm:$0xff]  ;;  %v6998_v27 = vmax.f32 %v275_v23, 0.0  ;;  %p6663_p11 = scmp.ne.s32.totalorder %s8943_s30, %s6662_s12 }
  0x72   : > { %v1462_v15 = vrot.slane %v6973_v12, 7  ;;  %v9003_v16 = vrot.slane %v6975_v13, 7  ;;  %v7000_v28 = vmax.f32 %v276_v24, 0.0  ;;  %v6470_v29 = vld [vmem:[#allocation5 + $0x70] sm:$0xff]   ;;  %v7002_v30 = vmax.f32 %v277_v25, 0.0  ;;  %v6471_v33 = vld [vmem:[#allocation5 + $0x78] sm:$0xff]  }
  0x73   : > { %v852_v6 = vadd.s32 4294967295, %v344_v4  ;;  %5657 = vmatpush3.bf16.msra.mxu0 %v6465_v3  ;;  %v7004_v31 = vmax.f32 %v278_v26, 0.0  ;;  %v7007_v32 = vadd.s32 64, %v6963_v1  ;;  %v1463_v34 = vrot.slane %v6998_v27, 7  ;;  %v279_v36 = vld [vmem:[%s6953_s6 + $0x30] sm:$0xff]  ;;  %v280_v37 = vld [vmem:[%s6953_s6 + $0x38] sm:$0xff] }
  0x74   : > { %5658 = vmatprep.subr.bf16.mxu0 %v6466_v5  ;;  %v1524_v18 = vsel %vm9009_vm1, %v1461_v14, %v1462_v15  ;;  %v1525_v19 = vsel %vm9009_vm1, %v9003_v16, %v1461_v14  ;;  %v1464_v35 = vrot.slane %v7000_v28, 7  ;;  %v1465_v38 = vrot.slane %v7002_v30, 7  ;;  %v281_v40 = vld [vmem:[%s6953_s6 + $0x40] sm:$0xff]  ;;  %v282_v41 = vld [vmem:[%s6953_s6 + $0x48] sm:$0xff]  ;;  %v283_v54 = vld [vmem:[%s6953_s6 + $0x50] sm:$0xff]  ;;  %p9553_p0 = scmp.ne.s32.totalorder %s9128_s23, 0 }
  0x75   : > { %vm884_vm0 = vcmp.ge.s32.totalorder %v852_v6, 0  ;;  %v5238_v21 = vpack.c.bf16 %v1524_v18, %v1525_v19  ;;  %v1466_v39 = vrot.slane %v7004_v31, 7  ;;  %v9002_v42 = vand.u32 63, %v7007_v32  ;;  %v6472_v49 = vld [vmem:[#allocation5] sm:$0xff]   ;;  %v284_v56 = vld [vmem:[%s6953_s6 + $0x58] sm:$0xff]  ;;  %v6473_v60 = vld [vmem:[#allocation5 + $0x8] sm:$0xff]  }
  0x76   : > { %vm6988_vm3 = vmpackc.low %vm6741_vm2, %vm884_vm0  ;;  %v7019_v43 = vadd.s32 128, %v6963_v1  ;;  %v7021_v44 = vmax.f32 %v279_v36, 0.0  ;;  %v7024_v45 = vadd.s32 192, %v6963_v1  ;;  %v1522_v46 = vsel %vm9009_vm1, %v1463_v34, %v1464_v35  ;;  %v285_v6 = vld [vmem:[%s6953_s6 + $0x60] sm:$0xff]  ;;  %v287_v10 = vld [vmem:[%s6953_s6 + $0x70] sm:$0xff]  ;;  %p6664_p1 = pnand %p6663_p11, %p9553_p0  ;;  %s6742_s13 = smov [#allocation8]  }
  0x77   : > { %5659 = vmatpush3.bf16.msra.mxu0 %v6466_v5  ;;  %5670 = vmatprep.mubr.msk.bf16.mxu0 %vm6988_vm3, %v5238_v21  ;;  %v1523_v47 = vsel %vm9009_vm1, %v1462_v15, %v1463_v34  ;;  %v7030_v48 = vmax.f32 %v280_v37, 0.0  ;;  %v1520_v50 = vsel %vm9009_vm1, %v1465_v38, %v1466_v39  ;;  %v1521_v51 = vsel %vm9009_vm1, %v1464_v35, %v1465_v38  ;;  %v288_v19 = vld [vmem:[%s6953_s6 + $0x78] sm:$0xff]  ;;  %v6474_v25 = vld [vmem:[#allocation5 + $0x10] sm:$0xff]   ;;  %v290_v37 = vld [vmem:[%s6953_s6 + $0x88] sm:$0xff]  ;;  %s6666_s17 = sshll.u32 %s6742_s13, 4  ;;  %s6667_s17 = int_to_ptr.vmem [resolvable:$false] %s6666_s17 }
  0x78   : > { %5660 = vmatprep.subr.bf16.mxu0 %v6467_v7  ;;  %v7036_v52 = vmax.f32 %v281_v40, 0.0  ;;  %v7038_v53 = vmax.f32 %v282_v41, 0.0  ;;  %v860_v55 = vadd.s32 4294967295, %v9002_v42  ;;  %v9001_v57 = vand.u32 63, %v7019_v43  ;;  %v6475_v36 = vld [vmem:[#allocation5 + $0x18] sm:$0xff]   ;;  %v291_v40 = vld [vmem:[%s6953_s6 + $0x90] sm:$0xff]  ;;  %p6665_p3 = pneg %p6664_p1  ;;  %p6669_p7 = scmp.lt.s32.totalorder %s8943_s30, %s6667_s17 }
  0x79   : > { %v1623_v58 = vpack.c.bf16 %v1522_v46, %v1523_v47  ;;  %v1467_v59 = vrot.slane %v7021_v44, 7  ;;  %v9000_v61 = vand.u32 63, %v7024_v45  ;;  %v1624_v62 = vpack.c.bf16 %v1520_v50, %v1521_v51  ;;  %v292_v46 = vld [vmem:[%s6953_s6 + $0x98] sm:$0xff]  ;;  %v293_v51 = vld [vmem:[%s6953_s6 + $0xa0] sm:$0xff]  ;;  %s6668_s7 = scalar_lea.vmem %s6667_s17, 8192 }
  0x7a   : > { %v1468_v63 = vrot.slane %v7030_v48, 7  ;;  %v7048_v0 = vmax.f32 %v283_v54, 0.0  ;;  %v1469_v2 = vrot.slane %v7036_v52, 7  ;;  %v1470_v3 = vrot.slane %v7038_v53, 7  ;;  %p6670_p9 = scmp.lt.s32.totalorder %s6668_s7, %s6662_s12 }
  0x7b   : > { %5661 = vmatpush3.bf16.msra.mxu0 %v6467_v7  ;;  %v7052_v5 = vmax.f32 %v284_v56, 0.0  ;;  %vm892_vm4 = vcmp.ge.s32.totalorder %v860_v55, 0  ;;  %v286_v7 = vld [vmem:[%s6953_s6 + $0x68] sm:$0xff]  ;;  %v7058_v8 = vadd.s32 4294967295, %v9001_v57  ;;  %v7062_v9 = vadd.s32 4294967294, %v344_v4  ;;  %v6476_v56 = vld [vmem:[#allocation5 + $0x20] sm:$0xff]  }
  0x7c   : > { %5662 = vmatprep.subr.bf16.mxu0 %v6468_v17  ;;  %v7067_v14 = vadd.s32 4294967295, %v9000_v61  ;;  %v1518_v15 = vsel %vm9009_vm1, %v1467_v59, %v1468_v63  ;;  %v1471_v18 = vrot.slane %v7048_v0, 7  ;;  %v7074_v4 = vmax.f32 %v285_v6, 0.0  ;;  %vm7083_vm5 = vmpackc.low %vm6741_vm2, %vm892_vm4  ;;  %p6671_p12 = por %p6670_p9, %p6669_p7 }
  0x7d   : > { %v1516_v21 = vsel %vm9009_vm1, %v1469_v2, %v1470_v3  ;;  %v1472_v24 = vrot.slane %v7052_v5, 7  ;;  %v7088_v26 = vmax.f32 %v286_v7, 0.0  ;;  %v7093_v35 = vmax.f32 %v288_v19, 0.0 }
  0x7e   : > { %v7103_v50 = vmax.f32 %v290_v37, 0.0  ;;  %v7107_v55 = vmax.f32 %v291_v40, 0.0  ;;  %vm900_vm6 = vcmp.ge.s32.totalorder %v7058_v8, 0  ;;  %v300_v40 = vld [vmem:[%s6953_s6 + $0xd8] sm:$0xff]  ;;  %vm908_vm7 = vcmp.ge.s32.totalorder %v7067_v14, 0  ;;  %p6672_p2 = pnand %p6671_p12, %p6665_p3 }
  0x7f   : > { %5663 = vmatpush3.bf16.msra.mxu0 %v6468_v17  ;;  %v1519_v17 = vsel %vm9009_vm1, %v1466_v39, %v1467_v59  ;;  %v1473_v39 = vrot.slane %v7074_v4, 7  ;;  %v1474_v41 = vrot.slane %v7088_v26, 7  ;;  %v1476_v54 = vrot.slane %v7093_v35, 7  ;;  %v295_v59 = vld [vmem:[%s6953_s6 + $0xb0] sm:$0xff]  ;;  %vm7175_vm8 = vmpackc.low %vm6741_vm2, %vm900_vm6 }
  0x80   : > { %5664 = vmatprep.subr.bf16.mxu0 %v6469_v22  ;;  %v1625_v34 = vpack.c.bf16 %v1518_v15, %v1519_v17  ;;  %v1478_v15 = vrot.slane %v7103_v50, 7  ;;  %v1479_v17 = vrot.slane %v7107_v55, 7  ;;  %v7162_v57 = vmax.f32 %v300_v40, 0.0  ;;  %vm7197_vm9 = vmpackc.low %vm6741_vm2, %vm908_vm7 }
  0x81   : > { %v1512_v6 = vsel %vm9009_vm1, %v1473_v39, %v1474_v41  ;;  %v1513_v7 = vsel %vm9009_vm1, %v1472_v24, %v1473_v39  ;;  %vm9008_vm10 = vcmp.lt.s32.totalorder %v6963_v1, 2  ;;  %vm756_vm11 = vcmp.ge.s32.totalorder %v7062_v9, 0 }
  0x82   : > { %v1488_v40 = vrot.slane %v7162_v57, 7  ;;  %vm7240_vm12 = vmpackc.low %vm6741_vm2, %vm756_vm11  ;;  %vm9010_vm7 = vcmp.lt.s32.totalorder %v6963_v1, 7 }
  0x83   : > { %5665 = vmatpush3.bf16.msra.mxu0 %v6469_v22  ;;  %v1517_v22 = vsel %vm9009_vm1, %v1468_v63, %v1469_v2  ;;  %v7117_v63 = vmax.f32 %v292_v46, 0.0  ;;  %v296_v2 = vld [vmem:[%s6953_s6 + $0xb8] sm:$0xff] }
  0x84   : > { %5666 = vmatprep.subr.bf16.mxu0 %v6470_v29  ;;  %v5241_v38 = vpack.c.bf16 %v1516_v21, %v1517_v22  ;;  %v6477_v21 = vld [vmem:[#allocation5 + $0x28] sm:$0xff]   ;;  %v297_v22 = vld [vmem:[%s6953_s6 + $0xc0] sm:$0xff]  ;;  %v7137_v37 = vmax.f32 %v296_v2, 0.0 }
  0x87   : > { %5667 = vmatpush3.bf16.msra.mxu0 %v6470_v29  ;;  %v7090_v29 = vmax.f32 %v287_v10, 0.0 }
  0x88   : > { %5668 = vmatprep.subr.bf16.mxu0 %v6471_v33 }
  0x89   : > { %v1475_v47 = vrot.slane %v7090_v29, 7 }
  0x8b   : > { %5669 = vmatpush3.bf16.msra.mxu0 %v6471_v33  ;;  %v289_v33 = vld [vmem:[%s6953_s6 + $0x80] sm:$0xff]  ;;  %v1511_v39 = vsel %vm9009_vm1, %v1474_v41, %v1475_v47 }
  0x8c   : > { %5702 = vmatprep.subr.bf16.mxu0 %v6472_v49 }
  0x8e   : > { %5671 = vmatmul.mubr.bf16.vlgmr.msra.gmra.mrb[0].mxu0 %v1623_v58  ;;  %v294_v58 = vld [vmem:[%s6953_s6 + $0xa8] sm:$0xff] }
  0x8f   : > { %5703 = vmatpush3.bf16.msra.mxu0 %v6472_v49  ;;  %5674 = vmatprep.mubr.bf16.mxu0 %v1624_v62  ;;  %v7101_v49 = vmax.f32 %v289_v33, 0.0  ;;  %v1515_v62 = vsel %vm9009_vm1, %v1470_v3, %v1471_v18  ;;  %v7130_v19 = vmax.f32 %v294_v58, 0.0  ;;  %v1628_v33 = vpack.c.bf16 %v1512_v6, %v1513_v7  ;;  %v303_v7 = vld [vmem:[%s6953_s6 + $0xf0] sm:$0xff] }
  0x90   : > { %5704 = vmatprep.subr.bf16.mxu0 %v6473_v60 }
  0x91   : > { %v1477_v10 = vrot.slane %v7101_v49, 7  ;;  %v1482_v41 = vrot.slane %v7130_v19, 7 }
  0x93   : > { %5705 = vmatpush3.bf16.msra.mxu0 %v6473_v60  ;;  %v1514_v60 = vsel %vm9009_vm1, %v1471_v18, %v1472_v24  ;;  %v7128_v18 = vmax.f32 %v293_v51, 0.0  ;;  %v299_v24 = vld [vmem:[%s6953_s6 + $0xd0] sm:$0xff]  ;;  %v1508_v46 = vsel %vm9009_vm1, %v1477_v10, %v1478_v15  ;;  %v1480_v51 = vrot.slane %v7117_v63, 7 }
  0x94   : > { %5706 = vmatprep.subr.bf16.mxu0 %v6474_v25  ;;  %v1627_v3 = vpack.c.bf16 %v1514_v60, %v1515_v62  ;;  %v301_v60 = vld [vmem:[%s6953_s6 + $0xe0] sm:$0xff]  ;;  %v302_v62 = vld [vmem:[%s6953_s6 + $0xe8] sm:$0xff]  ;;  %v7157_v6 = vmax.f32 %v299_v24, 0.0 }
  0x95   : > { %v1481_v58 = vrot.slane %v7128_v18, 7  ;;  %v7170_v42 = vmax.f32 %v302_v62, 0.0  ;;  %v1506_v8 = vsel %vm9009_vm1, %v1479_v17, %v1480_v51 }
  0x96   : > { %5675 = vmatmul.mubr.bf16.gmra.mrb[4].mxu0 %v1625_v34  ;;  %v7135_v34 = vmax.f32 %v295_v59, 0.0  ;;  %v6478_v59 = vld [vmem:[#allocation5 + $0x30] sm:$0xff]   ;;  %v1487_v24 = vrot.slane %v7157_v6, 7 }
  0x97   : > { %5678 = vmatprep.mubr.msk.bf16.mxu0 %vm7083_vm5, %v5241_v38  ;;  %5707 = vmatpush3.bf16.msra.mxu0 %v6474_v25  ;;  %v298_v25 = vld [vmem:[%s6953_s6 + $0xc8] sm:$0xff]  ;;  %v1510_v38 = vsel %vm9009_vm1, %v1475_v47, %v1476_v54  ;;  %v7153_v47 = vmax.f32 %v297_v22, 0.0  ;;  %v1504_v62 = vsel %vm9009_vm1, %v1481_v58, %v1482_v41 }
  0x98   : > { %5708 = vmatprep.subr.bf16.mxu0 %v6475_v36  ;;  %v7155_v2 = vmax.f32 %v298_v25, 0.0 }
  0x99   : > { %v1485_v22 = vrot.slane %v7153_v47, 7 }
  0x9a   : > { %v1486_v25 = vrot.slane %v7155_v2, 7 }
  0x9b   : > { %5709 = vmatpush3.bf16.msra.mxu0 %v6475_v36  ;;  %v1509_v36 = vsel %vm9009_vm1, %v1476_v54, %v1477_v10  ;;  %v1483_v54 = vrot.slane %v7135_v34, 7  ;;  %v1484_v10 = vrot.slane %v7137_v37, 7 }
  0x9c   : > { %5710 = vmatprep.subr.bf16.mxu0 %v6476_v56  ;;  %v5244_v61 = vpack.c.bf16 %v1508_v46, %v1509_v36  ;;  %v6480_v36 = vld [vmem:[#allocation5 + $0x80] sm:$0xff]  }
  0x9d   : > { %v1501_v14 = vsel %vm9009_vm1, %v1484_v10, %v1485_v22 }
  0x9e   : > { %5679 = vmatmul.mubr.bf16.gmra.mrb[8].mxu0 %v1627_v3  ;;  %v1629_v3 = vpack.c.bf16 %v1510_v38, %v1511_v39  ;;  %v9137_v38 = vmov 0  ;;  %v7179_v39 = vmax.f32 %v303_v7, 0.0  ;;  %v1505_v7 = vsel %vm9009_vm1, %v1480_v51, %v1481_v58 }
  0x9f   : > { %5682 = vmatprep.mubr.bf16.mxu0 %v1628_v33  ;;  %5711 = vmatpush3.bf16.msra.mxu0 %v6476_v56  ;;  %v7164_v33 = vmax.f32 %v301_v60, 0.0  ;;  %v6479_v56 = vld [vmem:[#allocation5 + $0x38] sm:$0xff]   ;;  %v9138_v38 = vsel %vm7175_vm8, 4294967295, %v9137_v38  ;;  %v1507_v60 = vsel %vm9009_vm1, %v1478_v15, %v1479_v17  ;;  %v1632_v16 = vpack.c.bf16 %v1504_v62, %v1505_v7 }
  0xa0   : > { %5712 = vmatprep.subr.bf16.mxu0 %v6477_v21  ;;  %9139 = vst [vmem:[#allocation12_spill] sm:$0xff] %v9138_v38  ;;  %v1490_v15 = vrot.slane %v7170_v42, 7  ;;  %v1491_v17 = vrot.slane %v7179_v39, 7  ;;  %v1502_v51 = vsel %vm9009_vm1, %v1483_v54, %v1484_v10  ;;  %v1503_v58 = vsel %vm9009_vm1, %v1482_v41, %v1483_v54 }
  0xa1   : > { %v1489_v46 = vrot.slane %v7164_v33, 7  ;;  %v1498_v41 = vsel %vm9009_vm1, %v1487_v24, %v1488_v40  ;;  %v1499_v54 = vsel %vm9009_vm1, %v1486_v25, %v1487_v24 }
  0xa2   : > { %v1635_v62 = vpack.c.bf16 %v1498_v41, %v1499_v54 }
  0xa3   : > { %5713 = vmatpush3.bf16.msra.mxu0 %v6477_v21  ;;  %v1268_v21 = vrot.slane %v6971_v11, 6  ;;  %v1496_v10 = vsel %vm9009_vm1, %v1489_v46, %v1490_v15 }
  0xa4   : > { %5714 = vmatprep.subr.bf16.mxu0 %v6478_v59 }
  0xa6   : > { %5683 = vmatmul.mubr.bf16.gmra.mrb[12].mxu0 %v1629_v3  ;;  %v1631_v3 = vpack.c.bf16 %v1506_v8, %v1507_v60  ;;  %v1269_v60 = vrot.slane %v6973_v12, 6 }
  0xa7   : > { %5686 = vmatprep.mubr.msk.bf16.mxu0 %vm7175_vm8, %v5244_v61  ;;  %5715 = vmatpush3.bf16.msra.mxu0 %v6478_v59  ;;  %v9140_v61 = vmov 0  ;;  %v1500_v59 = vsel %vm9009_vm1, %v1485_v22, %v1486_v25  ;;  %v1497_v22 = vsel %vm9009_vm1, %v1488_v40, %v1489_v46 }
  0xa8   : > { %5716 = vmatprep.subr.bf16.mxu0 %v6479_v56  ;;  %v9141_v61 = vsel %vm7197_vm9, 4294967295, %v9140_v61  ;;  %v5247_v8 = vpack.c.bf16 %v1500_v59, %v1501_v14  ;;  %v1636_v7 = vpack.c.bf16 %v1496_v10, %v1497_v22  ;;  %v1331_v25 = vsel %vm9008_vm10, %v1268_v21, %v1269_v60 }
  0xa9   : > { %9142 = vst [vmem:[#allocation13_spill] sm:$0xff] %v9141_v61  ;;  %v1270_v59 = vrot.slane %v6998_v27, 6  ;;  %v1271_v14 = vrot.slane %v7000_v28, 6  ;;  %v1274_v22 = vrot.slane %v7021_v44, 6 }
  0xab   : > { %5717 = vmatpush3.bf16.msra.mxu0 %v6479_v56  ;;  %v1633_v56 = vpack.c.bf16 %v1502_v51, %v1503_v58  ;;  %v1495_v58 = vsel %vm9009_vm1, %v1490_v15, %v1491_v17  ;;  %v1272_v15 = vrot.slane %v7002_v30, 6  ;;  %v1329_v9 = vsel %vm9008_vm10, %v1270_v59, %v1271_v14 }
  0xac   : > { %5750 = vmatprep.subr.bf16.mxu0 %v6480_v36 }
  0xad   : > { %v1328_v41 = vsel %vm9008_vm10, %v1271_v14, %v1272_v15 }
  0xae   : > { %5687 = vmatmul.mubr.bf16.gmra.mrb[16].mxu0 %v1631_v3  ;;  %v9143_v3 = vrot.slane %v6975_v13, 7 }
  0xaf   : > { %5690 = vmatprep.mubr.bf16.mxu0 %v1632_v16  ;;  %v1299_v16 = vrot.slane %v6975_v13, 6 }
  0xb0   : > { %v1494_v51 = vsel %vm9009_vm1, %v1491_v17, %v9143_v3  ;;  %v1273_v17 = vrot.slane %v7004_v31, 6  ;;  %v1276_v3 = vrot.slane %v7036_v52, 6 }
  0xb1   : > { %v1332_v24 = vsel %vm9008_vm10, %v1299_v16, %v1268_v21  ;;  %v1637_v40 = vpack.c.bf16 %v1494_v51, %v1495_v58  ;;  %v1330_v21 = vsel %vm9008_vm10, %v1269_v60, %v1270_v59  ;;  %v1277_v51 = vrot.slane %v7038_v53, 6  ;;  %v6482_v59 = vld [vmem:[#allocation5 + $0x90] sm:$0xff]  }
  0xb2   : > { %v5258_v46 = vpack.c.bf16 %v1331_v25, %v1332_v24  ;;  %v1430_v54 = vpack.c.bf16 %v1329_v9, %v1330_v21  ;;  %v9147_v58 = vand.u32 63, %v7007_v32  ;;  %v1326_v24 = vsel %vm9008_vm10, %v1273_v17, %v1274_v22 }
  0xb3   : > { %v9148_v9 = vmov 0  ;;  %v1281_v21 = vrot.slane %v7088_v26, 6 }
  0xb4   : > { %v732_v60 = vadd.s32 4294967294, %v9147_v58  ;;  %v1282_v58 = vrot.slane %v7090_v29, 6 }
  0xb6   : > { %5691 = vmatmul.mubr.bf16.gmra.mrb[20].mxu0 %v1633_v56  ;;  %v9144_v56 = vmov 0  ;;  %vm764_vm13 = vcmp.ge.s32.totalorder %v732_v60, 0  ;;  %v1283_v60 = vrot.slane %v7093_v35, 6 }
  0xb7   : > { %5694 = vmatprep.mubr.msk.bf16.mxu0 %vm7197_vm9, %v5247_v8  ;;  %v9145_v56 = vsel %vm7240_vm12, 4294967295, %v9144_v56  ;;  %v1327_v8 = vsel %vm9008_vm10, %v1272_v15, %v1273_v17  ;;  %v1279_v15 = vrot.slane %v7052_v5, 6  ;;  %vm7273_vm14 = vmpackc.low %vm6741_vm2, %vm764_vm13  ;;  %v1280_v17 = vrot.slane %v7074_v4, 6 }
  0xb8   : > { %9146 = vst [vmem:[#allocation14_spill] sm:$0xff] %v9145_v56  ;;  %v1431_v10 = vpack.c.bf16 %v1327_v8, %v1328_v41  ;;  %v9149_v9 = vsel %vm7273_vm14, 4294967295, %v9148_v9  ;;  %v6483_v8 = vld [vmem:[#allocation5 + $0x98] sm:$0xff]  }
  0xb9   : > { %9150 = vst [vmem:[#allocation15_spill] sm:$0xff] %v9149_v9 }
  0xbe   : > { %5695 = vmatmul.mubr.bf16.gmra.mrb[24].mxu0 %v1635_v62  ;;  %v1275_v62 = vrot.slane %v7030_v48, 6 }
  0xbf   : > { %5698 = vmatprep.mubr.bf16.mxu0 %v1636_v7  ;;  %v6481_v7 = vld [vmem:[#allocation5 + $0x88] sm:$0xff]  }
  0xc0   : > { %v1325_v25 = vsel %vm9008_vm10, %v1274_v22, %v1275_v62  ;;  %v1320_v22 = vsel %vm9008_vm10, %v1279_v15, %v1280_v17 }
  0xc1   : > { %v1432_v32 = vpack.c.bf16 %v1325_v25, %v1326_v24  ;;  %v1284_v25 = vrot.slane %v7101_v49, 6  ;;  %v6485_v24 = vld [vmem:[#allocation5 + $0xa8] sm:$0xff]  }
  0xc6   : > { %5699 = vmatmul.mubr.bf16.gmra.mrb[28].mxu0 %v1637_v40  ;;  %v1323_v40 = vsel %vm9008_vm10, %v1276_v3, %v1277_v51 }
  0xc7   : > { %5718 = vmatprep.mubr.msk.bf16.mxu0 %vm7240_vm12, %v5258_v46  ;;  %v1324_v46 = vsel %vm9008_vm10, %v1275_v62, %v1276_v3  ;;  %v6484_v62 = vld [vmem:[#allocation5 + $0xa0] sm:$0xff]  }
  0xc8   : > { %v5261_v14 = vpack.c.bf16 %v1323_v40, %v1324_v46  ;;  %v9151_v40 = vand.u32 63, %v7019_v43 }
  0xca   : > { %v740_v46 = vadd.s32 4294967294, %v9151_v40  ;;  %v1290_v40 = vrot.slane %v7135_v34, 6 }
  0xcc   : > { %vm772_vm15 = vcmp.ge.s32.totalorder %v740_v46, 0  ;;  %v1291_v46 = vrot.slane %v7137_v37, 6 }
  0xcd   : > { %vm7306_vm0 = vmpackc.low %vm6741_vm2, %vm772_vm15 }
  0xce   : > { %5719 = vmatmul.mubr.bf16.vlgmr.msra.gmra.mrb[0].mxu0 %v1430_v54 }
  0xcf   : > { %5751 = vmatpush3.bf16.msra.mxu0 %v6480_v36  ;;  %5722 = vmatprep.mubr.bf16.mxu0 %v1431_v10  ;;  %v1278_v36 = vrot.slane %v7048_v0, 6  ;;  %v1319_v10 = vsel %vm9008_vm10, %v1280_v17, %v1281_v21 }
  0xd0   : > { %5752 = vmatprep.subr.bf16.mxu0 %v6481_v7  ;;  %v1435_v3 = vpack.c.bf16 %v1319_v10, %v1320_v22  ;;  %v1289_v10 = vrot.slane %v7130_v19, 6  ;;  %v6487_v22 = vld [vmem:[#allocation5 + $0xb8] sm:$0xff]  }
  0xd1   : > { %v1321_v41 = vsel %vm9008_vm10, %v1278_v36, %v1279_v15  ;;  %v1322_v54 = vsel %vm9008_vm10, %v1277_v51, %v1278_v36  ;;  %v1285_v51 = vrot.slane %v7103_v50, 6  ;;  %v1316_v36 = vsel %vm9008_vm10, %v1283_v60, %v1284_v25  ;;  %v6486_v15 = vld [vmem:[#allocation5 + $0xb0] sm:$0xff]  }
  0xd3   : > { %5753 = vmatpush3.bf16.msra.mxu0 %v6481_v7  ;;  %v1434_v7 = vpack.c.bf16 %v1321_v41, %v1322_v54  ;;  %v1287_v41 = vrot.slane %v7117_v63, 6  ;;  %v1288_v54 = vrot.slane %v7128_v18, 6 }
  0xd4   : > { %5754 = vmatprep.subr.bf16.mxu0 %v6482_v59 }
  0xd6   : > { %5723 = vmatmul.mubr.bf16.gmra.mrb[4].mxu0 %v1432_v32  ;;  %v1318_v32 = vsel %vm9008_vm10, %v1281_v21, %v1282_v58  ;;  %v9152_v21 = vmov 0 }
  0xd7   : > { %5726 = vmatprep.mubr.msk.bf16.mxu0 %vm7273_vm14, %v5261_v14  ;;  %5755 = vmatpush3.bf16.msra.mxu0 %v6482_v59  ;;  %v1317_v59 = vsel %vm9008_vm10, %v1282_v58, %v1283_v60  ;;  %v1315_v14 = vsel %vm9008_vm10, %v1284_v25, %v1285_v51  ;;  %v9153_v21 = vsel %vm7306_vm0, 4294967295, %v9152_v21  ;;  %v1312_v58 = vsel %vm9008_vm10, %v1287_v41, %v1288_v54  ;;  %v6488_v60 = vld [vmem:[#allocation5 + $0xc0] sm:$0xff]  }
  0xd8   : > { %5756 = vmatprep.subr.bf16.mxu0 %v6483_v8  ;;  %v1436_v43 = vpack.c.bf16 %v1317_v59, %v1318_v32  ;;  %v5264_v17 = vpack.c.bf16 %v1315_v14, %v1316_v36  ;;  %9154 = vst [vmem:[#allocation16_spill] sm:$0xff] %v9153_v21  ;;  %v1292_v59 = vrot.slane %v7153_v47, 6  ;;  %v9155_v32 = vand.u32 63, %v7024_v45 }
  0xd9   : > { %v1309_v36 = vsel %vm9008_vm10, %v1290_v40, %v1291_v46  ;;  %v1294_v45 = vrot.slane %v7157_v6, 6 }
  0xda   : > { %v748_v14 = vadd.s32 4294967294, %v9155_v32 }
  0xdb   : > { %5757 = vmatpush3.bf16.msra.mxu0 %v6483_v8  ;;  %v1286_v8 = vrot.slane %v7107_v55, 6 }
  0xdc   : > { %5758 = vmatprep.subr.bf16.mxu0 %v6484_v62  ;;  %vm780_vm4 = vcmp.ge.s32.totalorder %v748_v14, 0  ;;  %v2073_v14 = vpack.c.bf16 %v6973_v12, %v6971_v11 }
  0xdd   : > { %vm7339_vm6 = vmpackc.low %vm6741_vm2, %vm780_vm4 }
  0xde   : > { %5727 = vmatmul.mubr.bf16.gmra.mrb[8].mxu0 %v1434_v7  ;;  %v1314_v7 = vsel %vm9008_vm10, %v1285_v51, %v1286_v8  ;;  %v1293_v51 = vrot.slane %v7155_v2, 6 }
  0xdf   : > { %5730 = vmatprep.mubr.bf16.mxu0 %v1435_v3  ;;  %5759 = vmatpush3.bf16.msra.mxu0 %v6484_v62  ;;  %v1313_v62 = vsel %vm9008_vm10, %v1286_v8, %v1287_v41  ;;  %v1311_v3 = vsel %vm9008_vm10, %v1288_v54, %v1289_v10  ;;  %v1295_v54 = vrot.slane %v7162_v57, 6 }
  0xe0   : > { %5760 = vmatprep.subr.bf16.mxu0 %v6485_v24  ;;  %v1438_v25 = vpack.c.bf16 %v1313_v62, %v1314_v7  ;;  %v1297_v62 = vrot.slane %v7170_v42, 6 }
  0xe1   : > { %v1305_v7 = vsel %vm9008_vm10, %v1294_v45, %v1295_v54 }
  0xe3   : > { %5761 = vmatpush3.bf16.msra.mxu0 %v6485_v24  ;;  %v1439_v24 = vpack.c.bf16 %v1311_v3, %v1312_v58  ;;  %v1306_v3 = vsel %vm9008_vm10, %v1293_v51, %v1294_v45  ;;  %v6492_v45 = vld [vmem:[#allocation5 + $0xe0] sm:$0xff]  }
  0xe4   : > { %5762 = vmatprep.subr.bf16.mxu0 %v6486_v15 }
  0xe6   : > { %5731 = vmatmul.mubr.bf16.gmra.mrb[12].mxu0 %v1436_v43  ;;  %v1307_v43 = vsel %vm9008_vm10, %v1292_v59, %v1293_v51 }
  0xe7   : > { %5734 = vmatprep.mubr.msk.bf16.mxu0 %vm7306_vm0, %v5264_v17  ;;  %5763 = vmatpush3.bf16.msra.mxu0 %v6486_v15  ;;  %v1310_v15 = vsel %vm9008_vm10, %v1289_v10, %v1290_v40  ;;  %v1308_v17 = vsel %vm9008_vm10, %v1291_v46, %v1292_v59  ;;  %v1296_v10 = vrot.slane %v7164_v33, 6  ;;  %v1298_v46 = vrot.slane %v7179_v39, 6 }
  0xe8   : > { %5764 = vmatprep.subr.bf16.mxu0 %v6487_v22  ;;  %v1440_v8 = vpack.c.bf16 %v1309_v36, %v1310_v15  ;;  %v5267_v41 = vpack.c.bf16 %v1307_v43, %v1308_v17  ;;  %v2074_v36 = vpack.c.bf16 %v7000_v28, %v6998_v27  ;;  %v2075_v15 = vpack.c.bf16 %v7004_v31, %v7002_v30  ;;  %v6489_v43 = vld [vmem:[#allocation5 + $0xc8] sm:$0xff]  }
  0xe9   : > { %v1303_v58 = vsel %vm9008_vm10, %v1296_v10, %v1297_v62  ;;  %v1301_v59 = vsel %vm9008_vm10, %v1298_v46, %v1299_v16  ;;  %v1302_v51 = vsel %vm9008_vm10, %v1297_v62, %v1298_v46  ;;  %v6490_v16 = vld [vmem:[#allocation5 + $0xd0] sm:$0xff]   ;;  %v2076_v17 = vpack.c.bf16 %v7030_v48, %v7021_v44 }
  0xea   : > { %v1444_v32 = vpack.c.bf16 %v1301_v59, %v1302_v51  ;;  %v6494_v62 = vld [vmem:[#allocation5 + $0xf0] sm:$0xff]   ;;  %v2084_v46 = vpack.c.bf16 %v7137_v37, %v7135_v34  ;;  %v2085_v59 = vpack.c.bf16 %v7155_v2, %v7153_v47  ;;  %v2086_v51 = vpack.c.bf16 %v7162_v57, %v7157_v6 }
  0xeb   : > { %5765 = vmatpush3.bf16.msra.mxu0 %v6487_v22  ;;  %v9156_v22 = vmov 0 }
  0xec   : > { %5798 = vmatprep.subr.bf16.mxu0 %v6488_v60  ;;  %v9157_v22 = vsel %vm7339_vm6, 4294967295, %v9156_v22 }
  0xed   : > { %9158 = vst [vmem:[#allocation17_spill] sm:$0xff] %v9157_v22 }
  0xee   : > { %5735 = vmatmul.mubr.bf16.gmra.mrb[16].mxu0 %v1438_v25  ;;  %v1304_v25 = vsel %vm9008_vm10, %v1295_v54, %v1296_v10  ;;  %v2079_v54 = vpack.c.bf16 %v7088_v26, %v7074_v4  ;;  %v6493_v10 = vld [vmem:[#allocation5 + $0xe8] sm:$0xff]  }
  0xef   : > { %5738 = vmatprep.mubr.bf16.mxu0 %v1439_v24  ;;  %v1442_v24 = vpack.c.bf16 %v1305_v7, %v1306_v3  ;;  %v1443_v40 = vpack.c.bf16 %v1303_v58, %v1304_v25  ;;  %v2080_v7 = vpack.c.bf16 %v7093_v35, %v7090_v29  ;;  %v2081_v3 = vpack.c.bf16 %v7103_v50, %v7101_v49  ;;  %v6495_v58 = vld [vmem:[#allocation5 + $0xf8] sm:$0xff]   ;;  %v6496_v25 = vld [vmem:[#allocation5 + $0x100] sm:$0xff]  }
  0xf6   : > { %5739 = vmatmul.mubr.bf16.gmra.mrb[20].mxu0 %v1440_v8  ;;  %v2077_v8 = vpack.c.bf16 %v7038_v53, %v7036_v52 }
  0xf7   : > { %5742 = vmatprep.mubr.msk.bf16.mxu0 %vm7339_vm6, %v5267_v41  ;;  %v6491_v41 = vld [vmem:[#allocation5 + $0xd8] sm:$0xff]  }
  0xfe   : > { %5743 = vmatmul.mubr.bf16.gmra.mrb[24].mxu0 %v1442_v24  ;;  %v2082_v24 = vpack.c.bf16 %v7117_v63, %v7107_v55 }
  0xff   : > { %5746 = vmatprep.mubr.bf16.mxu0 %v1443_v40  ;;  %v2083_v40 = vpack.c.bf16 %v7130_v19, %v7128_v18 }
 0x106   : > { %5747 = vmatmul.mubr.bf16.gmra.mrb[28].mxu0 %v1444_v32  ;;  %v2087_v32 = vpack.c.bf16 %v7170_v42, %v7164_v33 }
 0x107   : > { %5766 = vmatprep.mubr.bf16.mxu0 %v2073_v14  ;;  %v9007_v14 = vrot.slane %v6971_v11, 1 }
 0x10e   : > { %5767 = vmatmul.mubr.bf16.vlgmr.msra.gmra.mrb[0].mxu0 %v2074_v36  ;;  %v2348_v36 = vrot.slane %v6973_v12, 1 }
 0x10f   : > { %5799 = vmatpush3.bf16.msra.mxu0 %v6488_v60  ;;  %5770 = vmatprep.mubr.bf16.mxu0 %v2075_v15  ;;  %v2078_v60 = vpack.c.bf16 %v7052_v5, %v7048_v0  ;;  %v2349_v15 = vrot.slane %v6998_v27, 1 }
 0x110   : > { %5800 = vmatprep.subr.bf16.mxu0 %v6489_v43 }
 0x113   : > { %5801 = vmatpush3.bf16.msra.mxu0 %v6489_v43  ;;  %v2409_v43 = vsel %vm9010_vm7, %v2348_v36, %v2349_v15 }
 0x114   : > { %5802 = vmatprep.subr.bf16.mxu0 %v6490_v16 }
 0x116   : > { %5771 = vmatmul.mubr.bf16.gmra.mrb[4].mxu0 %v2076_v17  ;;  %v2088_v17 = vpack.c.bf16 %v6975_v13, %v7179_v39 }
 0x117   : > { %5774 = vmatprep.mubr.bf16.mxu0 %v2077_v8  ;;  %5803 = vmatpush3.bf16.msra.mxu0 %v6490_v16  ;;  %v2410_v16 = vsel %vm9010_vm7, %v9007_v14, %v2348_v36  ;;  %v6497_v36 = vld [vmem:[#allocation5 + $0x108] sm:$0xff]   ;;  %v2783_v14 = vrot.slane %v6973_v12, 2 }
 0x118   : > { %5804 = vmatprep.subr.bf16.mxu0 %v6491_v41  ;;  %v2508_v8 = vpack.c.bf16 %v2409_v43, %v2410_v16  ;;  %v2357_v43 = vrot.slane %v7048_v0, 1 }
 0x11b   : > { %5805 = vmatpush3.bf16.msra.mxu0 %v6491_v41  ;;  %v2350_v41 = vrot.slane %v7000_v28, 1 }
 0x11c   : > { %5806 = vmatprep.subr.bf16.mxu0 %v6492_v45 }
 0x11e   : > { %5775 = vmatmul.mubr.bf16.gmra.mrb[8].mxu0 %v2078_v60  ;;  %v2352_v60 = vrot.slane %v7004_v31, 1 }
 0x11f   : > { %5778 = vmatprep.mubr.bf16.mxu0 %v2079_v54  ;;  %5807 = vmatpush3.bf16.msra.mxu0 %v6492_v45  ;;  %v2351_v45 = vrot.slane %v7002_v30, 1  ;;  %v2353_v54 = vrot.slane %v7021_v44, 1 }
 0x120   : > { %5808 = vmatprep.subr.bf16.mxu0 %v6493_v10 }
 0x123   : > { %5809 = vmatpush3.bf16.msra.mxu0 %v6493_v10  ;;  %v7409_v10 = vadd.s32 56, %v6963_v1 }
 0x124   : > { %5810 = vmatprep.subr.bf16.mxu0 %v6494_v62 }
 0x126   : > { %5779 = vmatmul.mubr.bf16.gmra.mrb[12].mxu0 %v2080_v7  ;;  %v2408_v7 = vsel %vm9010_vm7, %v2349_v15, %v2350_v41  ;;  %v2356_v15 = vrot.slane %v7038_v53, 1 }
 0x127   : > { %5782 = vmatprep.mubr.bf16.mxu0 %v2081_v3  ;;  %5811 = vmatpush3.bf16.msra.mxu0 %v6494_v62  ;;  %v2407_v62 = vsel %vm9010_vm7, %v2350_v41, %v2351_v45  ;;  %v2405_v3 = vsel %vm9010_vm7, %v2352_v60, %v2353_v54 }
 0x128   : > { %5812 = vmatprep.subr.bf16.mxu0 %v6495_v58 }
 0x12b   : > { %5813 = vmatpush3.bf16.msra.mxu0 %v6495_v58  ;;  %v2406_v58 = vsel %vm9010_vm7, %v2351_v45, %v2352_v60  ;;  %v6498_v45 = vld [vmem:[#allocation5 + $0x110] sm:$0xff]  }
 0x12c   : > { %5846 = vmatprep.subr.bf16.mxu0 %v6496_v25 }
 0x12e   : > { %5783 = vmatmul.mubr.bf16.gmra.mrb[16].mxu0 %v2082_v24  ;;  %v9006_v24 = vand.u32 63, %v7409_v10 }
 0x12f   : > { %5786 = vmatprep.mubr.bf16.mxu0 %v2083_v40  ;;  %v2509_v40 = vpack.c.bf16 %v2407_v62, %v2408_v7  ;;  %v2358_v7 = vrot.slane %v7052_v5, 1 }
 0x136   : > { %5787 = vmatmul.mubr.bf16.gmra.mrb[20].mxu0 %v2084_v46  ;;  %v2510_v46 = vpack.c.bf16 %v2405_v3, %v2406_v58  ;;  %v2360_v3 = vrot.slane %v7088_v26, 1  ;;  %v2361_v58 = vrot.slane %v7090_v29, 1 }
 0x137   : > { %5790 = vmatprep.mubr.bf16.mxu0 %v2085_v59  ;;  %v2354_v59 = vrot.slane %v7030_v48, 1 }
 0x13e   : > { %5791 = vmatmul.mubr.bf16.gmra.mrb[24].mxu0 %v2086_v51  ;;  %v2355_v51 = vrot.slane %v7036_v52, 1 }
 0x13f   : > { %5794 = vmatprep.mubr.bf16.mxu0 %v2087_v32  ;;  %v987_v32 = vadd.s32 1, %v9006_v24  ;;  %v2378_v24 = vrot.slane %v6975_v13, 1 }
 0x140   : > { %v2403_v16 = vsel %vm9010_vm7, %v2354_v59, %v2355_v51  ;;  %v2402_v41 = vsel %vm9010_vm7, %v2355_v51, %v2356_v15  ;;  %v2400_v51 = vsel %vm9010_vm7, %v2357_v43, %v2358_v7 }
 0x141   : > { %vm1051_vm11 = vcmp.lt.s32.totalorder %v987_v32, 64  ;;  %v2397_v32 = vsel %vm9010_vm7, %v2360_v3, %v2361_v58 }
 0x142   : > { %vm7435_vm13 = vmpackc.low %vm1051_vm11, %vm6741_vm2 }
 0x146   : > { %5795 = vmatmul.mubr.bf16.gmra.mrb[28].mxu0 %v2088_v17  ;;  %v2404_v17 = vsel %vm9010_vm7, %v2353_v54, %v2354_v59  ;;  %v2359_v54 = vrot.slane %v7074_v4, 1 }
 0x147   : > { %5814 = vmatprep.mubr.bf16.mxu0 %v2508_v8  ;;  %v2401_v8 = vsel %vm9010_vm7, %v2356_v15, %v2357_v43  ;;  %v5286_v60 = vpack.c.bf16 %v2403_v16, %v2404_v17  ;;  %v6500_v16 = vld [vmem:[#allocation5 + $0x120] sm:$0xff]  }
 0x148   : > { %v2512_v62 = vpack.c.bf16 %v2401_v8, %v2402_v41  ;;  %v2399_v59 = vsel %vm9010_vm7, %v2358_v7, %v2359_v54  ;;  %v2362_v41 = vrot.slane %v7093_v35, 1  ;;  %v6501_v7 = vld [vmem:[#allocation5 + $0x128] sm:$0xff]  }
 0x149   : > { %v2513_v17 = vpack.c.bf16 %v2399_v59, %v2400_v51  ;;  %v6502_v51 = vld [vmem:[#allocation5 + $0x130] sm:$0xff]  }
 0x14e   : > { %5815 = vmatmul.mubr.bf16.vlgmr.msra.gmra.mrb[0].mxu0 %v2509_v40  ;;  %v7444_v40 = vadd.s32 120, %v6963_v1 }
 0x14f   : > { %5847 = vmatpush3.bf16.msra.mxu0 %v6496_v25  ;;  %5818 = vmatprep.mubr.bf16.mxu0 %v2510_v46  ;;  %v9159_v25 = vmov 0  ;;  %v6499_v46 = vld [vmem:[#allocation5 + $0x118] sm:$0xff]  }
 0x150   : > { %5848 = vmatprep.subr.bf16.mxu0 %v6497_v36  ;;  %v9160_v25 = vsel %vm7435_vm13, 4294967295, %v9159_v25  ;;  %v9004_v15 = vand.u32 63, %v7444_v40 }
 0x151   : > { %9161 = vst [vmem:[#allocation18_spill] sm:$0xff] %v9160_v25 }
 0x152   : > { %v995_v43 = vadd.s32 1, %v9004_v15 }
 0x153   : > { %5849 = vmatpush3.bf16.msra.mxu0 %v6497_v36  ;;  %v2398_v36 = vsel %vm9010_vm7, %v2359_v54, %v2360_v3  ;;  %v2396_v3 = vsel %vm9010_vm7, %v2361_v58, %v2362_v41  ;;  %v2367_v58 = vrot.slane %v7128_v18, 1 }
 0x154   : > { %5850 = vmatprep.subr.bf16.mxu0 %v6498_v45  ;;  %v2514_v8 = vpack.c.bf16 %v2397_v32, %v2398_v36  ;;  %vm1059_vm15 = vcmp.lt.s32.totalorder %v995_v43, 64  ;;  %v9162_v36 = vmov 0  ;;  %v6503_v43 = vld [vmem:[#allocation5 + $0x138] sm:$0xff]  }
 0x155   : > { %vm7472_vm4 = vmpackc.low %vm1059_vm15, %vm6741_vm2 }
 0x156   : > { %5819 = vmatmul.mubr.msk.bf16.gmra.mrb[4].mxu0 %vm7435_vm13, %v5286_v60  ;;  %v2363_v60 = vrot.slane %v7101_v49, 1  ;;  %v9163_v36 = vsel %vm7472_vm4, 4294967295, %v9162_v36 }
 0x157   : > { %5822 = vmatprep.mubr.bf16.mxu0 %v2512_v62  ;;  %5851 = vmatpush3.bf16.msra.mxu0 %v6498_v45  ;;  %v2364_v45 = vrot.slane %v7103_v50, 1  ;;  %v2365_v62 = vrot.slane %v7107_v55, 1  ;;  %9164 = vst [vmem:[#allocation19_spill] sm:$0xff] %v9163_v36 }
 0x158   : > { %5852 = vmatprep.subr.bf16.mxu0 %v6499_v46  ;;  %v2395_v54 = vsel %vm9010_vm7, %v2362_v41, %v2363_v60  ;;  %v2369_v41 = vrot.slane %v7135_v34, 1 }
 0x159   : > { %v2394_v59 = vsel %vm9010_vm7, %v2363_v60, %v2364_v45  ;;  %v5289_v32 = vpack.c.bf16 %v2395_v54, %v2396_v3  ;;  %v7481_v60 = vadd.s32 184, %v6963_v1 }
 0x15b   : > { %5853 = vmatpush3.bf16.msra.mxu0 %v6499_v46  ;;  %v2393_v46 = vsel %vm9010_vm7, %v2364_v45, %v2365_v62 }
 0x15c   : > { %5854 = vmatprep.subr.bf16.mxu0 %v6500_v16 }
 0x15e   : > { %5823 = vmatmul.mubr.bf16.gmra.mrb[8].mxu0 %v2513_v17  ;;  %v2516_v17 = vpack.c.bf16 %v2393_v46, %v2394_v59  ;;  %v9005_v46 = vand.u32 63, %v7481_v60 }
 0x15f   : > { %5826 = vmatprep.mubr.bf16.mxu0 %v2514_v8  ;;  %5855 = vmatpush3.bf16.msra.mxu0 %v6500_v16  ;;  %v2366_v8 = vrot.slane %v7117_v63, 1  ;;  %v2368_v16 = vrot.slane %v7130_v19, 1 }
 0x160   : > { %5856 = vmatprep.subr.bf16.mxu0 %v6501_v7 }
 0x161   : > { %v2391_v45 = vsel %vm9010_vm7, %v2366_v8, %v2367_v58  ;;  %v2392_v54 = vsel %vm9010_vm7, %v2365_v62, %v2366_v8  ;;  %v2390_v3 = vsel %vm9010_vm7, %v2367_v58, %v2368_v16  ;;  %v1003_v62 = vadd.s32 1, %v9005_v46 }
 0x162   : > { %v2517_v59 = vpack.c.bf16 %v2391_v45, %v2392_v54  ;;  %v2373_v8 = vrot.slane %v7157_v6, 1 }
 0x163   : > { %5857 = vmatpush3.bf16.msra.mxu0 %v6501_v7  ;;  %v2389_v7 = vsel %vm9010_vm7, %v2368_v16, %v2369_v41  ;;  %vm1067_vm11 = vcmp.lt.s32.totalorder %v1003_v62, 64  ;;  %v7518_v62 = vadd.s32 248, %v6963_v1 }
 0x164   : > { %5858 = vmatprep.subr.bf16.mxu0 %v6502_v51  ;;  %v2518_v15 = vpack.c.bf16 %v2389_v7, %v2390_v3  ;;  %vm7509_vm15 = vmpackc.low %vm1067_vm11, %vm6741_vm2  ;;  %v9165_v7 = vmov 0  ;;  %v2374_v3 = vrot.slane %v7162_v57, 1  ;;  %vm9014_vm11 = vcmp.lt.s32.totalorder %v6963_v1, 6 }
 0x165   : > { %v9166_v7 = vsel %vm7509_vm15, 4294967295, %v9165_v7 }
 0x166   : > { %5827 = vmatmul.mubr.msk.bf16.gmra.mrb[12].mxu0 %vm7472_vm4, %v5289_v32  ;;  %v2370_v32 = vrot.slane %v7137_v37, 1  ;;  %9167 = vst [vmem:[#allocation20_spill] sm:$0xff] %v9166_v7 }
 0x167   : > { %5830 = vmatprep.mubr.bf16.mxu0 %v2516_v17  ;;  %5859 = vmatpush3.bf16.msra.mxu0 %v6502_v51  ;;  %v2371_v17 = vrot.slane %v7153_v47, 1  ;;  %v2372_v51 = vrot.slane %v7155_v2, 1 }
 0x168   : > { %5860 = vmatprep.subr.bf16.mxu0 %v6503_v43  ;;  %v2388_v16 = vsel %vm9010_vm7, %v2369_v41, %v2370_v32  ;;  %v2376_v41 = vrot.slane %v7170_v42, 1 }
 0x169   : > { %v2387_v58 = vsel %vm9010_vm7, %v2370_v32, %v2371_v17  ;;  %v2385_v45 = vsel %vm9010_vm7, %v2372_v51, %v2373_v8  ;;  %v2377_v32 = vrot.slane %v7179_v39, 1 }
 0x16a   : > { %v5292_v54 = vpack.c.bf16 %v2387_v58, %v2388_v16 }
 0x16b   : > { %5861 = vmatpush3.bf16.msra.mxu0 %v6503_v43  ;;  %v2386_v43 = vsel %vm9010_vm7, %v2371_v17, %v2372_v51  ;;  %v2384_v51 = vsel %vm9010_vm7, %v2373_v8, %v2374_v3  ;;  %v2381_v58 = vsel %vm9010_vm7, %v2376_v41, %v2377_v32  ;;  %v2784_v8 = vrot.slane %v6998_v27, 2 }
 0x16e   : > { %5831 = vmatmul.mubr.bf16.gmra.mrb[16].mxu0 %v2517_v59  ;;  %v2375_v59 = vrot.slane %v7164_v33, 1 }
 0x16f   : > { %5834 = vmatprep.mubr.bf16.mxu0 %v2518_v15  ;;  %v2520_v15 = vpack.c.bf16 %v2385_v45, %v2386_v43  ;;  %v561_v45 = vand.u32 63, %v7518_v62  ;;  %v6505_v62 = vld [vmem:[#allocation7 + $0x48] sm:$0xff]  }
 0x170   : > { %v2383_v17 = vsel %vm9010_vm7, %v2374_v3, %v2375_v59  ;;  %v2382_v16 = vsel %vm9010_vm7, %v2375_v59, %v2376_v41  ;;  %v2380_v3 = vsel %vm9010_vm7, %v2377_v32, %v2378_v24  ;;  %v9168_v59 = vrot.slane %v6971_v11, 1 }
 0x171   : > { %v2521_v43 = vpack.c.bf16 %v2383_v17, %v2384_v51  ;;  %v2522_v46 = vpack.c.bf16 %v2381_v58, %v2382_v16  ;;  %v2844_v17 = vsel %vm9014_vm11, %v2783_v14, %v2784_v8  ;;  %v2785_v51 = vrot.slane %v7000_v28, 2 }
 0x172   : > { %v2411_v41 = vsel %vm9010_vm7, %v2378_v24, %v9168_v59  ;;  %v2786_v24 = vrot.slane %v7002_v30, 2  ;;  %v2787_v58 = vrot.slane %v7004_v31, 2  ;;  %v2788_v16 = vrot.slane %v7021_v44, 2 }
 0x173   : > { %v5295_v27 = vpack.c.bf16 %v2411_v41, %v2380_v3  ;;  %v2789_v44 = vrot.slane %v7030_v48, 2  ;;  %v2790_v3 = vrot.slane %v7036_v52, 2  ;;  %v9172_v59 = vand.u32 63, %v7409_v10 }
 0x174   : > { %v2841_v28 = vsel %vm9014_vm11, %v2786_v24, %v2787_v58 }
 0x175   : > { %v1115_v41 = vadd.s32 2, %v9172_v59 }
 0x176   : > { %5835 = vmatmul.mubr.msk.bf16.gmra.mrb[20].mxu0 %vm7509_vm15, %v5292_v54  ;;  %v1011_v54 = vadd.s32 1, %v561_v45 }
 0x177   : > { %5838 = vmatprep.mubr.bf16.mxu0 %v2520_v15  ;;  %v2782_v15 = vrot.slane %v6971_v11, 2  ;;  %v6506_v11 = vld [vmem:[#allocation7 + $0x50] sm:$0xff]  }
 0x178   : > { %vm1075_vm10 = vcmp.lt.s32.totalorder %v1011_v54, 64  ;;  %v2840_v54 = vsel %vm9014_vm11, %v2787_v58, %v2788_v16  ;;  %v2796_v58 = vrot.slane %v7090_v29, 2  ;;  %v2797_v29 = vrot.slane %v7093_v35, 2 }
 0x179   : > { %v2845_v12 = vsel %vm9014_vm11, %v2782_v15, %v2783_v14  ;;  %vm7551_vm1 = vmpackc.low %vm1075_vm10, %vm6741_vm2  ;;  %v2842_v14 = vsel %vm9014_vm11, %v2785_v51, %v2786_v24  ;;  %v2945_v31 = vpack.c.bf16 %v2840_v54, %v2841_v28  ;;  %vm1179_vm10 = vcmp.lt.s32.totalorder %v1115_v41, 64 }
 0x17a   : > { %v2943_v32 = vpack.c.bf16 %v2844_v17, %v2845_v12  ;;  %v2791_v17 = vrot.slane %v7038_v53, 2  ;;  %v2792_v12 = vrot.slane %v7048_v0, 2  ;;  %vm7584_vm7 = vmpackc.low %vm1179_vm10, %vm6741_vm2  ;;  %v9173_v53 = vmov 0 }
 0x17b   : > { %v9174_v53 = vsel %vm7584_vm7, 4294967295, %v9173_v53  ;;  %v2795_v24 = vrot.slane %v7088_v26, 2  ;;  %v2798_v54 = vrot.slane %v7101_v49, 2  ;;  %v9176_v28 = vand.u32 63, %v7444_v40 }
 0x17c   : > { %v2836_v48 = vsel %vm9014_vm11, %v2791_v17, %v2792_v12  ;;  %v2837_v52 = vsel %vm9014_vm11, %v2790_v3, %v2791_v17  ;;  %9175 = vst [vmem:[#allocation22_spill] sm:$0xff] %v9174_v53  ;;  %v2831_v59 = vsel %vm9014_vm11, %v2796_v58, %v2797_v29  ;;  %v2801_v41 = vrot.slane %v7117_v63, 2 }
 0x17d   : > { %v2947_v0 = vpack.c.bf16 %v2836_v48, %v2837_v52  ;;  %v2802_v17 = vrot.slane %v7128_v18, 2 }
 0x17e   : > { %5839 = vmatmul.mubr.bf16.gmra.mrb[24].mxu0 %v2521_v43  ;;  %v2843_v43 = vsel %vm9014_vm11, %v2784_v8, %v2785_v51  ;;  %v2838_v8 = vsel %vm9014_vm11, %v2789_v44, %v2790_v3  ;;  %v2794_v51 = vrot.slane %v7074_v4, 2  ;;  %v2830_v3 = vsel %vm9014_vm11, %v2797_v29, %v2798_v54 }
 0x17f   : > { %5842 = vmatprep.mubr.bf16.mxu0 %v2522_v46  ;;  %v9169_v46 = vmov 0  ;;  %v2944_v30 = vpack.c.bf16 %v2842_v14, %v2843_v43  ;;  %v2832_v43 = vsel %vm9014_vm11, %v2795_v24, %v2796_v58  ;;  %v5309_v40 = vpack.c.bf16 %v2830_v3, %v2831_v59  ;;  %v6509_v59 = vld [vmem:[#allocation7 + $0x68] sm:$0xff]  }
 0x180   : > { %v9170_v46 = vsel %vm7551_vm1, 4294967295, %v9169_v46  ;;  %v9184_v3 = vmov 0 }
 0x181   : > { %9171 = vst [vmem:[#allocation21_spill] sm:$0xff] %v9170_v46 }
 0x186   : > { %5843 = vmatmul.mubr.msk.bf16.gmra.mrb[28].mxu0 %vm7551_vm1, %v5295_v27  ;;  %v2839_v27 = vsel %vm9014_vm11, %v2788_v16, %v2789_v44  ;;  %v2800_v44 = vrot.slane %v7107_v55, 2 }
 0x187   : > { %5862 = vmatprep.mubr.bf16.mxu0 %v2943_v32  ;;  %v5306_v10 = vpack.c.bf16 %v2838_v8, %v2839_v27  ;;  %v2793_v32 = vrot.slane %v7052_v5, 2  ;;  %v2833_v5 = vsel %vm9014_vm11, %v2794_v51, %v2795_v24  ;;  %v2804_v8 = vrot.slane %v7135_v34, 2 }
 0x188   : > { %v2949_v26 = vpack.c.bf16 %v2832_v43, %v2833_v5  ;;  %v2826_v27 = vsel %vm9014_vm11, %v2801_v41, %v2802_v17  ;;  %v2827_v48 = vsel %vm9014_vm11, %v2800_v44, %v2801_v41  ;;  %v2805_v34 = vrot.slane %v7137_v37, 2 }
 0x189   : > { %v2834_v16 = vsel %vm9014_vm11, %v2793_v32, %v2794_v51  ;;  %v2835_v14 = vsel %vm9014_vm11, %v2792_v12, %v2793_v32  ;;  %v2803_v12 = vrot.slane %v7130_v19, 2  ;;  %v2952_v18 = vpack.c.bf16 %v2826_v27, %v2827_v48 }
 0x18a   : > { %v2948_v4 = vpack.c.bf16 %v2834_v16, %v2835_v14  ;;  %v2807_v51 = vrot.slane %v7155_v2, 2  ;;  %v2808_v24 = vrot.slane %v7157_v6, 2  ;;  %v2823_v16 = vsel %vm9014_vm11, %v2804_v8, %v2805_v34 }
 0x18b   : > { %v2824_v52 = vsel %vm9014_vm11, %v2803_v12, %v2804_v8  ;;  %v2825_v63 = vsel %vm9014_vm11, %v2802_v17, %v2803_v12  ;;  %v9181_v2 = vmov 0  ;;  %v2809_v14 = vrot.slane %v7162_v57, 2  ;;  %v7690_v8 = vld [vmem:[%s8993_s2] ss:$0 sm:$0xff] }
 0x18c   : > { %v2953_v19 = vpack.c.bf16 %v2824_v52, %v2825_v63  ;;  %v2820_v37 = vsel %vm9014_vm11, %v2807_v51, %v2808_v24  ;;  %v2810_v43 = vrot.slane %v7164_v33, 2  ;;  %v2811_v5 = vrot.slane %v7170_v42, 2 }
 0x18d   : > { %v2819_v29 = vsel %vm9014_vm11, %v2808_v24, %v2809_v14 }
 0x18e   : > { %5863 = vmatmul.mubr.bf16.vlgmr.msra.gmra.mrb[0].mxu0 %v2944_v30  ;;  %v1123_v30 = vadd.s32 2, %v9176_v28  ;;  %v2817_v57 = vsel %vm9014_vm11, %v2810_v43, %v2811_v5  ;;  %v1139_v28 = vadd.s32 2, %v561_v45  ;;  %v6507_v45 = vld [vmem:[#allocation7 + $0x58] sm:$0xff]  }
 0x18f   : > { %5866 = vmatprep.mubr.bf16.mxu0 %v2945_v31  ;;  %v2799_v31 = vrot.slane %v7103_v50, 2  ;;  %v9177_v50 = vmov 0 }
 0x190   : > { %vm1187_vm10 = vcmp.lt.s32.totalorder %v1123_v30, 64 }
 0x191   : > { %v2828_v35 = vsel %vm9014_vm11, %v2799_v31, %v2800_v44  ;;  %v2829_v49 = vsel %vm9014_vm11, %v2798_v54, %v2799_v31 }
 0x192   : > { %v2951_v55 = vpack.c.bf16 %v2828_v35, %v2829_v49  ;;  %v6510_v35 = vld [vmem:[#allocation7 + $0x70] sm:$0xff]   ;;  %v6511_v49 = vld [vmem:[#allocation7 + $0x78] sm:$0xff]  }
 0x196   : > { %5867 = vmatmul.mubr.msk.bf16.gmra.mrb[4].mxu0 %vm7584_vm7, %v5306_v10  ;;  %vm7617_vm7 = vmpackc.low %vm1187_vm10, %vm6741_vm2  ;;  %v2806_v10 = vrot.slane %v7153_v47, 2 }
 0x197   : > { %5870 = vmatprep.mubr.bf16.mxu0 %v2947_v0  ;;  %v9178_v50 = vsel %vm7617_vm7, 4294967295, %v9177_v50  ;;  %v9180_v0 = vand.u32 63, %v7481_v60 }
 0x198   : > { %9179 = vst [vmem:[#allocation23_spill] sm:$0xff] %v9178_v50  ;;  %v2822_v58 = vsel %vm9014_vm11, %v2805_v34, %v2806_v10  ;;  %v2821_v47 = vsel %vm9014_vm11, %v2806_v10, %v2807_v51 }
 0x199   : > { %v1131_v32 = vadd.s32 2, %v9180_v0  ;;  %v5312_v60 = vpack.c.bf16 %v2822_v58, %v2823_v16  ;;  %v2955_v6 = vpack.c.bf16 %v2820_v37, %v2821_v47 }
 0x19b   : > { %vm1195_vm10 = vcmp.lt.s32.totalorder %v1131_v32, 64 }
 0x19e   : > { %5871 = vmatmul.mubr.bf16.gmra.mrb[8].mxu0 %v2948_v4  ;;  %v2812_v4 = vrot.slane %v7179_v39, 2  ;;  %v2813_v39 = vrot.slane %v6975_v13, 2  ;;  %v6504_v13 = vld [vmem:[#allocation7 + $0x40] sm:$0xff]  }
 0x19f   : > { %5874 = vmatprep.mubr.bf16.mxu0 %v2949_v26  ;;  %v2818_v26 = vsel %vm9014_vm11, %v2809_v14, %v2810_v43  ;;  %5894 = vmatprep.subr.bf16.mxu1 %v6504_v13 }
 0x1a0   : > { %v2816_v54 = vsel %vm9014_vm11, %v2811_v5, %v2812_v4  ;;  %v2956_v33 = vpack.c.bf16 %v2818_v26, %v2819_v29  ;;  %v2815_v30 = vsel %vm9014_vm11, %v2812_v4, %v2813_v39  ;;  %v2846_v31 = vsel %vm9014_vm11, %v2813_v39, %v2782_v15  ;;  %5895 = vmatpush3.bf16.msra.mxu1 %v6504_v13  ;;  %v6508_v15 = vld [vmem:[#allocation7 + $0x60] sm:$0xff]  }
 0x1a1   : > { %v2957_v42 = vpack.c.bf16 %v2816_v54, %v2817_v57  ;;  %v5315_v44 = vpack.c.bf16 %v2846_v31, %v2815_v30  ;;  %5896 = vmatprep.subr.bf16.mxu1 %v6505_v62 }
 0x1a4   : > { %5897 = vmatpush3.bf16.msra.mxu1 %v6505_v62 }
 0x1a5   : > { %5898 = vmatprep.subr.bf16.mxu1 %v6506_v11 }
 0x1a6   : > { %5875 = vmatmul.mubr.msk.bf16.gmra.mrb[12].mxu0 %vm7617_vm7, %v5309_v40  ;;  %vm7650_vm7 = vmpackc.low %vm1195_vm10, %vm6741_vm2  ;;  %vm1203_vm10 = vcmp.lt.s32.totalorder %v1139_v28, 64  ;;  %v7684_v40 = vld [vmem:[#allocation7] sm:$0xff]  }
 0x1a7   : > { %5878 = vmatprep.mubr.bf16.mxu0 %v2951_v55  ;;  %v9182_v2 = vsel %vm7650_vm7, 4294967295, %v9181_v2 }
 0x1a8   : > { %9183 = vst [vmem:[#allocation24_spill] sm:$0xff] %v9182_v2  ;;  %5899 = vmatpush3.bf16.msra.mxu1 %v6506_v11 }
 0x1a9   : > { %5900 = vmatprep.subr.bf16.mxu1 %v6507_v45 }
 0x1ac   : > { %5901 = vmatpush3.bf16.msra.mxu1 %v6507_v45 }
 0x1ad   : > { %5902 = vmatprep.subr.bf16.mxu1 %v6508_v15 }
 0x1ae   : > { %5879 = vmatmul.mubr.bf16.gmra.mrb[16].mxu0 %v2952_v18 }
 0x1af   : > { %5882 = vmatprep.mubr.bf16.mxu0 %v2953_v19 }
 0x1b0   : > { %5903 = vmatpush3.bf16.msra.mxu1 %v6508_v15 }
 0x1b1   : > { %5904 = vmatprep.subr.bf16.mxu1 %v6509_v59 }
 0x1b4   : > { %5905 = vmatpush3.bf16.msra.mxu1 %v6509_v59 }
 0x1b5   : > { %5906 = vmatprep.subr.bf16.mxu1 %v6510_v35 }
 0x1b6   : > { %5883 = vmatmul.mubr.msk.bf16.gmra.mrb[20].mxu0 %vm7650_vm7, %v5312_v60  ;;  %vm7678_vm7 = vmpackc.low %vm1203_vm10, %vm6741_vm2  ;;  %vm9187_vm2 = vcmp.lt.s32.totalorder %v6963_v1, 1  ;;  %vm9188_vm10 = vcmp.lt.s32.totalorder %v6963_v1, 2 }
 0x1b7   : > { %5886 = vmatprep.mubr.bf16.mxu0 %v2955_v6  ;;  %v9185_v3 = vsel %vm7678_vm7, 4294967295, %v9184_v3  ;;  %vm9190_vm11 = vmmov %vm9188_vm10 }
 0x1b8   : > { %9186 = vst [vmem:[#allocation25_spill] sm:$0xff] %v9185_v3  ;;  %5907 = vmatpush3.bf16.msra.mxu1 %v6510_v35 }
 0x1b9   : > { %5908 = vmatprep.subr.bf16.mxu1 %v6511_v49 }
 0x1bc   : > { %5909 = vmatpush3.bf16.msra.mxu1 %v6511_v49 }
 0x1bd   : > { %5942 = vmatprep.subr.bf16.mxu1 %v7684_v40 }
 0x1be   : > { %5887 = vmatmul.mubr.bf16.gmra.mrb[24].mxu0 %v2956_v33 }
 0x1bf   : > { %5890 = vmatprep.mubr.bf16.mxu0 %v2957_v42 }
 0x1c6   : > { %5891 = vmatmul.mubr.msk.bf16.gmra.mrb[28].mxu0 %vm7678_vm7, %v5315_v44 }
 0x261   : > { %v5864_v55 = vpop.f32.mrb[0].mxu0 }
 0x262   : > { %v3058_v41 = vpop.f32.mrb[1].mxu0  ;;  %v3225_v32 = vadd.f32 %v5864_v55, %v7690_v8 }
 0x263   : > { %v5865_v17 = vpop.f32.mrb[2].mxu0  ;;  %v3223_v51 = vadd.f32 %v7690_v8, %v3058_v41 }
 0x264   : > { %v3061_v12 = vpop.f32.mrb[3].mxu0  ;;  %v3226_v27 = vadd.f32 %v5865_v17, %v7690_v8  ;;  %v7719_v26 = vmax.f32 %v3225_v32, 0.0 }
 0x265   : > { %v3224_v47 = vadd.f32 %v7690_v8, %v3061_v12  ;;  %v7727_v57 = vmax.f32 %v3223_v51, 0.0 }
 0x266   : > { %v7693_v63 = vmax.f32 %v3226_v27, 0.0  ;;  %v9023_v55 = vrot.slane %v7719_v26, 1 }
 0x267   : > { %v7742_v30 = vmax.f32 %v3224_v47, 0.0 }
 0x268   : > { %v9025_v58 = vrot.slane %v7693_v63, 7  ;;  %v9017_v37 = vrot.slane %v7693_v63, 6  ;;  %v4239_v35 = vrot.slane %v7693_v63, 1 }
 0x269   : > { %v5868_v48 = vpop.f32.mrb[4].mxu0  ;;  %9192 = vst [vmem:[#allocation28_spill] sm:$0xff] %v7742_v30 }
 0x26a   : > { %v3074_v52 = vpop.f32.mrb[5].mxu0 }
 0x26b   : > { %v3227_v18 = vadd.f32 %v7690_v8, %v3074_v52  ;;  %v5869_v19 = vpop.f32.mrb[6].mxu0 }
 0x26c   : > { %v3077_v34 = vpop.f32.mrb[7].mxu0  ;;  %v3230_v60 = vadd.f32 %v5869_v19, %v7690_v8 }
 0x26d   : > { %v7696_v10 = vmax.f32 %v3227_v18, 0.0  ;;  %v3228_v0 = vadd.f32 %v7690_v8, %v3077_v34 }
 0x26e   : > { %v7745_v44 = vmax.f32 %v3230_v60, 0.0  ;;  %v7778_v60 = vadd.f32 %v5868_v48, %v7690_v8 }
 0x26f   : > { %v7701_v24 = vmax.f32 %v3228_v0, 0.0  ;;  %v3419_v16 = vrot.slane %v7696_v10, 7  ;;  %v3291_v6 = vrot.slane %v7696_v10, 6  ;;  %v9015_v31 = vrot.slane %v7696_v10, 1 }
 0x270   : > { %v9022_v51 = vrot.slane %v7745_v44, 7 }
 0x271   : > { %v7709_v14 = vpop.f32.mrb[8].mxu0  ;;  %v9021_v43 = vrot.slane %v7701_v24, 7  ;;  %v7716_v5 = vsel %vm9187_vm2, %v9025_v58, %v3419_v16  ;;  %v9016_v4 = vrot.slane %v7701_v24, 6  ;;  %v7725_v54 = vsel %vm9188_vm10, %v9017_v37, %v3291_v6  ;;  %vm9195_vm10 = vmmov %vm9187_vm2 }
 0x272   : > { %v3090_v29 = vpop.f32.mrb[9].mxu0  ;;  %9189 = vst [vmem:[#allocation26_spill] sm:$0xff] %v7725_v54 }
 0x273   : > { %v3231_v33 = vadd.f32 %v7690_v8, %v3090_v29  ;;  %v5873_v42 = vpop.f32.mrb[10].mxu0  ;;  %v7734_v39 = vsel %vm9187_vm2, %v3419_v16, %v9021_v43  ;;  %v7740_v28 = vsel %vm9190_vm11, %v3291_v6, %v9016_v4  ;;  %vm9193_vm11 = vcmp.lt.s32.totalorder %v6963_v1, 7 }
 0x274   : > { %9191 = vst [vmem:[#allocation27_spill] sm:$0xff] %v7740_v28  ;;  %v3093_v13 = vpop.f32.mrb[11].mxu0  ;;  %v3234_v45 = vadd.f32 %v5873_v42, %v7690_v8  ;;  %v7770_v34 = vsel %vm9193_vm11, %v4239_v35, %v9015_v31  ;;  %vm9196_vm11 = vcmp.lt.s32.totalorder %v6963_v1, 2 }
 0x275   : > { %v7749_v11 = vmax.f32 %v3231_v33, 0.0  ;;  %v3232_v15 = vadd.f32 %v7690_v8, %v3093_v13  ;;  %9194 = vst [vmem:[#allocation29_spill] sm:$0xff] %v7770_v34  ;;  %v9020_v33 = vrot.slane %v7745_v44, 6 }
 0x276   : > { %v7772_v0 = vmax.f32 %v3234_v45, 0.0 }
 0x277   : > { %v7758_v41 = vmax.f32 %v3232_v15, 0.0  ;;  %v3423_v12 = vrot.slane %v7749_v11, 7  ;;  %v3295_v19 = vrot.slane %v7749_v11, 6 }
 0x278   : > { %v9027_v27 = vrot.slane %v7772_v0, 6 }
 0x279   : > { %v5876_v32 = vpop.f32.mrb[12].mxu0  ;;  %v9019_v16 = vrot.slane %v7758_v41, 7  ;;  %v9018_v47 = vrot.slane %v7758_v41, 6  ;;  %v7795_v48 = vsel %vm9187_vm2, %v9022_v51, %v3423_v12  ;;  %vm9200_vm2 = vcmp.lt.s32.totalorder %v6963_v1, 7 }
 0x27a   : > { %v3237_v6 = vadd.f32 %v5876_v32, %v7690_v8  ;;  %v3106_v29 = vpop.f32.mrb[13].mxu0 }
 0x27b   : > { %v3235_v13 = vadd.f32 %v7690_v8, %v3106_v29  ;;  %v5877_v45 = vpop.f32.mrb[14].mxu0  ;;  %v7789_v15 = vsel %vm9195_vm10, %v3423_v12, %v9019_v16  ;;  %v7801_v32 = vsel %vm9196_vm11, %v3295_v19, %v9018_v47  ;;  %vm9198_vm10 = vmmov %vm9196_vm11  ;;  %v9026_v47 = vrot.slane %v7772_v0, 7 }
 0x27c   : > { %9197 = vst [vmem:[#allocation30_spill] sm:$0xff] %v7801_v32  ;;  %v7803_v29 = vmax.f32 %v3237_v6, 0.0  ;;  %v3238_v31 = vadd.f32 %v5877_v45, %v7690_v8  ;;  %v3109_v42 = vpop.f32.mrb[15].mxu0  ;;  %v7812_v12 = vsel %vm9198_vm10, %v9020_v33, %v3295_v19  ;;  %vm9202_vm11 = vcmp.lt.s32.totalorder %v6963_v1, 1  ;;  %vm9206_vm7 = vmmov %vm9198_vm10 }
 0x27d   : > { %9199 = vst [vmem:[#allocation31_spill] sm:$0xff] %v7812_v12  ;;  %v7814_v59 = vmax.f32 %v3235_v13, 0.0  ;;  %v3236_v37 = vadd.f32 %v7690_v8, %v3109_v42  ;;  %v7833_v42 = vsel %vm9200_vm2, %v9023_v55, %v4239_v35  ;;  %vm9204_vm2 = vmmov %vm9202_vm11 }
 0x27e   : > { %v7820_v45 = vmax.f32 %v3238_v31, 0.0  ;;  %v3429_v52 = vrot.slane %v7803_v29, 7  ;;  %v3301_v4 = vrot.slane %v7803_v29, 6  ;;  %9201 = vst [vmem:[#allocation32_spill] sm:$0xff] %v7833_v42 }
 0x27f   : > { %v7825_v16 = vmax.f32 %v3236_v37, 0.0  ;;  %v3427_v19 = vrot.slane %v7814_v59, 7  ;;  %v3299_v13 = vrot.slane %v7814_v59, 6 }
 0x280   : > { %v3430_v31 = vrot.slane %v7820_v45, 7  ;;  %v3302_v6 = vrot.slane %v7820_v45, 6 }
 0x281   : > { %v5880_v62 = vpop.f32.mrb[16].mxu0  ;;  %v3428_v43 = vrot.slane %v7825_v16, 7  ;;  %v7846_v51 = vsel %vm9202_vm11, %v9026_v47, %v3427_v19  ;;  %v3300_v35 = vrot.slane %v7825_v16, 6  ;;  %v7853_v55 = vsel %vm9198_vm10, %v9027_v27, %v3299_v13  ;;  %vm9208_vm11 = vmmov %vm9204_vm2 }
 0x282   : > { %9203 = vst [vmem:[#allocation33_spill] sm:$0xff] %v7853_v55  ;;  %v3241_v33 = vadd.f32 %v5880_v62, %v7690_v8  ;;  %v3122_v37 = vpop.f32.mrb[17].mxu0  ;;  %v7858_v49 = vsel %vm9204_vm2, %v3429_v52, %v3430_v31  ;;  %v7862_v58 = vsel %vm9206_vm7, %v3301_v4, %v3302_v6  ;;  %vm9209_vm10 = vmmov %vm9204_vm2 }
 0x283   : > { %9205 = vst [vmem:[#allocation34_spill] sm:$0xff] %v7858_v49  ;;  %9207 = vst [vmem:[#allocation35_spill] sm:$0xff] %v7862_v58  ;;  %v3239_v17 = vadd.f32 %v7690_v8, %v3122_v37  ;;  %v5881_v18 = vpop.f32.mrb[18].mxu0  ;;  %v7869_v27 = vsel %vm9208_vm11, %v3427_v19, %v3428_v43  ;;  %v7873_v62 = vsel %vm9209_vm10, %v3428_v43, %v3429_v52  ;;  %v9216_v37 = vrot.slane %v7727_v57, 7 }
 0x284   : > { %9210 = vst [vmem:[#allocation36_spill] sm:$0xff] %v7873_v62  ;;  %vm9211_vm2 = vmmov %vm9206_vm7  ;;  %v7879_v2 = vmax.f32 %v3241_v33, 0.0  ;;  %v3242_v50 = vadd.f32 %v5881_v18, %v7690_v8  ;;  %v3125_v47 = vpop.f32.mrb[19].mxu0  ;;  %v9215_v18 = vrot.slane %v7742_v30, 7 }
 0x285   : > { %v7877_v3 = vsel %vm9211_vm2, %v3299_v13, %v3300_v35  ;;  %v7886_v53 = vmax.f32 %v3239_v17, 0.0  ;;  %v3240_v43 = vadd.f32 %v7690_v8, %v3125_v47  ;;  %vm9213_vm7 = vmmov %vm9211_vm2  ;;  %v9218_v17 = vrot.slane %v7693_v63, 7 }
 0x286   : > { %9212 = vst [vmem:[#allocation37_spill] sm:$0xff] %v7877_v3  ;;  %v7893_v33 = vsel %vm9213_vm7, %v3300_v35, %v3301_v4  ;;  %v7895_v13 = vmax.f32 %v3242_v50, 0.0  ;;  %vm9217_vm11 = vmmov %vm9209_vm10  ;;  %v9219_v47 = vrot.slane %v7719_v26, 7  ;;  %v3433_v46 = vrot.slane %v7879_v2, 7 }
 0x287   : > { %9214 = vst [vmem:[#allocation38_spill] sm:$0xff] %v7893_v33  ;;  %v7903_v19 = vsel %vm9217_vm11, %v9216_v37, %v9215_v18  ;;  %v7915_v4 = vmax.f32 %v3240_v43, 0.0  ;;  %v3431_v35 = vrot.slane %v7886_v53, 7  ;;  %v3303_v37 = vrot.slane %v7886_v53, 6  ;;  %vm9220_vm2 = vmmov %vm9209_vm10 }
 0x288   : > { %v7911_v52 = vsel %vm9209_vm10, %v9219_v47, %v9218_v17  ;;  %v3434_v18 = vrot.slane %v7895_v13, 7  ;;  %v3305_v7 = vrot.slane %v7879_v2, 6  ;;  %v3306_v36 = vrot.slane %v7895_v13, 6  ;;  %vm9223_vm11 = vmmov %vm9220_vm2 }
 0x289   : > { %v5884_v47 = vpop.f32.mrb[20].mxu0  ;;  %v3432_v50 = vrot.slane %v7915_v4, 7  ;;  %v7928_v43 = vsel %vm9220_vm2, %v3430_v31, %v3431_v35  ;;  %v3304_v25 = vrot.slane %v7915_v4, 6  ;;  %v7933_v42 = vsel %vm9213_vm7, %v3302_v6, %v3303_v37  ;;  %vm9225_vm10 = vmmov %vm9213_vm7 }
 0x28a   : > { %9221 = vst [vmem:[#allocation39_spill] sm:$0xff] %v7928_v43  ;;  %9222 = vst [vmem:[#allocation40_spill] sm:$0xff] %v7933_v42  ;;  %v3245_v34 = vadd.f32 %v5884_v47, %v7690_v8  ;;  %v3138_v22 = vpop.f32.mrb[21].mxu0  ;;  %v7938_v21 = vsel %vm9223_vm11, %v3433_v46, %v3434_v18  ;;  %v7942_v17 = vsel %vm9225_vm10, %v3305_v7, %v3306_v36 }
 0x28b   : > { %9224 = vst [vmem:[#allocation41_spill] sm:$0xff] %v7938_v21  ;;  %9226 = vst [vmem:[#allocation42_spill] sm:$0xff] %v7942_v17  ;;  %v3243_v33 = vadd.f32 %v7690_v8, %v3138_v22  ;;  %v5885_v58 = vpop.f32.mrb[22].mxu0  ;;  %v7949_v6 = vsel %vm9220_vm2, %v3431_v35, %v3432_v50  ;;  %v9233_v22 = vrot.slane %v7719_v26, 7  ;;  %v9234_v35 = vrot.slane %v7742_v30, 7 }
 0x28c   : > { %9227 = vst [vmem:[#allocation43_spill] sm:$0xff] %v7949_v6  ;;  %vm9228_vm7 = vmmov %vm9220_vm2  ;;  %v7959_v3 = vmax.f32 %v3245_v34, 0.0  ;;  %v3246_v9 = vadd.f32 %v5885_v58, %v7690_v8  ;;  %v3141_v31 = vpop.f32.mrb[23].mxu0  ;;  %v7973_v34 = vsel %vm9225_vm10, %v3304_v25, %v3305_v7  ;;  %v7976_v58 = vmax.f32 %v7778_v60, 0.0 }
 0x28d   : > { %v7953_v47 = vsel %vm9228_vm7, %v3432_v50, %v3433_v46  ;;  %vm9230_vm11 = vmmov %vm9225_vm10  ;;  %v7966_v12 = vmax.f32 %v3243_v33, 0.0  ;;  %v3244_v46 = vadd.f32 %v7690_v8, %v3141_v31  ;;  %9232 = vst [vmem:[#allocation46_spill] sm:$0xff] %v7973_v34  ;;  %v7986_v33 = vsel %vm9220_vm2, %v9234_v35, %v9233_v22 }
 0x28e   : > { %9229 = vst [vmem:[#allocation44_spill] sm:$0xff] %v7953_v47  ;;  %v7957_v55 = vsel %vm9230_vm11, %v3303_v37, %v3304_v25  ;;  %v7978_v37 = vmax.f32 %v3246_v9, 0.0  ;;  %v3437_v7 = vrot.slane %v7959_v3, 7  ;;  %v3309_v42 = vrot.slane %v7959_v3, 6  ;;  %vm9235_vm7 = vmmov %vm9220_vm2 }
 0x28f   : > { %9231 = vst [vmem:[#allocation45_spill] sm:$0xff] %v7957_v55  ;;  %v7990_v50 = vmax.f32 %v3244_v46, 0.0  ;;  %v3435_v25 = vrot.slane %v7966_v12, 7  ;;  %v3307_v9 = vrot.slane %v7966_v12, 6  ;;  %vm9237_vm11 = vmmov %vm9225_vm10  ;;  %v9276_v20 = vpack.c.bf16 %v7911_v52, %v7986_v33 }
 0x290   : > { %v3438_v60 = vrot.slane %v7978_v37, 7  ;;  %v3310_v55 = vrot.slane %v7978_v37, 6  ;;  %vm9239_vm10 = vmmov %vm9220_vm2  ;;  %v4250_v52 = vrot.slane %v7803_v29, 1  ;;  %v4251_v33 = vrot.slane %v7820_v45, 1 }
 0x291   : > { %v5888_v35 = vpop.f32.mrb[24].mxu0  ;;  %v3436_v31 = vrot.slane %v7990_v50, 7  ;;  %v8003_v46 = vsel %vm9235_vm7, %v3434_v18, %v3435_v25  ;;  %v3308_v34 = vrot.slane %v7990_v50, 6  ;;  %v8008_v17 = vsel %vm9237_vm11, %v3306_v36, %v3307_v9  ;;  %vm9241_vm2 = vmmov %vm9237_vm11 }
 0x292   : > { %9236 = vst [vmem:[#allocation47_spill] sm:$0xff] %v8003_v46  ;;  %9238 = vst [vmem:[#allocation48_spill] sm:$0xff] %v8008_v17  ;;  %v3249_v32 = vadd.f32 %v5888_v35, %v7690_v8  ;;  %v3154_v54 = vpop.f32.mrb[25].mxu0  ;;  %v8013_v28 = vsel %vm9239_vm10, %v3437_v7, %v3438_v60  ;;  %v8017_v22 = vsel %vm9241_vm2, %v3309_v42, %v3310_v55 }
 0x293   : > { %9240 = vst [vmem:[#allocation49_spill] sm:$0xff] %v8013_v28  ;;  %9242 = vst [vmem:[#allocation50_spill] sm:$0xff] %v8017_v22  ;;  %v3247_v56 = vadd.f32 %v7690_v8, %v3154_v54  ;;  %v5889_v30 = vpop.f32.mrb[26].mxu0  ;;  %v8024_v36 = vsel %vm9235_vm7, %v3435_v25, %v3436_v31 }
 0x294   : > { %9243 = vst [vmem:[#allocation51_spill] sm:$0xff] %v8024_v36  ;;  %vm9244_vm11 = vmmov %vm9235_vm7  ;;  %v8034_v47 = vmax.f32 %v3249_v32, 0.0  ;;  %v3250_v21 = vadd.f32 %v5889_v30, %v7690_v8  ;;  %v3157_v18 = vpop.f32.mrb[27].mxu0  ;;  %v8048_v32 = vsel %vm9241_vm2, %v3308_v34, %v3309_v42 }
 0x295   : > { %v8028_v35 = vsel %vm9244_vm11, %v3436_v31, %v3437_v7  ;;  %vm9246_vm10 = vmmov %vm9241_vm2  ;;  %v8041_v38 = vmax.f32 %v3247_v56, 0.0  ;;  %v3248_v31 = vadd.f32 %v7690_v8, %v3157_v18  ;;  %9248 = vst [vmem:[#allocation54_spill] sm:$0xff] %v8048_v32 }
 0x296   : > { %9245 = vst [vmem:[#allocation52_spill] sm:$0xff] %v8028_v35  ;;  %v8032_v61 = vsel %vm9246_vm10, %v3307_v9, %v3308_v34  ;;  %v8050_v9 = vmax.f32 %v3250_v21, 0.0  ;;  %v3441_v7 = vrot.slane %v8034_v47, 7  ;;  %v3313_v21 = vrot.slane %v8034_v47, 6  ;;  %vm9250_vm11 = vmmov %vm9241_vm2 }
 0x297   : > { %9247 = vst [vmem:[#allocation53_spill] sm:$0xff] %v8032_v61  ;;  %v8057_v25 = vmax.f32 %v3248_v31, 0.0  ;;  %v3439_v18 = vrot.slane %v8041_v38, 7  ;;  %v3311_v17 = vrot.slane %v8041_v38, 6  ;;  %vm9252_vm10 = vmmov %vm9235_vm7  ;;  %v4262_v23 = vrot.slane %v8034_v47, 1 }
 0x298   : > { %v3442_v42 = vrot.slane %v8050_v9, 7  ;;  %v3314_v34 = vrot.slane %v8050_v9, 6 }
 0x299   : > { %v5892_v54 = vpop.f32.mrb[28].mxu0  ;;  %v3440_v56 = vrot.slane %v8057_v25, 7  ;;  %v8070_v31 = vsel %vm9235_vm7, %v3438_v60, %v3439_v18  ;;  %v3312_v32 = vrot.slane %v8057_v25, 6  ;;  %v8075_v22 = vsel %vm9250_vm11, %v3310_v55, %v3311_v17  ;;  %vm9255_vm11 = vmmov %vm9235_vm7 }
 0x29a   : > { %9249 = vst [vmem:[#allocation55_spill] sm:$0xff] %v8070_v31  ;;  %9251 = vst [vmem:[#allocation56_spill] sm:$0xff] %v8075_v22  ;;  %v3253_v61 = vadd.f32 %v5892_v54, %v7690_v8  ;;  %v3170_v35 = vpop.f32.mrb[29].mxu0  ;;  %v8080_v28 = vsel %vm9252_vm10, %v3441_v7, %v3442_v42  ;;  %v8084_v30 = vsel %vm9241_vm2, %v3313_v21, %v3314_v34  ;;  %v6513_v31 = vld [vmem:[#allocation7 + $0x8] sm:$0xff]  }
 0x29b   : > { %9253 = vst [vmem:[#allocation57_spill] sm:$0xff] %v8080_v28  ;;  %9254 = vst [vmem:[#allocation58_spill] sm:$0xff] %v8084_v30  ;;  %v3251_v46 = vadd.f32 %v7690_v8, %v3170_v35  ;;  %v5893_v36 = vpop.f32.mrb[30].mxu0  ;;  %v8091_v55 = vsel %vm9235_vm7, %v3439_v18, %v3440_v56  ;;  %v8095_v54 = vsel %vm9255_vm11, %v3440_v56, %v3441_v7 }
 0x29c   : > { %9256 = vst [vmem:[#allocation59_spill] sm:$0xff] %v8095_v54  ;;  %vm9257_vm10 = vmmov %vm9241_vm2  ;;  %v8101_v6 = vmax.f32 %v3253_v61, 0.0  ;;  %v3254_v62 = vadd.f32 %v5893_v36, %v7690_v8  ;;  %v3173_v60 = vpop.f32.mrb[31].mxu0  ;;  %v8115_v61 = vsel %vm9241_vm2, %v3312_v32, %v3313_v21  ;;  %v3233_v36 = vadd.f32 %v7709_v14, %v7690_v8 }
 0x29d   : > { %v8099_v43 = vsel %vm9257_vm10, %v3311_v17, %v3312_v32  ;;  %v8108_v49 = vmax.f32 %v3251_v46, 0.0  ;;  %v3252_v7 = vadd.f32 %v7690_v8, %v3173_v60  ;;  %9259 = vst [vmem:[#allocation61_spill] sm:$0xff] %v8115_v61  ;;  %vm9260_vm11 = vmmov %vm9241_vm2  ;;  %v9261_v21 = vrot.slane %v7727_v57, 7 }
 0x29e   : > { %9258 = vst [vmem:[#allocation60_spill] sm:$0xff] %v8099_v43  ;;  %v8120_v35 = vmax.f32 %v3254_v62, 0.0  ;;  %v3445_v56 = vrot.slane %v8101_v6, 7  ;;  %v3317_v17 = vrot.slane %v8101_v6, 6  ;;  %v8144_v61 = vmax.f32 %v3233_v36, 0.0  ;;  %vm9262_vm10 = vmmov %vm9235_vm7 }
 0x29f   : > { %v8124_v18 = vmax.f32 %v3252_v7, 0.0  ;;  %v3443_v60 = vrot.slane %v8108_v49, 7  ;;  %v3315_v22 = vrot.slane %v8108_v49, 6  ;;  %vm9263_vm2 = vmmov %vm9235_vm7  ;;  %v9267_v36 = vrot.slane %v7745_v44, 7 }
 0x2a0   : > { %v3446_v32 = vrot.slane %v8120_v35, 7  ;;  %v9268_v54 = vrot.slane %v7976_v58, 7 }
 0x2a1   : > { %v3444_v14 = vrot.slane %v8124_v18, 7  ;;  %v8137_v62 = vsel %vm9235_vm7, %v3442_v42, %v3443_v60  ;;  %v3316_v7 = vrot.slane %v8124_v18, 6  ;;  %v8142_v46 = vsel %vm9260_vm11, %v3314_v34, %v3315_v22  ;;  %vm9265_vm7 = vmmov %vm9260_vm11 }
 0x2a2   : > { %v3478_v30 = vsel %vm9262_vm10, %v3446_v32, %v9261_v21  ;;  %v8152_v8 = vsel %vm9263_vm2, %v3445_v56, %v3446_v32  ;;  %v9264_v42 = vrot.slane %v8120_v35, 6  ;;  %vm9269_vm11 = vmmov %vm9263_vm2 }
 0x2a3   : > { %v5327_v34 = vpack.c.bf16 %v7903_v19, %v3478_v30  ;;  %v3471_v28 = vsel %vm9269_vm11, %v9268_v54, %v9267_v36  ;;  %vm9270_vm10 = vmmov %vm9263_vm2  ;;  %v8173_v32 = vsel %vm9263_vm2, %v3444_v14, %v3445_v56  ;;  %v8181_v30 = vsel %vm9265_vm7, %v3315_v22, %v3316_v7  ;;  %v6514_v36 = vld [vmem:[#allocation7 + $0x10] sm:$0xff]  }
 0x2a4   : > { %v8158_v43 = vsel %vm9265_vm7, %v3317_v17, %v9264_v42  ;;  %v8169_v21 = vsel %vm9270_vm10, %v3443_v60, %v3444_v14  ;;  %vm9271_vm11 = vmmov %vm9265_vm7  ;;  %v9273_v56 = vrot.slane %v7976_v58, 7  ;;  %v9274_v60 = vrot.slane %v7701_v24, 7 }
 0x2a5   : > { %9266 = vst [vmem:[#allocation62_spill] sm:$0xff] %v8158_v43  ;;  %v8185_v54 = vsel %vm9271_vm11, %v3316_v7, %v3317_v17  ;;  %5910 = vmatprep.mubr.msk.bf16.mxu1 %vm6988_vm3, %v5327_v34  ;;  %vm9275_vm10 = vmmov %vm9263_vm2  ;;  %v3425_v7 = vrot.slane %v8144_v61, 7  ;;  %v9080_v34 = vrot.slane %v7749_v11, 1  ;;  %v4245_v19 = vrot.slane %v7758_v41, 1 }
 0x2a6   : > { %9272 = vst [vmem:[#allocation63_spill] sm:$0xff] %v8185_v54  ;;  %v3472_v14 = vsel %vm9275_vm10, %v9274_v60, %v9273_v56  ;;  %5911 = vmatmul.mubr.bf16.vlgmr.msra.gmra.mrb[0].mxu1 %v9276_v20  ;;  %v9079_v56 = vrot.slane %v8144_v61, 1  ;;  %v9277_v60 = vpack.c.bf16 %v7734_v39, %v7716_v5  ;;  %v9082_v17 = vrot.slane %v7814_v59, 1  ;;  %vm9283_vm7 = vmmov %vm9275_vm10 }
 0x2a7   : > { %5943 = vmatpush3.bf16.msra.mxu1 %v7684_v40  ;;  %v4249_v22 = vrot.slane %v7825_v16, 1  ;;  %v3514_v20 = vpack.c.bf16 %v3471_v28, %v3472_v14  ;;  %vm9278_vm3 = vcmp.lt.s32.totalorder %v6963_v1, 7  ;;  %v4252_v5 = vrot.slane %v7886_v53, 1 }
 0x2a8   : > { %5914 = vmatprep.mubr.bf16.mxu1 %v9277_v60  ;;  %5944 = vmatprep.subr.bf16.mxu1 %v6513_v31  ;;  %v8220_v42 = vsel %vm9278_vm3, %v4245_v19, %v9079_v56  ;;  %vm9280_vm2 = vmmov %vm9278_vm3  ;;  %v9282_v39 = vrot.slane %v7772_v0, 7  ;;  %v9288_v56 = vrot.slane %v7758_v41, 7 }
 0x2a9   : > { %9279 = vst [vmem:[#allocation64_spill] sm:$0xff] %v8220_v42  ;;  %v8226_v40 = vsel %vm9280_vm2, %v9080_v34, %v4245_v19  ;;  %vm9284_vm11 = vmmov %vm9280_vm2  ;;  %v8255_v14 = vsel %vm9280_vm2, %v4251_v33, %v4252_v5  ;;  %v4254_v42 = vrot.slane %v7879_v2, 1 }
 0x2aa   : > { %9281 = vst [vmem:[#allocation65_spill] sm:$0xff] %v8226_v40  ;;  %v8233_v28 = vsel %vm9283_vm7, %v3425_v7, %v9282_v39  ;;  %v8239_v60 = vsel %vm9284_vm11, %v4249_v22, %v4250_v52  ;;  %vm9286_vm10 = vmmov %vm9280_vm2  ;;  %v4256_v39 = vrot.slane %v7966_v12, 1 }
 0x2ab   : > { %9285 = vst [vmem:[#allocation66_spill] sm:$0xff] %v8239_v60  ;;  %v8245_v19 = vsel %vm9286_vm10, %v9082_v17, %v4249_v22  ;;  %vm9289_vm3 = vmmov %vm9283_vm7  ;;  %5945 = vmatpush3.bf16.msra.mxu1 %v6513_v31  ;;  %v4253_v17 = vrot.slane %v7915_v4, 1  ;;  %v4258_v60 = vrot.slane %v7959_v3, 1 }
 0x2ac   : > { %9287 = vst [vmem:[#allocation67_spill] sm:$0xff] %v8245_v19  ;;  %v3468_v34 = vsel %vm9289_vm3, %v9288_v56, %v3425_v7  ;;  %9290 = vst [vmem:[#allocation68_spill] sm:$0xff] %v8255_v14  ;;  %v4255_v7 = vrot.slane %v7895_v13, 1  ;;  %5946 = vmatprep.subr.bf16.mxu1 %v6514_v36  ;;  %v6515_v56 = vld [vmem:[#allocation7 + $0x18] sm:$0xff]   ;;  %v4257_v19 = vrot.slane %v7990_v50, 1  ;;  %v4266_v14 = vrot.slane %v8101_v6, 1 }
 0x2ad   : > { %vm9291_vm7 = vmmov %vm9280_vm2 }
 0x2ae   : > { %v8259_v40 = vsel %vm9291_vm7, %v4250_v52, %v4251_v33  ;;  %v4259_v52 = vrot.slane %v7978_v37, 1  ;;  %vm9293_vm11 = vmmov %vm9280_vm2  ;;  %5915 = vmatmul.mubr.bf16.gmra.mrb[4].mxu1 %v3514_v20  ;;  %v8287_v54 = vsel %vm9280_vm2, %v4255_v7, %v4256_v39  ;;  %v4265_v20 = vrot.slane %v8124_v18, 1 }
 0x2af   : > { %9292 = vst [vmem:[#allocation69_spill] sm:$0xff] %v8259_v40  ;;  %v8272_v31 = vsel %vm9293_vm11, %v4253_v17, %v4254_v42  ;;  %vm9294_vm10 = vmmov %vm9280_vm2  ;;  %v4260_v40 = vrot.slane %v8041_v38, 1  ;;  %5947 = vmatpush3.bf16.msra.mxu1 %v6514_v36  ;;  %v4264_v36 = vrot.slane %v8108_v49, 1 }
 0x2b0   : > { %v8276_v33 = vsel %vm9294_vm10, %v4252_v5, %v4253_v17  ;;  %vm9295_vm3 = vmmov %vm9280_vm2  ;;  %5948 = vmatprep.subr.bf16.mxu1 %v6515_v56 }
 0x2b1   : > { %v8280_v22 = vsel %vm9295_vm3, %v4254_v42, %v4255_v7  ;;  %vm9296_vm7 = vmmov %vm9280_vm2  ;;  %v9299_v42 = vpack.c.bf16 %v7789_v15, %v7795_v48  ;;  %v4263_v48 = vrot.slane %v8050_v9, 1 }
 0x2b2   : > { %v8291_v43 = vsel %vm9296_vm7, %v4257_v19, %v4258_v60  ;;  %vm9297_vm11 = vmmov %vm9280_vm2 }
 0x2b3   : > { %v8295_v17 = vsel %vm9297_vm11, %v4256_v39, %v4257_v19  ;;  %5918 = vmatprep.mubr.msk.bf16.mxu1 %vm7083_vm5, %v9299_v42  ;;  %vm9300_vm10 = vmmov %vm9280_vm2  ;;  %v4261_v19 = vrot.slane %v8057_v25, 1  ;;  %v6516_v39 = vld [vmem:[#allocation7 + $0x20] sm:$0xff]   ;;  %v4267_v42 = vrot.slane %v8120_v35, 1  ;;  %5949 = vmatpush3.bf16.msra.mxu1 %v6515_v56 }
 0x2b4   : > { %9298 = vst [vmem:[#allocation70_spill] sm:$0xff] %v8295_v17  ;;  %v8308_v7 = vsel %vm9300_vm10, %v4259_v52, %v4260_v40  ;;  %vm9302_vm3 = vmmov %vm9280_vm2  ;;  %5950 = vmatprep.subr.bf16.mxu1 %v6516_v39 }
 0x2b5   : > { %9301 = vst [vmem:[#allocation71_spill] sm:$0xff] %v8308_v7  ;;  %v8313_v15 = vsel %vm9302_vm3, %v4258_v60, %v4259_v52  ;;  %vm9304_vm5 = vmmov %vm9280_vm2  ;;  %v8328_v60 = vsel %vm9280_vm2, %v4261_v19, %v4262_v23 }
 0x2b6   : > { %9303 = vst [vmem:[#allocation72_spill] sm:$0xff] %v8313_v15  ;;  %v8322_v5 = vsel %vm9304_vm5, %v4260_v40, %v4261_v19  ;;  %vm9305_vm7 = vmmov %vm9280_vm2  ;;  %v9315_v15 = vrot.slane %v7727_v57, 1 }
 0x2b7   : > { %v8332_v52 = vsel %vm9305_vm7, %v4263_v48, %v4264_v36  ;;  %vm9307_vm11 = vmmov %vm9280_vm2  ;;  %vm9319_vm7 = vcmp.lt.s32.totalorder %v6963_v1, 6  ;;  %5951 = vmatpush3.bf16.msra.mxu1 %v6516_v39  ;;  %v4622_v39 = vrot.slane %v7886_v53, 2 }
 0x2b8   : > { %9306 = vst [vmem:[#allocation73_spill] sm:$0xff] %v8332_v52  ;;  %v8336_v17 = vsel %vm9307_vm11, %v4262_v23, %v4263_v48  ;;  %vm9309_vm10 = vmmov %vm9280_vm2  ;;  %v3516_v23 = vpack.c.bf16 %v8233_v28, %v3468_v34  ;;  %v6517_v48 = vld [vmem:[#allocation7 + $0x28] sm:$0xff]   ;;  %v9095_v34 = vrot.slane %v7719_v26, 2  ;;  %v9317_v28 = vrot.slane %v7696_v10, 2 }
 0x2b9   : > { %9308 = vst [vmem:[#allocation74_spill] sm:$0xff] %v8336_v17  ;;  %v8345_v19 = vsel %vm9309_vm10, %v4265_v20, %v4266_v14  ;;  %vm9311_vm3 = vmmov %vm9280_vm2  ;;  %v8362_v17 = vsel %vm9280_vm2, %v4267_v42, %v9315_v15  ;;  %5952 = vmatprep.subr.bf16.mxu1 %v6517_v48 }
 0x2ba   : > { %9310 = vst [vmem:[#allocation75_spill] sm:$0xff] %v8345_v19  ;;  %v8349_v7 = vsel %vm9311_vm3, %v4264_v36, %v4265_v20  ;;  %vm9313_vm5 = vmmov %vm9280_vm2  ;;  %v9318_v36 = vrot.slane %v7693_v63, 2  ;;  %5919 = vmatmul.mubr.bf16.gmra.mrb[8].mxu1 %v3516_v23  ;;  %v4615_v20 = vrot.slane %v7758_v41, 2  ;;  %v4621_v23 = vrot.slane %v7820_v45, 2  ;;  %v9342_v19 = vld [vmem:[#allocation39_spill] sm:$0xff] }
 0x2bb   : > { %9312 = vst [vmem:[#allocation76_spill] sm:$0xff] %v8349_v7  ;;  %v8356_v40 = vsel %vm9313_vm5, %v4266_v14, %v4267_v42  ;;  %9316 = vst [vmem:[#allocation78_spill] sm:$0xff] %v8362_v17  ;;  %v9321_v14 = vpack.c.bf16 %v7869_v27, %v7846_v51  ;;  %v9097_v27 = vrot.slane %v8144_v61, 2  ;;  %5953 = vmatpush3.bf16.msra.mxu1 %v6517_v48  ;;  %v9337_v17 = vld [vmem:[#allocation36_spill] sm:$0xff] }
 0x2bc   : > { %9314 = vst [vmem:[#allocation77_spill] sm:$0xff] %v8356_v40  ;;  %v8373_v56 = vsel %vm9319_vm7, %v9318_v36, %v9317_v28  ;;  %v9322_v15 = vmov %v9318_v36  ;;  %vm9323_vm11 = vmmov %vm9319_vm7  ;;  %v6518_v40 = vld [vmem:[#allocation7 + $0x30] sm:$0xff]   ;;  %v9096_v28 = vrot.slane %v7749_v11, 2 }
 0x2bd   : > { %9320 = vst [vmem:[#allocation79_spill] sm:$0xff] %v8373_v56  ;;  %5922 = vmatprep.mubr.bf16.mxu1 %v9321_v14  ;;  %v8384_v42 = vsel %vm9323_vm11, %v9095_v34, %v9322_v15  ;;  %vm9325_vm10 = vmmov %vm9319_vm7  ;;  %v4619_v14 = vrot.slane %v7825_v16, 2  ;;  %v4620_v15 = vrot.slane %v7803_v29, 2  ;;  %5954 = vmatprep.subr.bf16.mxu1 %v6518_v40  ;;  %v6519_v34 = vld [vmem:[#allocation7 + $0x38] sm:$0xff]   ;;  %v9336_v56 = vld [vmem:[#allocation34_spill] sm:$0xff] }
 0x2be   : > { %9324 = vst [vmem:[#allocation80_spill] sm:$0xff] %v8384_v42  ;;  %v8395_v51 = vsel %vm9325_vm10, %v9096_v28, %v4615_v20  ;;  %vm9327_vm3 = vmmov %vm9319_vm7  ;;  %v9338_v7 = vpack.c.bf16 %v9336_v56, %v9337_v17  ;;  %v4626_v56 = vrot.slane %v7966_v12, 2  ;;  %v6520_v28 = vld [vmem:[#allocation7 + $0x80] sm:$0xff]  }
 0x2bf   : > { %9326 = vst [vmem:[#allocation81_spill] sm:$0xff] %v8395_v51  ;;  %v8402_v36 = vsel %vm9327_vm3, %v4615_v20, %v9097_v27  ;;  %vm9329_vm5 = vmmov %vm9327_vm3  ;;  %v9331_v20 = vrot.slane %v7814_v59, 2  ;;  %5955 = vmatpush3.bf16.msra.mxu1 %v6518_v40  ;;  %v4629_v40 = vrot.slane %v7978_v37, 2 }
 0x2c0   : > { %9328 = vst [vmem:[#allocation82_spill] sm:$0xff] %v8402_v36  ;;  %v8412_v48 = vsel %vm9329_vm5, %v4619_v14, %v4620_v15  ;;  %vm9332_vm2 = vmmov %vm9327_vm3  ;;  %v4623_v36 = vrot.slane %v7915_v4, 2  ;;  %5956 = vmatprep.subr.bf16.mxu1 %v6519_v34 }
 0x2c1   : > { %9330 = vst [vmem:[#allocation83_spill] sm:$0xff] %v8412_v48  ;;  %v8418_v27 = vsel %vm9332_vm2, %v9331_v20, %v4619_v14  ;;  %vm9334_vm7 = vmmov %vm9332_vm2  ;;  %v4624_v14 = vrot.slane %v7879_v2, 2  ;;  %v9341_v20 = vld [vmem:[#allocation43_spill] sm:$0xff] }
 0x2c2   : > { %9333 = vst [vmem:[#allocation84_spill] sm:$0xff] %v8418_v27  ;;  %v8422_v42 = vsel %vm9334_vm7, %v4620_v15, %v4621_v23  ;;  %5923 = vmatmul.mubr.bf16.gmra.mrb[12].mxu1 %v9338_v7  ;;  %vm9339_vm11 = vmmov %vm9332_vm2  ;;  %v9343_v52 = vpack.c.bf16 %v9341_v20, %v9342_v19  ;;  %v4625_v7 = vrot.slane %v7895_v13, 2  ;;  %v4630_v20 = vrot.slane %v8041_v38, 2 }
 0x2c3   : > { %9335 = vst [vmem:[#allocation85_spill] sm:$0xff] %v8422_v42  ;;  %v8431_v51 = vsel %vm9339_vm11, %v4621_v23, %v4622_v39  ;;  %v4627_v23 = vrot.slane %v7990_v50, 2  ;;  %vm9345_vm10 = vmmov %vm9332_vm2  ;;  %5957 = vmatpush3.bf16.msra.mxu1 %v6519_v34  ;;  %v4636_v34 = vrot.slane %v8101_v6, 2 }
 0x2c4   : > { %9340 = vst [vmem:[#allocation34_spill] sm:$0xff] %v8431_v51  ;;  %5926 = vmatprep.mubr.msk.bf16.mxu1 %vm7175_vm8, %v9343_v52  ;;  %v8447_v27 = vsel %vm9345_vm10, %v4623_v36, %v4624_v14  ;;  %vm9347_vm3 = vmmov %vm9332_vm2  ;;  %v4628_v52 = vrot.slane %v7959_v3, 2  ;;  %5990 = vmatprep.subr.bf16.mxu1 %v6520_v28 }
 0x2c5   : > { %9346 = vst [vmem:[#allocation36_spill] sm:$0xff] %v8447_v27  ;;  %v8451_v19 = vsel %vm9347_vm3, %v4622_v39, %v4623_v36  ;;  %vm9349_vm8 = vmmov %vm9332_vm2  ;;  %v8467_v42 = vsel %vm9332_vm2, %v4626_v56, %v4627_v23  ;;  %v4633_v39 = vrot.slane %v8050_v9, 2  ;;  %v9365_v27 = vld [vmem:[#allocation44_spill] sm:$0xff] }
 0x2c6   : > { %9348 = vst [vmem:[#allocation43_spill] sm:$0xff] %v8451_v19  ;;  %v8459_v15 = vsel %vm9349_vm8, %v4625_v7, %v4626_v56  ;;  %vm9351_vm5 = vmmov %vm9332_vm2  ;;  %v4632_v56 = vrot.slane %v8034_v47, 2 }
 0x2c7   : > { %9350 = vst [vmem:[#allocation39_spill] sm:$0xff] %v8459_v15  ;;  %v8463_v17 = vsel %vm9351_vm5, %v4624_v14, %v4625_v7  ;;  %9353 = vst [vmem:[#allocation86_spill] sm:$0xff] %v8467_v42  ;;  %v4631_v7 = vrot.slane %v8057_v25, 2  ;;  %v9364_v15 = vld [vmem:[#allocation41_spill] sm:$0xff] }
 0x2c8   : > { %9352 = vst [vmem:[#allocation12_spill] sm:$0xff] %v8463_v17  ;;  %vm9354_vm7 = vmmov %vm9332_vm2  ;;  %v4634_v17 = vrot.slane %v8108_v49, 2  ;;  %v9366_v51 = vpack.c.bf16 %v9364_v15, %v9365_v27  ;;  %v9121_v27 = vrot.slane %v7727_v57, 2  ;;  %v9380_v15 = vld [vmem:[#allocation55_spill] sm:$0xff] }
 0x2c9   : > { %v8473_v36 = vsel %vm9354_vm7, %v4627_v23, %v4628_v52  ;;  %vm9356_vm11 = vmmov %vm9332_vm2 }
 0x2ca   : > { %9355 = vst [vmem:[#allocation87_spill] sm:$0xff] %v8473_v36  ;;  %v8478_v19 = vsel %vm9356_vm11, %v4628_v52, %v4629_v40  ;;  %vm9358_vm10 = vmmov %vm9332_vm2  ;;  %v4635_v52 = vrot.slane %v8124_v18, 2  ;;  %5927 = vmatmul.mubr.bf16.gmra.mrb[16].mxu1 %v9366_v51  ;;  %v8513_v14 = vsel %vm9332_vm2, %v4633_v39, %v4634_v17  ;;  %v9381_v51 = vpack.c.bf16 %v8091_v55, %v9380_v15 }
 0x2cb   : > { %9357 = vst [vmem:[#allocation88_spill] sm:$0xff] %v8478_v19  ;;  %v8487_v23 = vsel %vm9358_vm10, %v4629_v40, %v4630_v20  ;;  %vm9360_vm3 = vmmov %vm9332_vm2 }
 0x2cc   : > { %9359 = vst [vmem:[#allocation89_spill] sm:$0xff] %v8487_v23  ;;  %v8496_v42 = vsel %vm9360_vm3, %v4631_v7, %v4632_v56  ;;  %vm9361_vm8 = vmmov %vm9332_vm2 }
 0x2cd   : > { %v8500_v36 = vsel %vm9361_vm8, %v4630_v20, %v4631_v7  ;;  %vm9362_vm5 = vmmov %vm9332_vm2  ;;  %v9371_v7 = vld [vmem:[#allocation51_spill] sm:$0xff]  ;;  %vm9389_vm8 = vcmp.lt.s32.totalorder %v6963_v1, 2 }
 0x2ce   : > { %v8504_v40 = vsel %vm9362_vm5, %v4632_v56, %v4633_v39  ;;  %vm9367_vm7 = vmmov %vm9332_vm2  ;;  %v9372_v56 = vld [vmem:[#allocation47_spill] sm:$0xff]  ;;  %v4637_v39 = vrot.slane %v8120_v35, 2 }
 0x2cf   : > { %9363 = vst [vmem:[#allocation90_spill] sm:$0xff] %v8504_v40  ;;  %v8517_v19 = vsel %vm9367_vm7, %v4635_v52, %v4636_v34  ;;  %vm9369_vm11 = vmmov %vm9332_vm2  ;;  %v9373_v23 = vpack.c.bf16 %v9371_v7, %v9372_v56  ;;  %v9378_v7 = vld [vmem:[#allocation52_spill] sm:$0xff] }
 0x2d0   : > { %9368 = vst [vmem:[#allocation41_spill] sm:$0xff] %v8517_v19  ;;  %v8521_v20 = vsel %vm9369_vm11, %v4634_v17, %v4635_v52  ;;  %vm9374_vm10 = vmmov %vm9332_vm2  ;;  %v9377_v52 = vld [vmem:[#allocation49_spill] sm:$0xff]  ;;  %v9384_v19 = vld [vmem:[#allocation59_spill] sm:$0xff] }
 0x2d1   : > { %9370 = vst [vmem:[#allocation44_spill] sm:$0xff] %v8521_v20  ;;  %5930 = vmatprep.mubr.bf16.mxu1 %v9373_v23  ;;  %v8534_v48 = vsel %vm9374_vm10, %v4636_v34, %v4637_v39  ;;  %vm9376_vm3 = vmmov %vm9332_vm2  ;;  %v9379_v56 = vpack.c.bf16 %v9377_v52, %v9378_v7  ;;  %v9383_v34 = vld [vmem:[#allocation57_spill] sm:$0xff]  ;;  %v3287_v23 = vrot.slane %v7727_v57, 6  ;;  %v9388_v52 = vrot.slane %v8120_v35, 6 }
 0x2d2   : > { %9375 = vst [vmem:[#allocation51_spill] sm:$0xff] %v8534_v48  ;;  %v8540_v17 = vsel %vm9376_vm3, %v4637_v39, %v9121_v27  ;;  %v9385_v40 = vpack.c.bf16 %v9383_v34, %v9384_v19  ;;  %v9386_v39 = vpack.c.bf16 %v8169_v21, %v8137_v62  ;;  %v9387_v27 = vld [vmem:[#allocation28_spill] sm:$0xff]  ;;  %vm9390_vm5 = vmmov %vm9389_vm8  ;;  %v9391_v19 = vpack.c.bf16 %v8152_v8, %v8173_v32  ;;  %v9396_v34 = vld [vmem:[#allocation27_spill] sm:$0xff] }
 0x2d3   : > { %5931 = vmatmul.mubr.bf16.gmra.mrb[20].mxu1 %v9379_v56  ;;  %v3288_v48 = vrot.slane %v9387_v27, 6  ;;  %v3350_v55 = vsel %vm9389_vm8, %v9388_v52, %v3287_v23  ;;  %v3289_v62 = vrot.slane %v7719_v26, 6  ;;  %vm9395_vm2 = vmmov %vm9390_vm5  ;;  %v3293_v32 = vrot.slane %v7976_v58, 6  ;;  %v6522_v52 = vld [vmem:[#allocation7 + $0x90] sm:$0xff]   ;;  %v9404_v21 = vld [vmem:[#allocation31_spill] sm:$0xff] }
 0x2d4   : > { %5934 = vmatprep.mubr.msk.bf16.mxu1 %vm7197_vm9, %v9381_v51  ;;  %vm9394_vm9 = vmmov %vm9390_vm5 }
 0x2d5   : > { %v3349_v20 = vsel %vm9390_vm5, %v3287_v23, %v3288_v48  ;;  %v3348_v7 = vsel %vm9395_vm2, %v3288_v48, %v3289_v62  ;;  %v6521_v23 = vld [vmem:[#allocation7 + $0x88] sm:$0xff]   ;;  %vm9402_vm7 = vmmov %vm9395_vm2 }
 0x2d6   : > { %v5347_v51 = vpack.c.bf16 %v3349_v20, %v3350_v55  ;;  %v9399_v55 = vrot.slane %v7745_v44, 6  ;;  %vm9408_vm11 = vmmov %vm9395_vm2 }
 0x2d7   : > { %vm9410_vm10 = vmmov %vm9395_vm2 }
 0x2db   : > { %5935 = vmatmul.mubr.bf16.gmra.mrb[24].mxu1 %v9385_v40  ;;  %v9393_v40 = vrot.slane %v7693_v63, 6 }
 0x2dc   : > { %5938 = vmatprep.mubr.bf16.mxu1 %v9386_v39  ;;  %v9397_v39 = vld [vmem:[#allocation26_spill] sm:$0xff] }
 0x2dd   : > { %v3347_v15 = vsel %vm9394_vm9, %v3289_v62, %v9393_v40  ;;  %v9398_v8 = vpack.c.bf16 %v9396_v34, %v9397_v39  ;;  %v6523_v62 = vld [vmem:[#allocation7 + $0x98] sm:$0xff]   ;;  %v9407_v34 = vrot.slane %v7772_v0, 6  ;;  %v9409_v39 = vrot.slane %v7758_v41, 6 }
 0x2de   : > { %v3384_v56 = vpack.c.bf16 %v3347_v15, %v3348_v7  ;;  %v3297_v7 = vrot.slane %v8144_v61, 6  ;;  %v9417_v15 = vld [vmem:[#allocation45_spill] sm:$0xff] }
 0x2e3   : > { %5939 = vmatmul.mubr.bf16.gmra.mrb[28].mxu1 %v9391_v19 }
 0x2e4   : > { %5958 = vmatprep.mubr.msk.bf16.mxu1 %vm7240_vm12, %v5347_v51  ;;  %vm9400_vm12 = vmmov %vm9395_vm2  ;;  %v9401_v51 = vrot.slane %v7701_v24, 6 }
 0x2e5   : > { %v3343_v20 = vsel %vm9400_vm12, %v3293_v32, %v9399_v55  ;;  %v6525_v55 = vld [vmem:[#allocation7 + $0xa8] sm:$0xff]  }
 0x2e6   : > { %v3344_v48 = vsel %vm9402_vm7, %v9401_v51, %v3293_v32  ;;  %v9412_v51 = vld [vmem:[#allocation33_spill] sm:$0xff] }
 0x2e7   : > { %v3386_v19 = vpack.c.bf16 %v3343_v20, %v3344_v48  ;;  %v9411_v20 = vld [vmem:[#allocation37_spill] sm:$0xff]  ;;  %v6526_v48 = vld [vmem:[#allocation7 + $0xb0] sm:$0xff]  }
 0x2eb   : > { %5959 = vmatmul.mubr.bf16.vlgmr.msra.gmra.mrb[0].mxu1 %v3384_v56  ;;  %v6524_v56 = vld [vmem:[#allocation7 + $0xa0] sm:$0xff]  }
 0x2ec   : > { %5962 = vmatprep.mubr.bf16.mxu1 %v9398_v8  ;;  %5991 = vmatpush3.bf16.msra.mxu1 %v6520_v28  ;;  %v9403_v28 = vld [vmem:[#allocation30_spill] sm:$0xff]  ;;  %v3340_v8 = vsel %vm9410_vm10, %v9409_v39, %v3297_v7 }
 0x2ed   : > { %5992 = vmatprep.subr.bf16.mxu1 %v6521_v23  ;;  %v9405_v40 = vpack.c.bf16 %v9403_v28, %v9404_v21  ;;  %v9414_v28 = vld [vmem:[#allocation35_spill] sm:$0xff]  ;;  %v9415_v21 = vld [vmem:[#allocation38_spill] sm:$0xff] }
 0x2ee   : > { %v9422_v39 = vld [vmem:[#allocation46_spill] sm:$0xff] }
 0x2f0   : > { %5993 = vmatpush3.bf16.msra.mxu1 %v6521_v23  ;;  %v3339_v23 = vsel %vm9408_vm11, %v3297_v7, %v9407_v34  ;;  %v9437_v34 = vpack.c.bf16 %v8181_v30, %v8142_v46  ;;  %v6530_v46 = vld [vmem:[#allocation7 + $0xd0] sm:$0xff]   ;;  %v3965_v30 = vpack.c.bf16 %v7745_v44, %v7976_v58 }
 0x2f1   : > { %5994 = vmatprep.subr.bf16.mxu1 %v6522_v52  ;;  %v3388_v32 = vpack.c.bf16 %v3339_v23, %v3340_v8  ;;  %v6528_v23 = vld [vmem:[#allocation7 + $0xc0] sm:$0xff]  }
 0x2f3   : > { %5963 = vmatmul.mubr.bf16.gmra.mrb[4].mxu1 %v3386_v19  ;;  %v6527_v19 = vld [vmem:[#allocation7 + $0xb8] sm:$0xff]  }
 0x2f4   : > { %5966 = vmatprep.mubr.msk.bf16.mxu1 %vm7273_vm14, %v9405_v40  ;;  %5995 = vmatpush3.bf16.msra.mxu1 %v6522_v52  ;;  %v9413_v52 = vpack.c.bf16 %v9411_v20, %v9412_v51  ;;  %v9416_v40 = vpack.c.bf16 %v9414_v28, %v9415_v21  ;;  %v9427_v51 = vld [vmem:[#allocation50_spill] sm:$0xff]  ;;  %v9430_v21 = vld [vmem:[#allocation60_spill] sm:$0xff]  ;;  %vm9452_vm14 = vcmp.lt.s32.totalorder %v6963_v1, 7 }
 0x2f5   : > { %5996 = vmatprep.subr.bf16.mxu1 %v6523_v62 }
 0x2f8   : > { %5997 = vmatpush3.bf16.msra.mxu1 %v6523_v62  ;;  %v9418_v62 = vld [vmem:[#allocation40_spill] sm:$0xff] }
 0x2f9   : > { %5998 = vmatprep.subr.bf16.mxu1 %v6524_v56  ;;  %v9419_v7 = vpack.c.bf16 %v9417_v15, %v9418_v62  ;;  %v9435_v62 = vld [vmem:[#allocation61_spill] sm:$0xff] }
 0x2fb   : > { %5967 = vmatmul.mubr.bf16.gmra.mrb[8].mxu1 %v3388_v32  ;;  %v9424_v32 = vld [vmem:[#allocation53_spill] sm:$0xff] }
 0x2fc   : > { %5970 = vmatprep.mubr.bf16.mxu1 %v9413_v52  ;;  %5999 = vmatpush3.bf16.msra.mxu1 %v6524_v56  ;;  %v9421_v56 = vld [vmem:[#allocation42_spill] sm:$0xff] }
 0x2fd   : > { %6000 = vmatprep.subr.bf16.mxu1 %v6525_v55  ;;  %v9423_v8 = vpack.c.bf16 %v9421_v56, %v9422_v39  ;;  %v9428_v52 = vld [vmem:[#allocation54_spill] sm:$0xff]  ;;  %v3962_v56 = vpack.c.bf16 %v9387_v27, %v7727_v57 }
 0x2fe   : > { %v9429_v28 = vpack.c.bf16 %v9427_v51, %v9428_v52  ;;  %v9438_v39 = vld [vmem:[#allocation62_spill] sm:$0xff]  ;;  %v3964_v51 = vpack.c.bf16 %v7701_v24, %v7696_v10  ;;  %v6531_v52 = vld [vmem:[#allocation7 + $0xd8] sm:$0xff]  }
 0x300   : > { %6001 = vmatpush3.bf16.msra.mxu1 %v6525_v55  ;;  %v9425_v55 = vld [vmem:[#allocation48_spill] sm:$0xff] }
 0x301   : > { %6002 = vmatprep.subr.bf16.mxu1 %v6526_v48  ;;  %v9426_v20 = vpack.c.bf16 %v9424_v32, %v9425_v55  ;;  %v3963_v55 = vpack.c.bf16 %v7693_v63, %v7719_v26  ;;  %v6532_v63 = vld [vmem:[#allocation7 + $0xe0] sm:$0xff]  }
 0x303   : > { %5971 = vmatmul.mubr.bf16.gmra.mrb[12].mxu1 %v9416_v40  ;;  %v9431_v40 = vld [vmem:[#allocation56_spill] sm:$0xff] }
 0x304   : > { %5974 = vmatprep.mubr.msk.bf16.mxu1 %vm7306_vm0, %v9419_v7  ;;  %6003 = vmatpush3.bf16.msra.mxu1 %v6526_v48  ;;  %v9432_v15 = vpack.c.bf16 %v9430_v21, %v9431_v40  ;;  %v6533_v21 = vld [vmem:[#allocation7 + $0xe8] sm:$0xff]   ;;  %v9442_v40 = vpack.c.bf16 %v7825_v16, %v7814_v59  ;;  %v9443_v48 = vpack.c.bf16 %v7820_v45, %v7803_v29  ;;  %vm9454_vm0 = vmmov %vm9452_vm14 }
 0x305   : > { %6004 = vmatprep.subr.bf16.mxu1 %v6527_v19  ;;  %v9445_v16 = vpack.c.bf16 %v7895_v13, %v7879_v2  ;;  %v9447_v29 = vpack.c.bf16 %v7978_v37, %v7959_v3  ;;  %v9449_v45 = vpack.c.bf16 %v8050_v9, %v8034_v47  ;;  %v9450_v2 = vpack.c.bf16 %v8124_v18, %v8108_v49  ;;  %vm9458_vm3 = vmmov %vm9454_vm0 }
 0x306   : > { %v9453_v13 = vrot.slane %v7727_v57, 1  ;;  %v9455_v47 = vpack.c.bf16 %v8120_v35, %v8101_v6  ;;  %v4241_v37 = vrot.slane %v7701_v24, 1  ;;  %v4242_v49 = vrot.slane %v7976_v58, 1  ;;  %v6538_v35 = vld [vmem:[#allocation7 + $0x110] sm:$0xff]   ;;  %vm9463_vm8 = vmmov %vm9454_vm0 }
 0x307   : > { %v9457_v9 = vrot.slane %v7696_v10, 1  ;;  %v4243_v6 = vrot.slane %v7745_v44, 1  ;;  %vm9464_vm5 = vmmov %vm9454_vm0 }
 0x308   : > { %6005 = vmatpush3.bf16.msra.mxu1 %v6527_v19  ;;  %v9434_v19 = vld [vmem:[#allocation58_spill] sm:$0xff]  ;;  %vm9470_vm9 = vmmov %vm9454_vm0 }
 0x309   : > { %6038 = vmatprep.subr.bf16.mxu1 %v6528_v23  ;;  %v9436_v7 = vpack.c.bf16 %v9434_v19, %v9435_v62  ;;  %v9444_v19 = vpack.c.bf16 %v7915_v4, %v7886_v53  ;;  %v6536_v62 = vld [vmem:[#allocation7 + $0x100] sm:$0xff]   ;;  %v9448_v53 = vpack.c.bf16 %v8057_v25, %v8041_v38  ;;  %v4237_v4 = vrot.slane %v9387_v27, 1  ;;  %vm9472_vm2 = vmmov %vm9454_vm0 }
 0x30a   : > { %v4294_v18 = vsel %vm9458_vm3, %v9457_v9, %v4241_v37 }
 0x30b   : > { %5975 = vmatmul.mubr.bf16.gmra.mrb[16].mxu1 %v9423_v8  ;;  %v9439_v8 = vld [vmem:[#allocation63_spill] sm:$0xff]  ;;  %v4298_v38 = vsel %vm9454_vm0, %v9453_v13, %v4237_v4 }
 0x30c   : > { %5978 = vmatprep.mubr.bf16.mxu1 %v9426_v20  ;;  %v9440_v32 = vpack.c.bf16 %v9438_v39, %v9439_v8  ;;  %v6529_v20 = vld [vmem:[#allocation7 + $0xc8] sm:$0xff]   ;;  %v9460_v8 = vld [vmem:[#allocation32_spill] sm:$0xff]  ;;  %v9530_v13 = vld [vmem:[#allocation43_spill] sm:$0xff] }
 0x30d   : > { %v9459_v39 = vld [vmem:[#allocation29_spill] sm:$0xff] }
 0x313   : > { %5979 = vmatmul.mubr.bf16.gmra.mrb[20].mxu1 %v9429_v28  ;;  %v9441_v28 = vpack.c.bf16 %v7758_v41, %v7749_v11  ;;  %v6535_v41 = vld [vmem:[#allocation7 + $0xf8] sm:$0xff]  }
 0x314   : > { %5982 = vmatprep.mubr.msk.bf16.mxu1 %vm7339_vm6, %v9432_v15  ;;  %v6534_v15 = vld [vmem:[#allocation7 + $0xf0] sm:$0xff]   ;;  %vm9456_vm6 = vmmov %vm9454_vm0 }
 0x315   : > { %v4293_v25 = vsel %vm9456_vm6, %v4241_v37, %v4242_v49 }
 0x31b   : > { %5983 = vmatmul.mubr.bf16.gmra.mrb[24].mxu1 %v9436_v7  ;;  %v9446_v7 = vpack.c.bf16 %v7990_v50, %v7966_v12  ;;  %v9451_v12 = vrot.slane %v7719_v26, 1 }
 0x31c   : > { %5986 = vmatprep.mubr.bf16.mxu1 %v9437_v34  ;;  %v6537_v34 = vld [vmem:[#allocation7 + $0x108] sm:$0xff]  }
 0x31d   : > { %v4297_v3 = vsel %vm9452_vm14, %v4237_v4, %v9451_v12  ;;  %v6543_v4 = vld [vmem:[#allocation7 + $0x138] sm:$0xff]   ;;  %v9477_v12 = vld [vmem:[#allocation69_spill] sm:$0xff] }
 0x31e   : > { %v4332_v50 = vpack.c.bf16 %v4297_v3, %v4298_v38  ;;  %v9480_v38 = vpack.c.bf16 %v8272_v31, %v8276_v33  ;;  %v9488_v31 = vpack.c.bf16 %v8328_v60, %v8322_v5  ;;  %v9489_v33 = vld [vmem:[#allocation73_spill] sm:$0xff] }
 0x323   : > { %5987 = vmatmul.mubr.bf16.gmra.mrb[28].mxu1 %v9440_v32  ;;  %v9461_v32 = vpack.c.bf16 %v9459_v39, %v9460_v8  ;;  %v9493_v39 = vld [vmem:[#allocation76_spill] sm:$0xff]  ;;  %v9495_v8 = vrot.slane %v7719_v26, 2  ;;  %v4612_v26 = vrot.slane %v7976_v58, 2 }
 0x324   : > { %6006 = vmatprep.mubr.bf16.mxu1 %v3962_v56  ;;  %v4334_v56 = vpack.c.bf16 %v4293_v25, %v4294_v18  ;;  %v9485_v25 = vld [vmem:[#allocation72_spill] sm:$0xff] }
 0x32b   : > { %6007 = vmatmul.mubr.bf16.vlgmr.msra.gmra.mrb[0].mxu1 %v3963_v55  ;;  %v9462_v55 = vrot.slane %v7749_v11, 1 }
 0x32c   : > { %6010 = vmatprep.mubr.bf16.mxu1 %v3964_v51  ;;  %6039 = vmatpush3.bf16.msra.mxu1 %v6528_v23  ;;  %v3967_v23 = vpack.c.bf16 %v7772_v0, %v8144_v61  ;;  %v4292_v51 = vsel %vm9464_vm5, %v4242_v49, %v4243_v6  ;;  %v9484_v49 = vld [vmem:[#allocation71_spill] sm:$0xff] }
 0x32d   : > { %6040 = vmatprep.subr.bf16.mxu1 %v6529_v20  ;;  %v9486_v9 = vpack.c.bf16 %v9484_v49, %v9485_v25  ;;  %v9538_v25 = vld [vmem:[#allocation89_spill] sm:$0xff] }
 0x330   : > { %6041 = vmatpush3.bf16.msra.mxu1 %v6529_v20  ;;  %v4291_v20 = vsel %vm9463_vm8, %v4243_v6, %v9462_v55  ;;  %v9497_v6 = vrot.slane %v7727_v57, 2  ;;  %v9500_v55 = vld [vmem:[#allocation77_spill] sm:$0xff]  ;;  %v9504_v57 = vrot.slane %v7696_v10, 2 }
 0x331   : > { %6042 = vmatprep.subr.bf16.mxu1 %v6530_v46 }
 0x333   : > { %6011 = vmatmul.mubr.bf16.gmra.mrb[4].mxu1 %v3965_v30  ;;  %v6539_v30 = vld [vmem:[#allocation7 + $0x118] sm:$0xff]  }
 0x334   : > { %6014 = vmatprep.mubr.bf16.mxu1 %v9441_v28  ;;  %6043 = vmatpush3.bf16.msra.mxu1 %v6530_v46  ;;  %v5375_v46 = vpack.c.bf16 %v4291_v20, %v4292_v51  ;;  %v9466_v28 = vld [vmem:[#allocation64_spill] sm:$0xff] }
 0x335   : > { %6044 = vmatprep.subr.bf16.mxu1 %v6531_v52 }
 0x338   : > { %6045 = vmatpush3.bf16.msra.mxu1 %v6531_v52 }
 0x339   : > { %6046 = vmatprep.subr.bf16.mxu1 %v6532_v63 }
 0x33b   : > { %6015 = vmatmul.mubr.bf16.gmra.mrb[8].mxu1 %v3967_v23 }
 0x33c   : > { %6018 = vmatprep.mubr.bf16.mxu1 %v9442_v40  ;;  %6047 = vmatpush3.bf16.msra.mxu1 %v6532_v63  ;;  %v9467_v63 = vld [vmem:[#allocation65_spill] sm:$0xff]  ;;  %v6540_v40 = vld [vmem:[#allocation7 + $0x120] sm:$0xff]  }
 0x33d   : > { %6048 = vmatprep.subr.bf16.mxu1 %v6533_v21  ;;  %v9468_v23 = vpack.c.bf16 %v9466_v28, %v9467_v63  ;;  %v9506_v28 = vld [vmem:[#allocation79_spill] sm:$0xff]  ;;  %v9507_v63 = vld [vmem:[#allocation80_spill] sm:$0xff] }
 0x340   : > { %6049 = vmatpush3.bf16.msra.mxu1 %v6533_v21  ;;  %v4247_v21 = vrot.slane %v7772_v0, 1 }
 0x341   : > { %6050 = vmatprep.subr.bf16.mxu1 %v6534_v15 }
 0x343   : > { %6019 = vmatmul.mubr.bf16.gmra.mrb[12].mxu1 %v9443_v48  ;;  %v9471_v48 = vrot.slane %v8144_v61, 1 }
 0x344   : > { %6022 = vmatprep.mubr.bf16.mxu1 %v9444_v19  ;;  %6051 = vmatpush3.bf16.msra.mxu1 %v6534_v15  ;;  %v9469_v15 = vrot.slane %v7814_v59, 1 }
 0x345   : > { %6052 = vmatprep.subr.bf16.mxu1 %v6535_v41  ;;  %v4288_v19 = vsel %vm9472_vm2, %v9471_v48, %v4247_v21  ;;  %v9515_v48 = vld [vmem:[#allocation81_spill] sm:$0xff] }
 0x348   : > { %6053 = vmatpush3.bf16.msra.mxu1 %v6535_v41  ;;  %v4287_v41 = vsel %vm9470_vm9, %v4247_v21, %v9469_v15  ;;  %v4613_v21 = vrot.slane %v7745_v44, 2  ;;  %v9512_v15 = vld [vmem:[#allocation22_spill] sm:$0xff]  ;;  %v9517_v44 = vrot.slane %v7814_v59, 2  ;;  %v9529_v59 = vld [vmem:[#allocation36_spill] sm:$0xff] }
 0x349   : > { %6086 = vmatprep.subr.bf16.mxu1 %v6536_v62  ;;  %vm9513_vm11 = vnez %v9512_v15 }
 0x34b   : > { %6023 = vmatmul.mubr.bf16.gmra.mrb[16].mxu1 %v9445_v16  ;;  %v6541_v16 = vld [vmem:[#allocation7 + $0x128] sm:$0xff]  }
 0x34c   : > { %6026 = vmatprep.mubr.bf16.mxu1 %v9446_v7  ;;  %v9473_v7 = vld [vmem:[#allocation66_spill] sm:$0xff] }
 0x353   : > { %6027 = vmatmul.mubr.bf16.gmra.mrb[20].mxu1 %v9447_v29  ;;  %v9474_v29 = vld [vmem:[#allocation67_spill] sm:$0xff] }
 0x354   : > { %6030 = vmatprep.mubr.bf16.mxu1 %v9448_v53  ;;  %v9475_v53 = vpack.c.bf16 %v9473_v7, %v9474_v29 }
 0x35b   : > { %6031 = vmatmul.mubr.bf16.gmra.mrb[24].mxu1 %v9449_v45  ;;  %v6542_v45 = vld [vmem:[#allocation7 + $0x130] sm:$0xff]  }
 0x35c   : > { %6034 = vmatprep.mubr.bf16.mxu1 %v9450_v2  ;;  %v9476_v2 = vld [vmem:[#allocation68_spill] sm:$0xff] }
 0x35d   : > { %v9478_v3 = vpack.c.bf16 %v9476_v2, %v9477_v12  ;;  %v9524_v2 = vld [vmem:[#allocation34_spill] sm:$0xff]  ;;  %v9525_v12 = vld [vmem:[#allocation85_spill] sm:$0xff] }
 0x363   : > { %6035 = vmatmul.mubr.bf16.gmra.mrb[28].mxu1 %v9455_v47  ;;  %v9482_v47 = vld [vmem:[#allocation70_spill] sm:$0xff] }
 0x364   : > { %6054 = vmatprep.mubr.bf16.mxu1 %v4332_v50  ;;  %v9481_v50 = vpack.c.bf16 %v8287_v54, %v8280_v22  ;;  %v9483_v37 = vpack.c.bf16 %v8291_v43, %v9482_v47  ;;  %v4607_v54 = vrot.slane %v9387_v27, 2  ;;  %v9492_v22 = vld [vmem:[#allocation75_spill] sm:$0xff]  ;;  %v4611_v27 = vrot.slane %v7701_v24, 2 }
 0x365   : > { %v9494_v43 = vpack.c.bf16 %v9492_v22, %v9493_v39  ;;  %v9509_v24 = vrot.slane %v7749_v11, 2  ;;  %v9535_v47 = vld [vmem:[#allocation87_spill] sm:$0xff]  ;;  %v9547_v22 = vld [vmem:[#allocation44_spill] sm:$0xff] }
 0x36b   : > { %6055 = vmatmul.mubr.bf16.vlgmr.msra.gmra.mrb[0].mxu1 %v9461_v32 }
 0x36c   : > { %6058 = vmatprep.mubr.bf16.mxu1 %v4334_v56  ;;  %6087 = vmatpush3.bf16.msra.mxu1 %v6536_v62  ;;  %v4337_v62 = vpack.c.bf16 %v4287_v41, %v4288_v19  ;;  %v9514_v41 = vld [vmem:[#allocation82_spill] sm:$0xff] }
 0x36d   : > { %6088 = vmatprep.subr.bf16.mxu1 %v6537_v34  ;;  %v9516_v19 = vpack.c.bf16 %v9514_v41, %v9515_v48 }
 0x370   : > { %6089 = vmatpush3.bf16.msra.mxu1 %v6537_v34  ;;  %v9490_v34 = vld [vmem:[#allocation74_spill] sm:$0xff] }
 0x371   : > { %6090 = vmatprep.subr.bf16.mxu1 %v6538_v35  ;;  %v9491_v56 = vpack.c.bf16 %v9489_v33, %v9490_v34  ;;  %v9543_v33 = vpack.c.bf16 %v8496_v42, %v8500_v36  ;;  %v9544_v34 = vld [vmem:[#allocation90_spill] sm:$0xff]  ;;  %v8838_v42 = vld [vmem:[%s8995_s4] ss:$0 sm:$0xff] }
 0x373   : > { %6059 = vmatmul.mubr.msk.bf16.gmra.mrb[4].mxu1 %vm7435_vm13, %v5375_v46  ;;  %vm9496_vm13 = vcmp.lt.s32.totalorder %v6963_v1, 6 }
 0x374   : > { %6062 = vmatprep.mubr.bf16.mxu1 %v9468_v23  ;;  %6091 = vmatpush3.bf16.msra.mxu1 %v6538_v35  ;;  %v4667_v32 = vsel %vm9496_vm13, %v4607_v54, %v9495_v8  ;;  %v9499_v35 = vld [vmem:[#allocation78_spill] sm:$0xff]  ;;  %v9508_v23 = vpack.c.bf16 %v9506_v28, %v9507_v63  ;;  %v6546_v28 = vld [vmem:[%s6953_s6 + $0x18] sm:$0xff] }
 0x375   : > { %6092 = vmatprep.subr.bf16.mxu1 %v6539_v30  ;;  %v9501_v20 = vpack.c.bf16 %v9499_v35, %v9500_v55 }
 0x378   : > { %6093 = vmatpush3.bf16.msra.mxu1 %v6539_v30 }
 0x379   : > { %6094 = vmatprep.subr.bf16.mxu1 %v6540_v40 }
 0x37b   : > { %6063 = vmatmul.mubr.bf16.gmra.mrb[8].mxu1 %v4337_v62  ;;  %v4617_v62 = vrot.slane %v7772_v0, 2  ;;  %v9527_v0 = vld [vmem:[#allocation23_spill] sm:$0xff] }
 0x37c   : > { %6066 = vmatprep.mubr.bf16.mxu1 %v9475_v53  ;;  %6095 = vmatpush3.bf16.msra.mxu1 %v6540_v40  ;;  %v9521_v53 = vld [vmem:[#allocation83_spill] sm:$0xff]  ;;  %vm9528_vm0 = vnez %v9527_v0 }
 0x37d   : > { %6096 = vmatprep.subr.bf16.mxu1 %v6541_v16 }
 0x380   : > { %6097 = vmatpush3.bf16.msra.mxu1 %v6541_v16  ;;  %v9519_v16 = vrot.slane %v8144_v61, 2  ;;  %v9532_v61 = vld [vmem:[#allocation39_spill] sm:$0xff] }
 0x381   : > { %6098 = vmatprep.subr.bf16.mxu1 %v6542_v45 }
 0x383   : > { %6067 = vmatmul.mubr.msk.bf16.gmra.mrb[12].mxu1 %vm7472_vm4, %v9478_v3  ;;  %vm9498_vm4 = vmmov %vm9496_vm13  ;;  %v9526_v3 = vpack.c.bf16 %v9524_v2, %v9525_v12  ;;  %v6551_v12 = vld [vmem:[%s6953_s6 + $0x28] sm:$0xff] }
 0x384   : > { %6070 = vmatprep.mubr.bf16.mxu1 %v9480_v38  ;;  %6099 = vmatpush3.bf16.msra.mxu1 %v6542_v45  ;;  %v4668_v5 = vsel %vm9498_vm4, %v9497_v6, %v4607_v54  ;;  %vm9505_vm12 = vmmov %vm9498_vm4  ;;  %v9522_v45 = vld [vmem:[#allocation84_spill] sm:$0xff]  ;;  %v9531_v38 = vpack.c.bf16 %v9529_v59, %v9530_v13  ;;  %v9546_v54 = vld [vmem:[#allocation41_spill] sm:$0xff] }
 0x385   : > { %6100 = vmatprep.subr.bf16.mxu1 %v6543_v4  ;;  %v4702_v60 = vpack.c.bf16 %v4667_v32, %v4668_v5  ;;  %v4664_v30 = vsel %vm9505_vm12, %v9504_v57, %v4611_v27  ;;  %v9548_v39 = vpack.c.bf16 %v9546_v54, %v9547_v22  ;;  %v9551_v32 = vld [vmem:[#allocation25_spill] sm:$0xff]  ;;  %v6545_v57 = vld [vmem:[%s6953_s6] sm:$0xff] }
 0x386   : > { %vm9552_vm3 = vnez %v9551_v32  ;;  %v6555_v22 = vld [vmem:[%s6953_s6 + $0x48] sm:$0xff] }
 0x388   : > { %6101 = vmatpush3.bf16.msra.mxu1 %v6543_v4  ;;  %v9523_v4 = vpack.c.bf16 %v9521_v53, %v9522_v45 }
 0x38b   : > { %6071 = vmatmul.mubr.bf16.gmra.mrb[16].mxu1 %v9481_v50  ;;  %v9533_v50 = vld [vmem:[#allocation12_spill] sm:$0xff] }
 0x38c   : > { %6074 = vmatprep.mubr.bf16.mxu1 %v9483_v37  ;;  %v9534_v1 = vpack.c.bf16 %v9532_v61, %v9533_v50  ;;  %v9536_v37 = vld [vmem:[#allocation86_spill] sm:$0xff] }
 0x38d   : > { %v9537_v49 = vpack.c.bf16 %v9535_v47, %v9536_v37 }
 0x393   : > { %6075 = vmatmul.mubr.msk.bf16.gmra.mrb[20].mxu1 %vm7509_vm15, %v9486_v9  ;;  %vm9503_vm15 = vmmov %vm9498_vm4  ;;  %v9539_v9 = vld [vmem:[#allocation88_spill] sm:$0xff] }
 0x394   : > { %6078 = vmatprep.mubr.bf16.mxu1 %v9488_v31  ;;  %v4663_v46 = vsel %vm9503_vm15, %v4611_v27, %v4612_v26  ;;  %v9540_v18 = vpack.c.bf16 %v9538_v25, %v9539_v9  ;;  %v9541_v31 = vld [vmem:[#allocation24_spill] sm:$0xff]  ;;  %v6544_v27 = vld [vmem:[%s6953_s6 + $0x10] sm:$0xff] }
 0x395   : > { %v4704_v52 = vpack.c.bf16 %v4663_v46, %v4664_v30  ;;  %vm9542_vm6 = vnez %v9541_v31  ;;  %v6552_v25 = vld [vmem:[%s6953_s6 + $0x50] sm:$0xff]  ;;  %v6553_v31 = vld [vmem:[%s6953_s6 + $0x40] sm:$0xff] }
 0x39b   : > { %6079 = vmatmul.mubr.bf16.gmra.mrb[24].mxu1 %v9491_v56  ;;  %v9545_v56 = vpack.c.bf16 %v8513_v14, %v9544_v34 }
 0x39c   : > { %6082 = vmatprep.mubr.bf16.mxu1 %v9494_v43  ;;  %v9549_v43 = vld [vmem:[#allocation51_spill] sm:$0xff] }
 0x39d   : > { %v9550_v8 = vpack.c.bf16 %v8540_v17, %v9549_v43 }
 0x3a3   : > { %6083 = vmatmul.mubr.msk.bf16.gmra.mrb[28].mxu1 %vm7551_vm1, %v9501_v20  ;;  %vm9510_vm1 = vmmov %vm9498_vm4 }
 0x3a4   : > { %6102 = vmatprep.mubr.bf16.mxu1 %v4702_v60  ;;  %v4661_v58 = vsel %vm9510_vm1, %v4613_v21, %v9509_v24  ;;  %vm9511_vm7 = vmmov %vm9510_vm1 }
 0x3a5   : > { %v4662_v40 = vsel %vm9511_vm7, %v4612_v26, %v4613_v21  ;;  %vm9518_vm10 = vmmov %vm9510_vm1 }
 0x3a6   : > { %v5395_v10 = vpack.c.bf16 %v4661_v58, %v4662_v40  ;;  %v4657_v11 = vsel %vm9518_vm10, %v4617_v62, %v9517_v44  ;;  %vm9520_vm14 = vmmov %vm9510_vm1 }
 0x3a7   : > { %v4658_v7 = vsel %vm9520_vm14, %v9519_v16, %v4617_v62 }
 0x3a8   : > { %v4707_v29 = vpack.c.bf16 %v4657_v11, %v4658_v7  ;;  %v6548_v11 = vld [vmem:[%s6953_s6 + $0x30] sm:$0xff] }
 0x3ab   : > { %6103 = vmatmul.mubr.bf16.vlgmr.msra.gmra.mrb[0].mxu1 %v9508_v23  ;;  %v6547_v23 = vld [vmem:[%s6953_s6 + $0x8] sm:$0xff] }
 0x3ac   : > { %6106 = vmatprep.mubr.bf16.mxu1 %v4704_v52 }
 0x3b3   : > { %6107 = vmatmul.mubr.msk.bf16.gmra.mrb[4].mxu1 %vm9513_vm11, %v5395_v10 }
 0x3b4   : > { %6110 = vmatprep.mubr.bf16.mxu1 %v9516_v19 }
 0x3bb   : > { %6111 = vmatmul.mubr.bf16.gmra.mrb[8].mxu1 %v4707_v29  ;;  %v6549_v29 = vld [vmem:[%s6953_s6 + $0x20] sm:$0xff] }
 0x3bc   : > { %6114 = vmatprep.mubr.bf16.mxu1 %v9523_v4  ;;  %v6550_v4 = vld [vmem:[%s6953_s6 + $0x38] sm:$0xff] }
 0x3c3   : > { %6115 = vmatmul.mubr.msk.bf16.gmra.mrb[12].mxu1 %vm9528_vm0, %v9526_v3 }
 0x3c4   : > { %6118 = vmatprep.mubr.bf16.mxu1 %v9531_v38 }
 0x3cb   : > { %6119 = vmatmul.mubr.bf16.gmra.mrb[16].mxu1 %v9534_v1 }
 0x3cc   : > { %6122 = vmatprep.mubr.bf16.mxu1 %v9537_v49 }
 0x3d3   : > { %6123 = vmatmul.mubr.msk.bf16.gmra.mrb[20].mxu1 %vm9542_vm6, %v9540_v18 }
 0x3d4   : > { %6126 = vmatprep.mubr.bf16.mxu1 %v9543_v33 }
 0x3db   : > { %6127 = vmatmul.mubr.bf16.gmra.mrb[24].mxu1 %v9545_v56  ;;  %v6554_v56 = vld [vmem:[%s6953_s6 + $0x58] sm:$0xff] }
 0x3dc   : > { %6130 = vmatprep.mubr.bf16.mxu1 %v9548_v39 }
 0x3e3   : > { %6131 = vmatmul.mubr.msk.bf16.gmra.mrb[28].mxu1 %vm9552_vm3, %v9550_v8 }
 0x47e   : > { %v6104_v36 = vpop.f32.mrb[0].mxu1 }
 0x47f   : > { %v4984_v14 = vadd.f32 %v6104_v36, %v8838_v42  ;;  %v4817_v6 = vpop.f32.mrb[1].mxu1 }
 0x480   : > { %v4982_v5 = vadd.f32 %v8838_v42, %v4817_v6  ;;  %v6105_v60 = vpop.f32.mrb[2].mxu1 }
 0x481   : > { %v5016_v35 = vmul.f32 0.3, %v4984_v14  ;;  %v4985_v17 = vadd.f32 %v6105_v60, %v8838_v42  ;;  %v4820_v55 = vpop.f32.mrb[3].mxu1 }
 0x482   : > { %v5014_v20 = vmul.f32 0.3, %v4982_v5  ;;  %v4983_v51 = vadd.f32 %v8838_v42, %v4820_v55  ;;  %v6556_v55 = vld [vmem:[%s6953_s6 + $0x70] sm:$0xff] }
 0x483   : > { %v5048_v26 = vadd.f32 %v6544_v27, %v5016_v35  ;;  %v5017_v46 = vmul.f32 0.3, %v4985_v17  ;;  %v6557_v27 = vld [vmem:[%s6953_s6 + $0x60] sm:$0xff] }
 0x484   : > { %v5046_v30 = vadd.f32 %v6545_v57, %v5014_v20  ;;  %v5015_v52 = vmul.f32 0.3, %v4983_v51  ;;  %v6558_v57 = vld [vmem:[%s6953_s6 + $0x78] sm:$0xff] }
 0x485   : > { %5080 = vst [vmem:[%s8848_s11 + $0x10] sm:$0xff] %v5048_v26  ;;  %v5049_v63 = vadd.f32 %v6546_v28, %v5017_v46 }
 0x486   : > { %5078 = vst [vmem:[%s8848_s11] sm:$0xff] %v5046_v30  ;;  %v5047_v21 = vadd.f32 %v6547_v23, %v5015_v52  ;;  %v6108_v24 = vpop.f32.mrb[4].mxu1  ;;  %v6559_v52 = vld [vmem:[%s6953_s6 + $0x68] sm:$0xff] }
 0x487   : > { %5081 = vst [vmem:[%s8848_s11 + $0x18] sm:$0xff] %v5049_v63  ;;  %v4988_v58 = vadd.f32 %v6108_v24, %v8838_v42  ;;  %v4833_v40 = vpop.f32.mrb[5].mxu1 }
 0x488   : > { %5079 = vst [vmem:[%s8848_s11 + $0x8] sm:$0xff] %v5047_v21  ;;  %v4986_v10 = vadd.f32 %v8838_v42, %v4833_v40  ;;  %v6109_v15 = vpop.f32.mrb[6].mxu1 }
 0x489   : > { %v5020_v41 = vmul.f32 0.3, %v4988_v58  ;;  %v4989_v48 = vadd.f32 %v6109_v15, %v8838_v42  ;;  %v4836_v19 = vpop.f32.mrb[7].mxu1 }
 0x48a   : > { %v5018_v62 = vmul.f32 0.3, %v4986_v10  ;;  %v4987_v44 = vadd.f32 %v8838_v42, %v4836_v19  ;;  %v6560_v19 = vld [vmem:[%s6953_s6 + $0x90] sm:$0xff] }
 0x48b   : > { %v5052_v16 = vadd.f32 %v6548_v11, %v5020_v41  ;;  %v5021_v7 = vmul.f32 0.3, %v4989_v48  ;;  %v6561_v11 = vld [vmem:[%s6953_s6 + $0x80] sm:$0xff] }
 0x48c   : > { %v5050_v53 = vadd.f32 %v6549_v29, %v5018_v62  ;;  %v5019_v45 = vmul.f32 0.3, %v4987_v44  ;;  %v6562_v29 = vld [vmem:[%s6953_s6 + $0x98] sm:$0xff] }
 0x48d   : > { %5084 = vst [vmem:[%s8848_s11 + $0x30] sm:$0xff] %v5052_v16  ;;  %v5053_v2 = vadd.f32 %v6550_v4, %v5021_v7 }
 0x48e   : > { %5082 = vst [vmem:[%s8848_s11 + $0x20] sm:$0xff] %v5050_v53  ;;  %v5051_v3 = vadd.f32 %v6551_v12, %v5019_v45  ;;  %v6112_v0 = vpop.f32.mrb[8].mxu1  ;;  %v6563_v45 = vld [vmem:[%s6953_s6 + $0x88] sm:$0xff] }
 0x48f   : > { %5085 = vst [vmem:[%s8848_s11 + $0x38] sm:$0xff] %v5053_v2  ;;  %v4992_v59 = vadd.f32 %v6112_v0, %v8838_v42  ;;  %v4849_v13 = vpop.f32.mrb[9].mxu1 }
 0x490   : > { %5083 = vst [vmem:[%s8848_s11 + $0x28] sm:$0xff] %v5051_v3  ;;  %v4990_v38 = vadd.f32 %v8838_v42, %v4849_v13  ;;  %v6113_v61 = vpop.f32.mrb[10].mxu1 }
 0x491   : > { %v5024_v50 = vmul.f32 0.3, %v4992_v59  ;;  %v4993_v1 = vadd.f32 %v6113_v61, %v8838_v42  ;;  %v4852_v47 = vpop.f32.mrb[11].mxu1 }
 0x492   : > { %v5022_v37 = vmul.f32 0.3, %v4990_v38  ;;  %v4991_v49 = vadd.f32 %v8838_v42, %v4852_v47  ;;  %v6564_v47 = vld [vmem:[%s6953_s6 + $0xb0] sm:$0xff] }
 0x493   : > { %v5056_v9 = vadd.f32 %v6552_v25, %v5024_v50  ;;  %v5025_v18 = vmul.f32 0.3, %v4993_v1  ;;  %v6565_v25 = vld [vmem:[%s6953_s6 + $0xa0] sm:$0xff] }
 0x494   : > { %v5054_v33 = vadd.f32 %v6553_v31, %v5022_v37  ;;  %v5023_v34 = vmul.f32 0.3, %v4991_v49  ;;  %v6566_v31 = vld [vmem:[%s6953_s6 + $0xb8] sm:$0xff] }
 0x495   : > { %5088 = vst [vmem:[%s8848_s11 + $0x50] sm:$0xff] %v5056_v9  ;;  %v5057_v54 = vadd.f32 %v6554_v56, %v5025_v18 }
 0x496   : > { %5086 = vst [vmem:[%s8848_s11 + $0x40] sm:$0xff] %v5054_v33  ;;  %v5055_v39 = vadd.f32 %v6555_v22, %v5023_v34  ;;  %v6116_v43 = vpop.f32.mrb[12].mxu1  ;;  %v6567_v34 = vld [vmem:[%s6953_s6 + $0xa8] sm:$0xff] }
 0x497   : > { %5089 = vst [vmem:[%s8848_s11 + $0x58] sm:$0xff] %v5057_v54  ;;  %v4996_v8 = vadd.f32 %v6116_v43, %v8838_v42  ;;  %v4865_v32 = vpop.f32.mrb[13].mxu1 }
 0x498   : > { %5087 = vst [vmem:[%s8848_s11 + $0x48] sm:$0xff] %v5055_v39  ;;  %v4994_v36 = vadd.f32 %v8838_v42, %v4865_v32  ;;  %v6117_v14 = vpop.f32.mrb[14].mxu1 }
 0x499   : > { %v5028_v6 = vmul.f32 0.3, %v4996_v8  ;;  %v4997_v5 = vadd.f32 %v6117_v14, %v8838_v42  ;;  %v4868_v60 = vpop.f32.mrb[15].mxu1 }
 0x49a   : > { %v5026_v35 = vmul.f32 0.3, %v4994_v36  ;;  %v4995_v17 = vadd.f32 %v8838_v42, %v4868_v60  ;;  %v6568_v60 = vld [vmem:[%s6953_s6 + $0xd0] sm:$0xff] }
 0x49b   : > { %v5060_v20 = vadd.f32 %v6556_v55, %v5028_v6  ;;  %v5029_v51 = vmul.f32 0.3, %v4997_v5  ;;  %v6569_v55 = vld [vmem:[%s6953_s6 + $0xc0] sm:$0xff] }
 0x49c   : > { %v5058_v26 = vadd.f32 %v6557_v27, %v5026_v35  ;;  %v5027_v46 = vmul.f32 0.3, %v4995_v17  ;;  %v6570_v27 = vld [vmem:[%s6953_s6 + $0xd8] sm:$0xff] }
 0x49d   : > { %5092 = vst [vmem:[%s8848_s11 + $0x70] sm:$0xff] %v5060_v20  ;;  %v5061_v30 = vadd.f32 %v6558_v57, %v5029_v51 }
 0x49e   : > { %5090 = vst [vmem:[%s8848_s11 + $0x60] sm:$0xff] %v5058_v26  ;;  %v5059_v28 = vadd.f32 %v6559_v52, %v5027_v46  ;;  %v6120_v63 = vpop.f32.mrb[16].mxu1  ;;  %v6571_v46 = vld [vmem:[%s6953_s6 + $0xc8] sm:$0xff] }
 0x49f   : > { %5093 = vst [vmem:[%s8848_s11 + $0x78] sm:$0xff] %v5061_v30  ;;  %v5000_v23 = vadd.f32 %v6120_v63, %v8838_v42  ;;  %v4881_v21 = vpop.f32.mrb[17].mxu1 }
 0x4a0   : > { %5091 = vst [vmem:[%s8848_s11 + $0x68] sm:$0xff] %v5059_v28  ;;  %v4998_v24 = vadd.f32 %v8838_v42, %v4881_v21  ;;  %v6121_v58 = vpop.f32.mrb[18].mxu1 }
 0x4a1   : > { %v5032_v40 = vmul.f32 0.3, %v5000_v23  ;;  %v5001_v10 = vadd.f32 %v6121_v58, %v8838_v42  ;;  %v4884_v15 = vpop.f32.mrb[19].mxu1 }
 0x4a2   : > { %v5030_v41 = vmul.f32 0.3, %v4998_v24  ;;  %v4999_v48 = vadd.f32 %v8838_v42, %v4884_v15  ;;  %v6572_v15 = vld [vmem:[%s6953_s6 + $0xf0] sm:$0xff] }
 0x4a3   : > { %v5064_v62 = vadd.f32 %v6560_v19, %v5032_v40  ;;  %v5033_v44 = vmul.f32 0.3, %v5001_v10  ;;  %v6573_v19 = vld [vmem:[%s6953_s6 + $0xe0] sm:$0xff] }
 0x4a4   : > { %v5062_v16 = vadd.f32 %v6561_v11, %v5030_v41  ;;  %v5031_v7 = vmul.f32 0.3, %v4999_v48  ;;  %v6574_v11 = vld [vmem:[%s6953_s6 + $0xf8] sm:$0xff] }
 0x4a5   : > { %5096 = vst [vmem:[%s8848_s11 + $0x90] sm:$0xff] %v5064_v62  ;;  %v5065_v53 = vadd.f32 %v6562_v29, %v5033_v44 }
 0x4a6   : > { %5094 = vst [vmem:[%s8848_s11 + $0x80] sm:$0xff] %v5062_v16  ;;  %v5063_v4 = vadd.f32 %v6563_v45, %v5031_v7  ;;  %v6124_v2 = vpop.f32.mrb[20].mxu1 }
 0x4a7   : > { %5097 = vst [vmem:[%s8848_s11 + $0x98] sm:$0xff] %v5065_v53  ;;  %v5004_v12 = vadd.f32 %v6124_v2, %v8838_v42  ;;  %v4897_v3 = vpop.f32.mrb[21].mxu1 }
 0x4a8   : > { %5095 = vst [vmem:[%s8848_s11 + $0x88] sm:$0xff] %v5063_v4  ;;  %v5002_v0 = vadd.f32 %v8838_v42, %v4897_v3  ;;  %v6125_v59 = vpop.f32.mrb[22].mxu1 }
 0x4a9   : > { %v5036_v13 = vmul.f32 0.3, %v5004_v12  ;;  %v5005_v38 = vadd.f32 %v6125_v59, %v8838_v42  ;;  %v4900_v61 = vpop.f32.mrb[23].mxu1 }
 0x4aa   : > { %v5034_v50 = vmul.f32 0.3, %v5002_v0  ;;  %v5003_v1 = vadd.f32 %v8838_v42, %v4900_v61 }
 0x4ab   : > { %v5068_v37 = vadd.f32 %v6564_v47, %v5036_v13  ;;  %v5037_v49 = vmul.f32 0.3, %v5005_v38 }
 0x4ac   : > { %v5066_v9 = vadd.f32 %v6565_v25, %v5034_v50  ;;  %v5035_v18 = vmul.f32 0.3, %v5003_v1 }
 0x4ad   : > { %5100 = vst [vmem:[%s8848_s11 + $0xb0] sm:$0xff] %v5068_v37  ;;  %v5069_v33 = vadd.f32 %v6566_v31, %v5037_v49 }
 0x4ae   : > { %5098 = vst [vmem:[%s8848_s11 + $0xa0] sm:$0xff] %v5066_v9  ;;  %v5067_v56 = vadd.f32 %v6567_v34, %v5035_v18  ;;  %v6128_v54 = vpop.f32.mrb[24].mxu1 }
 0x4af   : > { %5101 = vst [vmem:[%s8848_s11 + $0xb8] sm:$0xff] %v5069_v33  ;;  %v5008_v22 = vadd.f32 %v6128_v54, %v8838_v42  ;;  %v4913_v39 = vpop.f32.mrb[25].mxu1 }
 0x4b0   : > { %5099 = vst [vmem:[%s8848_s11 + $0xa8] sm:$0xff] %v5067_v56  ;;  %v5006_v43 = vadd.f32 %v8838_v42, %v4913_v39  ;;  %v6129_v8 = vpop.f32.mrb[26].mxu1 }
 0x4b1   : > { %v5040_v32 = vmul.f32 0.3, %v5008_v22  ;;  %v5009_v36 = vadd.f32 %v6129_v8, %v8838_v42  ;;  %v4916_v14 = vpop.f32.mrb[27].mxu1 }
 0x4b2   : > { %v5038_v6 = vmul.f32 0.3, %v5006_v43  ;;  %v5007_v5 = vadd.f32 %v8838_v42, %v4916_v14 }
 0x4b3   : > { %v5072_v35 = vadd.f32 %v6568_v60, %v5040_v32  ;;  %v5041_v17 = vmul.f32 0.3, %v5009_v36 }
 0x4b4   : > { %v5070_v20 = vadd.f32 %v6569_v55, %v5038_v6  ;;  %v5039_v51 = vmul.f32 0.3, %v5007_v5 }
 0x4b5   : > { %5104 = vst [vmem:[%s8848_s11 + $0xd0] sm:$0xff] %v5072_v35  ;;  %v5073_v26 = vadd.f32 %v6570_v27, %v5041_v17 }
 0x4b6   : > { %5102 = vst [vmem:[%s8848_s11 + $0xc0] sm:$0xff] %v5070_v20  ;;  %v5071_v57 = vadd.f32 %v6571_v46, %v5039_v51  ;;  %v6132_v30 = vpop.f32.mrb[28].mxu1 }
 0x4b7   : > { %5105 = vst [vmem:[%s8848_s11 + $0xd8] sm:$0xff] %v5073_v26  ;;  %v5012_v52 = vadd.f32 %v6132_v30, %v8838_v42  ;;  %v4929_v28 = vpop.f32.mrb[29].mxu1 }
 0x4b8   : > { %5103 = vst [vmem:[%s8848_s11 + $0xc8] sm:$0xff] %v5071_v57  ;;  %v5010_v63 = vadd.f32 %v8838_v42, %v4929_v28  ;;  %v6133_v23 = vpop.f32.mrb[30].mxu1 }
 0x4b9   : > { %v5044_v21 = vmul.f32 0.3, %v5012_v52  ;;  %v5013_v24 = vadd.f32 %v6133_v23, %v8838_v42  ;;  %v4932_v58 = vpop.f32.mrb[31].mxu1 }
 0x4ba   : > { %v5042_v40 = vmul.f32 0.3, %v5010_v63  ;;  %v5011_v10 = vadd.f32 %v8838_v42, %v4932_v58  ;;  %v6575_v42 = vld [vmem:[%s6953_s6 + $0xe8] sm:$0xff] }
 0x4bb   : > { %v5076_v41 = vadd.f32 %v6572_v15, %v5044_v21  ;;  %v5045_v48 = vmul.f32 0.3, %v5013_v24 }
 0x4bc   : > { %v5074_v62 = vadd.f32 %v6573_v19, %v5042_v40  ;;  %v5043_v44 = vmul.f32 0.3, %v5011_v10 }
 0x4bd   : > { %5108 = vst [vmem:[%s8848_s11 + $0xf0] sm:$0xff] %v5076_v41  ;;  %v5077_v16 = vadd.f32 %v6574_v11, %v5045_v48 }
 0x4be   : > { %5106 = vst [vmem:[%s8848_s11 + $0xe0] sm:$0xff] %v5074_v62  ;;  %v5075_v7 = vadd.f32 %v6575_v42, %v5043_v44 }
 0x4bf   : > { %5109 = vst [vmem:[%s8848_s11 + $0xf8] sm:$0xff] %v5077_v16 }
 0x4c0   : > { %5107 = vst [vmem:[%s8848_s11 + $0xe8] sm:$0xff] %v5075_v7 }
 0x4c1   : > { %6675 = shalt.err (!%p6672_p2)
}
 0x4c2   : > { %s6676_s6 = scalar_lea.hbm %s8941_s9, 4096  ;;  %s6680_s8 = scalar_lea.hbm %s8996_s5, 8192 }
 0x4c3   : > { %p6677_p13 = scmp.ne.s32.totalorder %s8941_s9, %s6676_s6  ;;  %p6681_p4 = scmp.lt.u32.totalorder %s8941_s9, %s8996_s5 }
 0x4c4   : > { %p6682_p5 = scmp.lt.u32.totalorder %s6680_s8, %s6676_s6  ;;  %p6684_p11 = scmp.lt.u32.totalorder %s6676_s6, %s8941_s9 }
 0x4c5   : > { %p6678_p6 = pnand %p6677_p13, %p9553_p0 }
 0x4c6   : > { %p6683_p8 = por %p6682_p5, %p6681_p4 }
 0x4c7   : > { %p6679_p10 = pneg %p6678_p6 }
 0x4c8   : > { %p6685_p1 = por %p6684_p11, %p6683_p8 }
 0x4ca   : > { %p6686_p3 = pnand %p6685_p1, %p6679_p10 }
 0x4cc   : > { %6689 = shalt.err (!%p6686_p3)
}
 0x4cd   : > { %s6743_s28 = smov 128   ;;  %s6744_s15 = smov 8  }
 0x4ce   : > { %6400 = dma.vmem_to_hbm [thread:$0]  (%p9553_p0), %s8943_s30, 4096, %s8941_s9, %s5111_s22, %s6743_s28, %s6743_s28, %s6744_s15  }
 0x4cf PF: > { %s5139_s16 = sand.u32 1, %s6720_s18   ;;  %p9554_p7 = scmp.ne.s32.totalorder %s9124_s25, 0 }
 0x4d0   : > { %p9555_p9 = scmp.ge.s32.totalorder %s6732_s21, 2  ;;  %s5140_s12 = scalar_lea.sflag [#allocation4], %s5139_s16 }
 0x4d2   : > { %p6414_p12 = pnand %p9555_p9, %p9554_p7 }
 0x4d4   : > { %6715 = dma.done.wait (!%p6414_p12), %s5140_s12, 4096  }
 0x4d5   : > { %6717 = vsyncadd (!%p6414_p12), %s5140_s12, 4294963200  ;;  %p19_p2 = scmp.ge.s32.totalorder %s6885_s14, 4   ;;  %s9556_s18 = smov %s6724_s19 }
 0x4d6   : > { %s9557_s19 = smov %s6728_s20  ;;  %s9558_s20 = smov %s6901_s27 }
 0x4d7   : > { %s9559_s21 = smov %s6885_s14  ;;  %21 = sbr.rel (!%p19_p2) target bundleno = 6 (0x6), region = 101 }
 0x4de   :  { %5145 = vsyncpa [#allocation3], 1 }
 0x4df   :  { %5147 = vsyncpa [#allocation3 + $0x1], 1 }
 0x4e0   :  { %5148 = vsyncpa [#allocation6], 1 }
 0x4e1   :  { %5149 = vsyncpa [#allocation4], 1 }
 0x4e2   :  { %5151 = vsyncpa [#allocation4 + $0x1], 1 }

</bundles_post_ra>
